<compile_context>
chip_gen: v7x
topology: tpu7x:2x2x1
jax: 0.10.0
libtpu: 0.0.40
codegen_flags: <defaults>
</compile_context>

<pallas_src>
import functools

import numpy as np

import jax
import jax.numpy as jnp
from jax import lax
from jax.experimental import pallas as pl
from jax.experimental.pallas import tpu as pltpu


# ---------------------------------------------------------------------------
# Kernel
# ---------------------------------------------------------------------------
def _resize_kernel(blkid_ref, x_ref, ry_ref, rxt_ref, o_ref, acc_ref, *,
                   h, th, nk, mask_tail, is_float):
    """One (batch, channel, output-row-tile, input-row-block) grid step.

    blkid_ref: (n_t, nk) int32   SMEM scalar-prefetch: input row-block ids
    x_ref:     (TH, W)           one input row band (BGR flip via index_map)
    ry_ref:    (TM, TH)          banded row-interpolation block (bf16)
    rxt_ref:   (W, Wout_pad)     column-interpolation matrix, transposed (bf16)
    o_ref:     (TM, Wout_pad)    resized output tile (bf16, uint8-valued)
    acc_ref:   (TM, W)  f32      row-resize accumulator across k
    """
    k = pl.program_id(3)

    @pl.when(k == 0)
    def _init():
        acc_ref[...] = jnp.zeros_like(acc_ref)

    xv = x_ref[...]
    if is_float:
        # ToPILImage on a float tensor: pic.mul(255).byte() -> truncating
        # quantize.  Integers 0..255 are exact in bf16.  Runs once per fetched
        # input block (not per output tile).
        img = jnp.clip(jnp.floor(xv.astype(jnp.float32) * 255.0), 0.0, 255.0)
        img = img.astype(jnp.bfloat16)
    else:
        img = xv.astype(jnp.bfloat16)

    if mask_tail:
        # H is not a multiple of TH: the last input block is partial and its
        # out-of-bounds rows hold undefined data; zero them (their ry weights
        # are zero, but 0 * NaN would poison the accumulator otherwise).
        t = pl.program_id(2)
        row0 = blkid_ref[t, k] * th
        rows = row0 + lax.broadcasted_iota(jnp.int32, img.shape, 0)
        img = jnp.where(rows < h, img, jnp.zeros_like(img))

    # Banded row resize on the MXU (bf16 operands, f32 accumulation).
    acc_ref[...] += jnp.dot(ry_ref[...], img, preferred_element_type=jnp.float32)

    @pl.when(k == nk - 1)
    def _finalize():
        # Column resize + uint8 re-quantization.  (jnp.round is half-to-even
        # vs PIL's half-up: occasional +-1 difference.)
        out = jnp.dot(acc_ref[...].astype(jnp.bfloat16), rxt_ref[...],
                      preferred_element_type=jnp.float32)
        o_ref[...] = jnp.clip(jnp.round(out), 0.0, 255.0).astype(o_ref.dtype)


# ---------------------------------------------------------------------------
# Host-side helpers (all static-shape / numpy -> baked-in constants)
# ---------------------------------------------------------------------------
def _round_up(x: int, m: int) -> int:
    return (x + m - 1) // m * m


def _shortest_edge_target(h: int, w: int, short: int = 800, max_size: int = 1333):
    """detectron2 ResizeShortestEdge target-size logic ('choice' w/ 1 size)."""
    scale = short / min(h, w)
    if max(h, w) * scale > max_size:
        scale = max_size / max(h, w)
    newh = int(h * scale + 0.5)
    neww = int(w * scale + 0.5)
    return newh, neww


def _bilinear_weights(out_size: int, in_size: int):
    """Per-output-pixel 2-tap bilinear taps (half-pixel centers)."""
    dst = np.arange(out_size, dtype=np.float64)
    src = np.clip((dst + 0.5) * (in_size / out_size) - 0.5, 0.0, in_size - 1)
    lo = np.floor(src).astype(np.int64)
    hi = np.minimum(lo + 1, in_size - 1)
    w_hi = (src - lo).astype(np.float32)
    w_lo = (1.0 - w_hi).astype(np.float32)
    return lo, hi, w_lo, w_hi


def _bilinear_matrix_np(out_size: int, in_size: int) -> np.ndarray:
    lo, hi, w_lo, w_hi = _bilinear_weights(out_size, in_size)
    m = np.zeros((out_size, in_size), np.float32)
    idx = np.arange(out_size)
    np.add.at(m, (idx, lo), w_lo)
    np.add.at(m, (idx, hi), w_hi)
    return m


def _largest_mult8_divisor(n: int, cap: int) -> int:
    best = 0
    d = 8
    while d <= min(n, cap):
        if n % d == 0:
            best = d
        d += 8
    return best


def _choose_out_tile(hout: int, cap: int = 512) -> int:
    """Output-row tile: divide Hout if possible, else even split (padded)."""
    if hout <= cap:
        return _round_up(hout, 8)
    d = _largest_mult8_divisor(hout, cap)
    if d >= 128:
        return d
    n = -(-hout // cap)
    return _round_up(-(-hout // n), 8)


def _choose_in_tile(h: int, cap: int = 256) -> int:
    """Input-row block: full H when small, else a divisor (else 256 + mask)."""
    if h <= cap:
        return h
    d = _largest_mult8_divisor(h, cap)
    if d >= 64:
        return d
    return cap


def _vmem_limit_bytes() -> int:
    """Generation-aware VMEM limit (~87% of capacity; v7x has 64 MiB/TC)."""
    try:
        cap = int(pltpu.get_tpu_info().vmem_capacity_bytes)
    except Exception:
        cap = 64 << 20  # conservative: v7x physical VMEM per TensorCore
    return min((cap * 7) // 8, 112 << 20)


def _pick_tiles(h: int, w: int, hout: int, wout_pad: int, x_itemsize: int):
    """Pick (TM, TH) and shrink them if the per-step VMEM estimate overflows."""
    tm = _choose_out_tile(hout)
    th = _choose_in_tile(h)
    budget = int(_vmem_limit_bytes() * 0.9)

    def usage(tm_, th_):
        return (2 * th_ * w * x_itemsize       # x band blocks (double-buffered)
                + 2 * tm_ * th_ * 2            # banded row-matrix blocks (bf16)
                + 2 * w * wout_pad * 2         # column matrix (grid-invariant)
                + 2 * tm_ * wout_pad * 2       # output blocks (bf16)
                + tm_ * w * 4)                 # f32 accumulator scratch

    while usage(tm, th) > budget and tm > 64:
        tm = max(64, _round_up(tm // 2, 8))
    while usage(tm, th) > budget and th > 64:
        th = max(64, _round_up(th // 2, 8))
    return tm, th


def _row_band_setup(hout: int, h: int, tm: int, th: int, n_t: int):
    """Per-output-row-tile input-block ids + the banded row-interp matrix."""
    lo, hi, _, _ = _bilinear_weights(hout, h)
    ry = _bilinear_matrix_np(hout, h)                       # (Hout, H)

    n_blk = -(-h // th)
    b0 = np.empty(n_t, np.int64)
    b1 = np.empty(n_t, np.int64)
    for t in range(n_t):
        rows = slice(t * tm, min((t + 1) * tm, hout))
        b0[t] = int(lo[rows].min()) // th
        b1[t] = int(hi[rows].max()) // th
    nk = int((b1 - b0 + 1).max())

    ry_pad = np.zeros((n_t * tm, n_blk * th), np.float32)
    ry_pad[:hout, :h] = ry

    blkid = np.empty((n_t, nk), np.int32)
    ry_blocks = np.zeros((n_t, nk, tm, th), np.float32)
    for t in range(n_t):
        for k in range(nk):
            blk = int(min(b0[t] + k, b1[t]))
            blkid[t, k] = blk
            if b0[t] + k <= b1[t]:  # real slot; padded slots keep zero weights
                ry_blocks[t, k] = ry_pad[t * tm:(t + 1) * tm,
                                         blk * th:(blk + 1) * th]
    return blkid, ry_blocks, nk


# ---------------------------------------------------------------------------
# Wrapper
# ---------------------------------------------------------------------------
@functools.partial(jax.jit, static_argnames=("short", "max_size"))
def preprocess(x: jnp.ndarray, short: int = 800, max_size: int = 1333):
    """x: (B, C, H, W) float in [0,1] (or uint8).  Returns (B, C, Hout, Wout)
    bfloat16 holding uint8-valued BGR pixels after ResizeShortestEdge."""
    B, C, H, W = x.shape
    Hout, Wout = _shortest_edge_target(H, W, short, max_size)

    # Lane-dense output: pad the last dim to a multiple of 128, slice after.
    Wout_pad = _round_up(Wout, 128)
    TM, TH = _pick_tiles(H, W, Hout, Wout_pad, x.dtype.itemsize)
    n_t = pl.cdiv(Hout, TM)
    Hout_pad = n_t * TM
    mask_tail = (H % TH) != 0

    # Static-shape constants (numpy -> baked into the executable).
    blkid_np, ry_blocks_np, nk = _row_band_setup(Hout, H, TM, TH, n_t)
    blkid = jnp.asarray(blkid_np)                                  # (n_t, nk)
    ry_blocks = jnp.asarray(ry_blocks_np, dtype=jnp.bfloat16)      # (n_t,nk,TM,TH)

    rxt_np = np.zeros((W, Wout_pad), np.float32)
    rxt_np[:, :Wout] = _bilinear_matrix_np(Wout, W).T
    rxt = jnp.asarray(rxt_np, dtype=jnp.bfloat16)                  # (W, Wout_pad)

    kernel = functools.partial(
        _resize_kernel, h=H, th=TH, nk=nk, mask_tail=mask_tail,
        is_float=bool(jnp.issubdtype(x.dtype, jnp.floating)))

    out = pl.pallas_call(
        kernel,
        out_shape=jax.ShapeDtypeStruct((B, C, Hout_pad, Wout_pad), jnp.bfloat16),
        grid_spec=pltpu.PrefetchScalarGridSpec(
            num_scalar_prefetch=1,
            grid=(B, C, n_t, nk),
            in_specs=[
                # Input row band; RGB -> BGR: output channel c reads input
                # channel C-1-c; the H block index is data-dependent (band).
                pl.BlockSpec((None, None, TH, W),
                             lambda b, c, t, k, blk: (b, C - 1 - c, blk[t, k], 0)),
                # Banded row-interpolation block for this (tile, block) slot.
                pl.BlockSpec((None, None, TM, TH),
                             lambda b, c, t, k, blk: (t, k, 0, 0)),
                # Column-interpolation matrix is grid-invariant (stays resident).
                pl.BlockSpec((W, Wout_pad),
                             lambda b, c, t, k, blk: (0, 0)),
            ],
            out_specs=pl.BlockSpec((None, None, TM, Wout_pad),
                                   lambda b, c, t, k, blk: (b, c, t, 0)),
            scratch_shapes=[pltpu.VMEM((TM, W), jnp.float32)],
        ),
        compiler_params=pltpu.CompilerParams(
            dimension_semantics=("parallel", "parallel", "parallel", "arbitrary"),
            vmem_limit_bytes=_vmem_limit_bytes(),
        ),
    )(blkid, x, ry_blocks, rxt)

    # Drop row/lane padding (detectron2 re-pads to size_divisibility anyway).
    return out[..., :Hout, :Wout]


def _reference_preprocess(x, short: int = 800, max_size: int = 1333):
    """Pure-JAX reference (f32, dense interpolation matrices)."""
    B, C, H, W = x.shape
    Hout, Wout = _shortest_edge_target(H, W, short, max_size)
    q = jnp.clip(jnp.floor(x[:, ::-1].astype(jnp.float32) * 255.0), 0.0, 255.0)
    ry = jnp.asarray(_bilinear_matrix_np(Hout, H))
    rx = jnp.asarray(_bilinear_matrix_np(Wout, W))
    out = jnp.einsum("oh,bchw,pw->bcop", ry, q, rx)
    return jnp.clip(jnp.round(out), 0.0, 255.0)


def my_model_forward(batched_inputs: jnp.ndarray):
    """Mirrors my_model.forward's preprocessing loop (vectorized over batch).

    Returns a list of dicts with 'height', 'width' (original image size) and
    'image' (preprocessed BGR CHW tensor), analogous to the `new_batch` that
    would be fed to the wrapped detection model.
    """
    B, C, H, W = batched_inputs.shape
    images = preprocess(batched_inputs)
    return [{"height": H, "width": W, "image": images[i]} for i in range(B)]


if __name__ == "__main__":
    key = jax.random.PRNGKey(0)
    k0, k1 = jax.random.split(key)

    # Config 1: batch=2, channels=3 RGB float tensors in [0,1], spatial 16 x 24.
    x = jax.random.uniform(k0, (2, 3, 16, 24), dtype=jnp.float32)
    batch = my_model_forward(x)
    imgs = jnp.stack([d["image"] for d in batch])
    jax.block_until_ready(imgs)

    Hout, Wout = _shortest_edge_target(16, 24)
    assert imgs.shape == (2, 3, Hout, Wout), imgs.shape
    assert imgs.dtype == jnp.bfloat16, imgs.dtype
    assert float(imgs.min()) >= 0.0 and float(imgs.max()) <= 255.0
    ref = _reference_preprocess(x)
    err = float(jnp.max(jnp.abs(imgs.astype(jnp.float32) - ref)))
    assert err <= 4.0, f"max abs error {err}"

    # Config 2: taller image -> exercises multi-block row banding, padded band
    # slots and the partial-tail-block masking path.
    x2 = jax.random.uniform(k1, (1, 3, 300, 40), dtype=jnp.float32)
    out2 = preprocess(x2)
    jax.block_until_ready(out2)
    H2out, W2out = _shortest_edge_target(300, 40)
    assert out2.shape == (1, 3, H2out, W2out), out2.shape
    ref2 = _reference_preprocess(x2)
    err2 = float(jnp.max(jnp.abs(out2.astype(jnp.float32) - ref2)))
    assert err2 <= 4.0, f"max abs error {err2}"

    print("KERNEL_OK")
</pallas_src>

<mosaic_0001>
module attributes {stable_mosaic.version = 11 : i64} {
  func.func @_resize_kernel(%arg0: i32, %arg1: i32, %arg2: i32, %arg3: i32, %arg4: memref<2x1xi32, #tpu.memory_space<smem>>, %arg5: memref<1x1x16x24xf32, #tpu.memory_space<vmem>>, %arg6: memref<1x1x400x16xbf16, #tpu.memory_space<vmem>>, %arg7: memref<24x1280xbf16, #tpu.memory_space<vmem>>, %arg8: memref<1x1x400x1280xbf16, #tpu.memory_space<vmem>>, %arg9: memref<400x24xf32, #tpu.memory_space<vmem>>) attributes {dimension_semantics = [#tpu.dimension_semantics<parallel>, #tpu.dimension_semantics<parallel>, #tpu.dimension_semantics<parallel>, #tpu.dimension_semantics<arbitrary>], iteration_bounds = array<i64: 2, 3, 2, 1>, scalar_prefetch = 1 : i64, scratch_operands = 1 : i64, tpu.core_type = #tpu.core_type<tc>, window_params = [{transform_indices = @transform_0, window_bounds = array<i64: 1, 1, 16, 24>}, {transform_indices = @transform_1, window_bounds = array<i64: 1, 1, 400, 16>}, {pipeline_mode = #tpu.pipeline_mode<synchronous>, transform_indices = @transform_2, window_bounds = array<i64: 24, 1280>}, {transform_indices = @transform_3, window_bounds = array<i64: 1, 1, 400, 1280>}]} {
    %c0_i32 = arith.constant 0 : i32
    %0 = arith.cmpi eq, %arg3, %c0_i32 : i32
    %1 = arith.extui %0 : i1 to i32
    %c0_i32_0 = arith.constant 0 : i32
    %2 = arith.cmpi ne, %1, %c0_i32_0 : i32
    scf.if %2 {
      %cst_17 = arith.constant 0.000000e+00 : f32
      %22 = vector.broadcast %cst_17 : f32 to vector<400x24xf32>
      %c0_18 = arith.constant 0 : index
      %c0_19 = arith.constant 0 : index
      %23 = vector.load %arg9[%c0_18, %c0_19] : memref<400x24xf32, #tpu.memory_space<vmem>>, vector<400x24xf32>
      tpu.vector_store %arg9[%c0_18, %c0_19], %22 {strides = array<i32>} : memref<400x24xf32, #tpu.memory_space<vmem>>, vector<400x24xf32>,
    } else {
    }
    %c0 = arith.constant 0 : index
    %c0_1 = arith.constant 0 : index
    %c0_2 = arith.constant 0 : index
    %c0_3 = arith.constant 0 : index
    %3 = vector.load %arg5[%c0, %c0_1, %c0_2, %c0_3] : memref<1x1x16x24xf32, #tpu.memory_space<vmem>>, vector<1x1x16x24xf32>
    %4 = vector.shape_cast %3 : vector<1x1x16x24xf32> to vector<16x24xf32>
    %cst = arith.constant 2.550000e+02 : f32
    %5 = vector.broadcast %cst : f32 to vector<16x24xf32>
    %6 = arith.mulf %4, %5 : vector<16x24xf32>
    %7 = math.floor %6 : vector<16x24xf32>
    %cst_4 = arith.constant 0.000000e+00 : f32
    %cst_5 = arith.constant 2.550000e+02 : f32
    %8 = vector.broadcast %cst_4 : f32 to vector<16x24xf32>
    %9 = arith.maximumf %8, %7 : vector<16x24xf32>
    %10 = vector.broadcast %cst_5 : f32 to vector<16x24xf32>
    %11 = arith.minimumf %10, %9 : vector<16x24xf32>
    %12 = arith.truncf %11 : vector<16x24xf32> to vector<16x24xbf16>
    %c0_6 = arith.constant 0 : index
    %c0_7 = arith.constant 0 : index
    %13 = vector.load %arg9[%c0_6, %c0_7] : memref<400x24xf32, #tpu.memory_space<vmem>>, vector<400x24xf32>
    %c0_8 = arith.constant 0 : index
    %c0_9 = arith.constant 0 : index
    %c0_10 = arith.constant 0 : index
    %c0_11 = arith.constant 0 : index
    %14 = vector.load %arg6[%c0_8, %c0_9, %c0_10, %c0_11] : memref<1x1x400x16xbf16, #tpu.memory_space<vmem>>, vector<1x1x400x16xbf16>
    %15 = vector.shape_cast %14 : vector<1x1x400x16xbf16> to vector<400x16xbf16>
    %cst_12 = arith.constant dense<0.000000e+00> : vector<400x24xf32>
    %16 = tpu.matmul %15, %12, %cst_12 {dimension_numbers = #tpu.dot_dimension_numbers<[1], [0], [0], [1], [0, 0, 1, 1], [], []>} : vector<400x16xbf16>, vector<16x24xbf16>, vector<400x24xf32> -> vector<400x24xf32>
    %17 = arith.addf %13, %16 : vector<400x24xf32>
    %c0_13 = arith.constant 0 : index
    %c0_14 = arith.constant 0 : index
    %18 = vector.load %arg9[%c0_13, %c0_14] : memref<400x24xf32, #tpu.memory_space<vmem>>, vector<400x24xf32>
    tpu.vector_store %arg9[%c0_13, %c0_14], %17 {strides = array<i32>} : memref<400x24xf32, #tpu.memory_space<vmem>>, vector<400x24xf32>,
    %c0_i32_15 = arith.constant 0 : i32
    %19 = arith.cmpi eq, %arg3, %c0_i32_15 : i32
    %20 = arith.extui %19 : i1 to i32
    %c0_i32_16 = arith.constant 0 : i32
    %21 = arith.cmpi ne, %20, %c0_i32_16 : i32
    scf.if %21 {
      %c0_17 = arith.constant 0 : index
      %c0_18 = arith.constant 0 : index
      %22 = vector.load %arg9[%c0_17, %c0_18] : memref<400x24xf32, #tpu.memory_space<vmem>>, vector<400x24xf32>
      %23 = arith.truncf %22 : vector<400x24xf32> to vector<400x24xbf16>
      %c0_19 = arith.constant 0 : index
      %c0_20 = arith.constant 0 : index
      %24 = vector.load %arg7[%c0_19, %c0_20] : memref<24x1280xbf16, #tpu.memory_space<vmem>>, vector<24x1280xbf16>
      %cst_21 = arith.constant dense<0.000000e+00> : vector<400x1280xf32>
      %25 = tpu.matmul %23, %24, %cst_21 {dimension_numbers = #tpu.dot_dimension_numbers<[1], [0], [0], [1], [0, 0, 1, 1], [], []>} : vector<400x24xbf16>, vector<24x1280xbf16>, vector<400x1280xf32> -> vector<400x1280xf32>
      %26 = math.roundeven %25 : vector<400x1280xf32>
      %cst_22 = arith.constant 0.000000e+00 : f32
      %cst_23 = arith.constant 2.550000e+02 : f32
      %27 = vector.broadcast %cst_22 : f32 to vector<400x1280xf32>
      %28 = arith.maximumf %27, %26 : vector<400x1280xf32>
      %29 = vector.broadcast %cst_23 : f32 to vector<400x1280xf32>
      %30 = arith.minimumf %29, %28 : vector<400x1280xf32>
      %31 = arith.truncf %30 : vector<400x1280xf32> to vector<400x1280xbf16>
      %c0_24 = arith.constant 0 : index
      %c0_25 = arith.constant 0 : index
      %c0_26 = arith.constant 0 : index
      %c0_27 = arith.constant 0 : index
      %32 = vector.load %arg8[%c0_24, %c0_25, %c0_26, %c0_27] : memref<1x1x400x1280xbf16, #tpu.memory_space<vmem>>, vector<1x1x400x1280xbf16>
      %33 = vector.shape_cast %32 : vector<1x1x400x1280xbf16> to vector<400x1280xbf16>
      %34 = vector.shape_cast %31 : vector<400x1280xbf16> to vector<1x1x400x1280xbf16>
      tpu.vector_store %arg8[%c0_24, %c0_25, %c0_26, %c0_27], %34 {strides = array<i32>} : memref<1x1x400x1280xbf16, #tpu.memory_space<vmem>>, vector<1x1x400x1280xbf16>,
    } else {
    }
    return
  }
  func.func @transform_0(%arg0: i32, %arg1: i32, %arg2: i32, %arg3: i32, %arg4: memref<2x1xi32, #tpu.memory_space<smem>>) -> (i32, i32, i32, i32) {
    %c2_i32 = arith.constant 2 : i32
    %0 = arith.subi %c2_i32, %arg1 : i32
    %1 = arith.index_cast %arg2 : i32 to index
    %2 = arith.index_cast %arg3 : i32 to index
    %3 = memref.load %arg4[%1, %2] : memref<2x1xi32, #tpu.memory_space<smem>>
    %c0_i32 = arith.constant 0 : i32
    %c0_i32_0 = arith.constant 0 : i32
    return %arg0, %0, %3, %c0_i32 : i32, i32, i32, i32
  }
  func.func @transform_1(%arg0: i32, %arg1: i32, %arg2: i32, %arg3: i32, %arg4: memref<2x1xi32, #tpu.memory_space<smem>>) -> (i32, i32, i32, i32) {
    %c0_i32 = arith.constant 0 : i32
    %c0_i32_0 = arith.constant 0 : i32
    %c0_i32_1 = arith.constant 0 : i32
    return %arg2, %arg3, %c0_i32, %c0_i32_0 : i32, i32, i32, i32
  }
  func.func @transform_2(%arg0: i32, %arg1: i32, %arg2: i32, %arg3: i32, %arg4: memref<2x1xi32, #tpu.memory_space<smem>>) -> (i32, i32) {
    %c0_i32 = arith.constant 0 : i32
    %c0_i32_0 = arith.constant 0 : i32
    %c0_i32_1 = arith.constant 0 : i32
    return %c0_i32, %c0_i32_0 : i32, i32
  }
  func.func @transform_3(%arg0: i32, %arg1: i32, %arg2: i32, %arg3: i32, %arg4: memref<2x1xi32, #tpu.memory_space<smem>>) -> (i32, i32, i32, i32) {
    %c0_i32 = arith.constant 0 : i32
    %c0_i32_0 = arith.constant 0 : i32
    return %arg0, %arg1, %arg2, %c0_i32 : i32, i32, i32, i32
  }
}

</mosaic_0001>

<bundles_post_ra>
// kernel: preprocess.1
= control target key start
LH: loop header
LB: loop body
LE: loop exit
PB: predicated region body
PF: predicated region fallthrough
CT: control target
= control target key end

     0   :  { %s9393_s0 = inlined_call_operand.vmem [shape: s32[2,1], index: 0, kind: input, shape index: {}]   ;;  %s9394_s1 = inlined_call_operand.hbm [shape: f32[2,3,16,24], index: 1, kind: input, shape index: {}]   ;;  %s9395_s2 = inlined_call_operand.hbm [shape: bf16[2,1,400,16], index: 2, kind: input, shape index: {}]   ;;  %s9396_s3 = inlined_call_operand.hbm [shape: bf16[24,1280], index: 3, kind: input, shape index: {}]   ;;  %s9397_s4 = inlined_call_operand.hbm [shape: bf16[2,3,800,1280], index: 4, kind: output, shape index: {}]  }
   0x1   :  { %9418 = sst [smem:[#allocation34_spill]] %s9396_s3  ;;  %s9_s17 = sshll.u32 %s9393_s0, 4  ;;  %s10_s17 = int_to_ptr.vmem [resolvable:$true] %s9_s17 }
   0x2   :  { %9419 = sst [smem:[#allocation35_spill]] %s9397_s4  ;;  %s7708_s18 = scalar_lea.vmem %s10_s17, 32 }
   0x3   :  { %p7709_p0 = scmp.ne.s32.totalorder %s10_s17, %s7708_s18  ;;  %p7713_p1 = scmp.lt.s32.totalorder %s10_s17, %s10_s17 }
   0x4   :  { %p7714_p2 = scmp.lt.s32.totalorder %s7708_s18, %s7708_s18 }
   0x6   :  { %p7715_p3 = por %p7714_p2, %p7713_p1 }
   0x8   :  { %p7716_p4 = pnand %p7715_p3, %p7709_p0 }
   0xa   :  { %7719 = shalt.err (!%p7716_p4)  }
   0xb   :  { %s7982_s19 = smov [#allocation4]  }
   0xc   :  { %12 = dma.vmem_to_smem %s10_s17, 32, %s7982_s19, [#allocation3] }
   0xd   :  { %7900 = dma.done.wait [#allocation3], 32 }
   0xe   :  { %7901 = vsyncadd [#allocation3], 4294967264 }
   0xf   :  { %14 = sfence }
  0x10   :  { %15 = vsyncpa [#allocation6], 0 }
  0x11   :  { %17 = vsyncpa [#allocation6 + $0x1], 0 }
  0x12   :  { %18 = vsyncpa [#allocation9], 0 }
  0x13   :  { %20 = vsyncpa [#allocation9 + $0x1], 0 }
  0x14   :  { %21 = vsyncpa [#allocation7], 0 }
  0x15   :  { %23 = vsyncpa [#allocation7 + $0x1], 0  ;;  %s8026_s0 = smov 0   ;;  %s8028_s20 = smov 0  }
  0x16   :  { %s8030_s21 = smov 0   ;;  %s8032_s22 = smov 0  }
  0x17   :  { %s8034_s23 = smov 0   ;;  %s8036_s24 = smov 0  }
  0x18   :  { %s8038_s25 = smov 0   ;;  %s8040_s26 = smov 0  }
  0x19   :  { %s8042_s27 = smov 0   ;;  %s8044_s28 = smov 0  }
  0x1a   :  { %s8046_s29 = smov 0   ;;  %s8048_s30 = smov 0  }
  0x1b   :  { %s8050_s5 = smov 0   ;;  %s8052_s6 = smov 0  }
  0x1c   :  { %s8054_s7 = smov 0   ;;  %s8056_s8 = smov 0  }
  0x1d LB: > { %9420 = sst [smem:[#allocation19_spill]] %s7920_s0  ;;  %s8103_s9 = sadd.s32 4294967295, %s7980_s8   ;;  %s7980_s8 = sphi %s8056_s8, %s29_s8   ;;  %s7976_s7 = sphi %s8054_s7, %s9473_s7   ;;  %s7972_s6 = sphi %s8052_s6, %s9486_s6   ;;  %s7968_s5 = sphi %s8050_s5, %s9485_s5   ;;  %s7964_s30 = sphi %s8048_s30, %s9484_s30   ;;  %s7960_s29 = sphi %s8046_s29, %s9469_s29   ;;  %s7956_s28 = sphi %s8044_s28, %s9483_s28   ;;  %s7952_s27 = sphi %s8042_s27, %s9482_s27   ;;  %s7948_s26 = sphi %s8040_s26, %s9481_s26   ;;  %s7944_s25 = sphi %s8038_s25, %s9480_s25   ;;  %s7940_s24 = sphi %s8036_s24, %s9479_s24   ;;  %s7936_s23 = sphi %s8034_s23, %s9478_s23   ;;  %s7932_s22 = sphi %s8032_s22, %s9477_s22   ;;  %s7928_s21 = sphi %s8030_s21, %s9466_s21   ;;  %s7924_s20 = sphi %s8028_s20, %s9476_s20   ;;  %s7920_s0 = sphi %s8026_s0, %s9474_s0  }
  0x1e   : > { %9421 = sst [smem:[#allocation20_spill]] %s7928_s21  ;;  %s6129_s10 = sadd.s32 4294967294, %s7980_s8  }
  0x1f   : > { %9422 = sst [smem:[#allocation21_spill]] %s7952_s27  ;;  %p97_p5 = scmp.ne.s32.totalorder %s7948_s26, %s7944_s25 }
  0x20   : > { %9423 = sst [smem:[#allocation22_spill]] %s7956_s28  ;;  %p9401_p6 = scmp.eq.s32.totalorder %s8103_s9, 0 }
  0x21   : > { %9424 = sst [smem:[#allocation23_spill]] %s7960_s29  ;;  %p125_p7 = scmp.ne.s32.totalorder %s7936_s23, %s7932_s22 }
  0x22   : > { %9425 = sst [smem:[#allocation24_spill]] %s7964_s30  ;;  %p173_p8 = scmp.ne.s32.totalorder %s7928_s21, %s7924_s20 }
  0x23   : > { %9426 = sst [smem:[#allocation25_spill]] %s7972_s6  ;;  %p8113_p9 = por %p9401_p6, %p97_p5 }
  0x24   : > { %9427 = sst [smem:[#allocation26_spill]] %s7976_s7  ;;  %p174_p10 = scmp.eq.s32.totalorder %s8103_s9, 11 }
  0x25   : > { %s9428_s11 = scalar_select %p8113_p9, 1, 0 }
  0x26   : > { %p8120_p11 = por %p125_p7, %p9401_p6  ;;  %p179_p12 = scmp.ne.s32.totalorder %s7924_s20, %s7920_s0 }
  0x27   : > { %p8126_p13 = por %p174_p10, %p173_p8  ;;  %p180_p0 = scmp.eq.s32.totalorder %s6129_s10, 11 }
  0x28   : > { %s9429_s12 = scalar_select %p8120_p11, 1, 0 }
  0x29   : > { %s9430_s13 = scalar_select %p8126_p13, 1, 0 }
  0x2a   : > { %p6132_p1 = scmp.ge.s32.totalorder %s7980_s8, 1  ;;  %p187_p2 = scmp.lt.s32.totalorder %s7980_s8, 13 }
  0x2b   : > { %9431 = sst [smem:[#allocation27_spill]] %s9430_s13  ;;  %p8132_p3 = por %p180_p0, %p179_p12 }
  0x2c   : > { %p8136_p4 = pnand %p6132_p1, %p187_p2  ;;  %s7983_s16 = smov [#allocation10]  }
  0x2d   : > { %s9432_s14 = scalar_select %p8132_p3, 1, 0 }
  0x2e   : > { %s9434_s15 = scalar_select %p8136_p4, 1, 0 }
  0x2f   : > { %9433 = sst [smem:[#allocation28_spill]] %s9432_s14  ;;  %s199_s17 = sshll.u32 %s7983_s16, 4  ;;  %s200_s17 = int_to_ptr.vmem [resolvable:$true] %s199_s17 }
  0x30   : > { %p7495_p5 = pneg %p8136_p4  ;;  %s9436_s3 = sld [smem:[#allocation34_spill]] }
  0x32   : > { %p8144_p7 = pnand %p7495_p5, %p9401_p6 }
  0x34   : > { %p7722_p10 = pneg %p8144_p7 }
  0x36   : > { %s7720_s25 = scalar_lea.hbm %s9436_s3, 1920 }
  0x37   : > { %p7721_p8 = scmp.ne.s32.totalorder %s9436_s3, %s7720_s25  ;;  %p7727_p1 = scmp.lt.u32.totalorder %s7720_s25, %s9436_s3 }
  0x39   : > { %p7723_p12 = pnand %p7722_p10, %p7721_p8 }
  0x3b   : > { %p7724_p0 = pneg %p7723_p12 }
  0x3d   : > { %p7729_p2 = pnand %p7727_p1, %p7724_p0 }
  0x3f   : > { %7732 = shalt.err (!%p7729_p2)
}
  0x40   : > { %s7733_s4 = scalar_lea.vmem %s200_s17, 1920  ;;  %p7741_p13 = scmp.lt.s32.totalorder %s200_s17, %s200_s17 }
  0x41   : > { %p7734_p5 = scmp.ne.s32.totalorder %s200_s17, %s7733_s4  ;;  %p7742_p11 = scmp.lt.s32.totalorder %s7733_s4, %s7733_s4 }
  0x43   : > { %p7736_p6 = pnand %p7734_p5, %p7722_p10  ;;  %p7743_p9 = por %p7742_p11, %p7741_p13 }
  0x45   : > { %p7737_p3 = pneg %p7736_p6 }
  0x47   : > { %p7744_p4 = pnand %p7743_p9, %p7737_p3 }
  0x49   : > { %7747 = shalt.err (!%p7744_p4)
}
  0x4a   : > { %s7984_s14 = smov 640   ;;  %s7985_s0 = smov 40  }
  0x4b   : > { %7498 = dma.hbm_to_vmem [thread:$0]  (!%p8144_p7), %s9436_s3, 1920, %s200_s17, [#allocation9], %s7984_s14, %s7984_s14, %s7985_s0  }
  0x4c   : > { %s47_s4 = sadd.s32 1, %s7968_s5  ;;  %s51_s25 = sadd.s32 1, %s7972_s6 }
  0x4d   : > { %p49_p6 = scmp.ge.s32.totalorder %s47_s4, 2  ;;  %s55_s10 = sadd.s32 1, %s7976_s7 }
  0x4e   : > { %s9409_s16 = ssub.s32 2, %s7972_s6  ;;  %s9408_s13 = sshll.u32 %s7968_s5, 7 }
  0x4f   : > { %s9488_s4 = smov (%p49_p6, %s47_s4), 0  ;;  %s9490_s25 = smov (!%p49_p6, %s51_s25), %s7972_s6 }
  0x50   : > { %9437 = sst [smem:[#allocation29_spill]] %s9488_s4  ;;  %s6131_s17 = sshll.u32 %s9488_s4, 7 }
  0x51   : > { %s67_s18 = sld [smem:[#allocation4 + %s9408_s13]]  ;;  %p53_p9 = scmp.ge.s32.totalorder %s9490_s25, 3 }
  0x52   : > { %s76_s14 = sld [smem:[#allocation4 + %s6131_s17]]  ;;  %s84_s0 = sadd.s32 1, %s7952_s27 }
  0x53   : > { %p91_p11 = scmp.ne.s32.totalorder %s7952_s27, %s7948_s26  ;;  %s9492_s25 = smov (%p53_p9, %s9490_s25), 0 }
  0x54   : > { %9438 = sst [smem:[#allocation30_spill]] %s9492_s25  ;;  %s9494_s10 = smov (!%p53_p9, %s55_s10), %s7976_s7 }
  0x55   : > { %s68_s19 = ssub.s32 2, %s9492_s25  ;;  %p92_p13 = scmp.eq.s32.totalorder %s7980_s8, 0 }
  0x56   : > { %p57_p3 = scmp.ge.s32.totalorder %s9494_s10, 2  ;;  %s78_s22 = ssub.s32 %s9409_s16, %s68_s19 }
  0x57   : > { %p8187_p4 = por %p92_p13, %p91_p11  ;;  %s8195_s3 = ssub.s32 %s7968_s5, %s9488_s4 }
  0x58   : > { %s80_s13 = ssub.s32 %s67_s18, %s76_s14  ;;  %s9496_s10 = smov (%p57_p3, %s9494_s10), 0 }
  0x59   : > { %9440 = sst [smem:[#allocation31_spill]] %s9496_s10  ;;  %s157_s30 = ssub.s32 %s7972_s6, %s9492_s25 }
  0x5a   : > { %s77_s19 = ssub.s32 %s7976_s7, %s9496_s10  ;;  %p110_p7 = scmp.eq.s32.totalorder %s8195_s3, 0 }
  0x5b   : > { %s79_s18 = sor.u32 %s78_s22, %s77_s19  ;;  %s158_s14 = sor.u32 %s157_s30, %s77_s19 }
  0x5c   : > { %s81_s16 = sor.u32 %s80_s13, %s79_s18  ;;  %s160_s29 = sor.u32 %s158_s14, %s8195_s3 }
  0x5d   : > { %p82_p8 = scmp.eq.s32.totalorder %s81_s16, 0  ;;  %p161_p10 = scmp.eq.s32.totalorder %s160_s29, 0 }
  0x5e   : > { %s163_s4 = sadd.s32 1, %s7928_s21  ;;  %p9417_p12 = scmp.lt.s32.totalorder %s7980_s8, 12 }
  0x5f   : > { %s8206_s25 = scalar_select %p82_p8, %s7952_s27, %s84_s0  }
  0x60   : > { %s8209_s10 = scalar_select %p161_p10, %s7928_s21, %s163_s4  }
  0x61   : > { %9441 = sst [smem:[#allocation32_spill]] %s8206_s25  ;;  %s213_s22 = sand.u32 1, %s7952_s27  }
  0x62   : > { %9442 = sst [smem:[#allocation33_spill]] %s8209_s10  ;;  %s9443_s28 = ssub.s32 2, %s7972_s6 }
  0x63   : > { %s6138_s30 = sshll.u32 %s9443_s28, 1  ;;  %s6135_s13 = sshll.u32 %s213_s22, 4 }
  0x64   : > { %s6975_s16 = smul.u32 6, %s7976_s7  ;;  %s9444_s19 = sshll.u32 %s7968_s5, 7 }
  0x65   : > { %s7485_s29 = scalar_select %p8187_p4, [#allocation4], [#allocation12] }
  0x66   : > { %s9498_s19 = smov (!%p8187_p4, %s9444_s19), 0  ;;  %s217_s4 = scalar_lea.vmem [#allocation5], %s6135_s13 }
  0x67   : > { %s9500_s29 = smov (!%p9417_p12, %s7485_s29), [#allocation13]  ;;  %s9502_s19 = smov (!%p9417_p12, %s9498_s19), 0 }
  0x68   : > { %s237_s0 = sshll.u32 %s217_s4, 4  ;;  %p8229_p0 = pnand %p9417_p12, %p8187_p4  ;;  %s8233_s0 = int_to_ptr.vmem [resolvable:$true] %s237_s0 }
  0x69   : > { %s226_s18 = sld [smem:[%s9500_s29 + %s9502_s19]]  ;;  %s112_s7 = sadd.s32 1, %s7940_s24 }
  0x6a   : > { %p119_p1 = scmp.ne.s32.totalorder %s7940_s24, %s7936_s23  ;;  %s249_s27 = sand.u32 1, %s7940_s24  }
  0x6b   : > { %s8242_s6 = scalar_select %p110_p7, %s7940_s24, %s112_s7  }
  0x6c   : > { %p8246_p2 = por %p119_p1, %p92_p13  ;;  %s8251_s19 = smul.u32 200, %s249_s27 }
  0x6d   : > { %s6977_s3 = smul.u32 3200, %s7968_s5  ;;  %s8259_s7 = scalar_lea.sflag [#allocation6], %s213_s22 }
  0x6e   : > { %p7750_p6 = pneg %p8229_p0  ;;  %s7753_s10 = scalar_lea.hbm %s9394_s1, 1536 }
  0x6f   : > { %s6137_s13 = sshll.u32 %s226_s18, 1 }
  0x70   : > { %s232_s4 = sadd.s32 %s6138_s30, %s6137_s13 }
  0x71   : > { %s234_s25 = sadd.s32 %s6975_s16, %s232_s4 }
  0x72   : > { %s6139_s29 = sshll.u32 %s234_s25, 7 }
  0x73   : > { %s8256_s21 = scalar_lea.hbm %s9394_s1, %s6139_s29 }
  0x74   : > { %s7748_s18 = scalar_lea.hbm %s8256_s21, 256  ;;  %p7754_p13 = scmp.lt.u32.totalorder %s8256_s21, %s9394_s1 }
  0x75   : > { %p7749_p5 = scmp.ne.s32.totalorder %s8256_s21, %s7748_s18  ;;  %p7755_p3 = scmp.lt.u32.totalorder %s7753_s10, %s7748_s18 }
  0x76   : > { %p7757_p7 = scmp.lt.u32.totalorder %s7748_s18, %s8256_s21 }
  0x77   : > { %p7751_p9 = pnand %p7750_p6, %p7749_p5  ;;  %p7756_p4 = por %p7755_p3, %p7754_p13 }
  0x79   : > { %p7752_p11 = pneg %p7751_p9  ;;  %p7758_p8 = por %p7757_p7, %p7756_p4 }
  0x7b   : > { %p7759_p10 = pnand %p7758_p8, %p7752_p11 }
  0x7d   : > { %7762 = shalt.err (!%p7759_p10)
}
  0x7e   : > { %s7763_s22 = scalar_lea.vmem %s8233_s0, 256  ;;  %s7986_s14 = smov [#allocation5]  }
  0x7f   : > { %p7764_p1 = scmp.ne.s32.totalorder %s8233_s0, %s7763_s22  ;;  %s7768_s13 = sshll.u32 %s7986_s14, 4  ;;  %s7769_s13 = int_to_ptr.vmem [resolvable:$false] %s7768_s13 }
  0x80   : > { %s7770_s4 = scalar_lea.vmem %s7769_s13, 512  ;;  %p7771_p12 = scmp.lt.s32.totalorder %s8233_s0, %s7769_s13 }
  0x81   : > { %p7766_p5 = pnand %p7764_p1, %p7750_p6  ;;  %p7772_p13 = scmp.lt.s32.totalorder %s7770_s4, %s7763_s22 }
  0x83   : > { %p7767_p9 = pneg %p7766_p5  ;;  %p7773_p3 = por %p7772_p13, %p7771_p12 }
  0x85   : > { %p7774_p4 = pnand %p7773_p3, %p7767_p9 }
  0x87   : > { %7777 = shalt.err (!%p7774_p4)
}
  0x88   : > { %s7987_s29 = smov 128   ;;  %s7988_s18 = smov 8  }
  0x89   : > { %7504 = dma.hbm_to_vmem [thread:$0]  (!%p8229_p0), %s8256_s21, 256, %s8233_s0, %s8259_s7, %s7987_s29, %s7987_s29, %s7988_s18  }
  0x8a   : > { %s8292_s10 = scalar_lea.hbm %s9395_s2, %s6977_s3  ;;  %s251_s30 = scalar_lea.vmem [#allocation8], %s8251_s19 }
  0x8b   : > { %s260_s16 = sshll.u32 %s251_s30, 4  ;;  %p9447_p12 = scmp.lt.s32.totalorder %s7980_s8, 12  ;;  %s8303_s16 = int_to_ptr.vmem [resolvable:$true] %s260_s16 }
  0x8c   : > { %s9449_s21 = sand.u32 1, %s7980_s8   ;;  %s7778_s28 = scalar_lea.hbm %s8292_s10, 3200 }
  0x8d   : > { %p8299_p6 = pnand %p9447_p12, %p8246_p2  ;;  %s8307_s0 = scalar_lea.sflag [#allocation9], %s9449_s21 }
  0x8e   : > { %p7779_p0 = scmp.ne.s32.totalorder %s8292_s10, %s7778_s28  ;;  %s7783_s3 = scalar_lea.hbm %s9395_s2, 6400 }
  0x8f   : > { %p7780_p11 = pneg %p8299_p6  ;;  %p7784_p2 = scmp.lt.u32.totalorder %s8292_s10, %s9395_s2 }
  0x90   : > { %p7785_p10 = scmp.lt.u32.totalorder %s7783_s3, %s7778_s28  ;;  %p7787_p5 = scmp.lt.u32.totalorder %s7778_s28, %s8292_s10 }
  0x91   : > { %p7781_p7 = pnand %p7780_p11, %p7779_p0 }
  0x92   : > { %p7786_p1 = por %p7785_p10, %p7784_p2 }
  0x93   : > { %p7782_p8 = pneg %p7781_p7 }
  0x94   : > { %p7788_p9 = por %p7787_p5, %p7786_p1 }
  0x96   : > { %p7789_p13 = pnand %p7788_p9, %p7782_p8 }
  0x98   : > { %7792 = shalt.err (!%p7789_p13)
}
  0x99   : > { %s7793_s13 = scalar_lea.vmem %s8303_s16, 3200  ;;  %s7989_s4 = smov [#allocation8]  }
  0x9a   : > { %p7794_p3 = scmp.ne.s32.totalorder %s8303_s16, %s7793_s13  ;;  %s7798_s29 = sshll.u32 %s7989_s4, 4  ;;  %s7799_s29 = int_to_ptr.vmem [resolvable:$false] %s7798_s29 }
  0x9b   : > { %s7800_s18 = scalar_lea.vmem %s7799_s29, 6400  ;;  %p7801_p0 = scmp.lt.s32.totalorder %s8303_s16, %s7799_s29 }
  0x9c   : > { %p7796_p4 = pnand %p7794_p3, %p7780_p11  ;;  %p7802_p7 = scmp.lt.s32.totalorder %s7800_s18, %s7793_s13 }
  0x9e   : > { %p7797_p12 = pneg %p7796_p4  ;;  %p7803_p2 = por %p7802_p7, %p7801_p0 }
  0xa0   : > { %p7804_p10 = pnand %p7803_p2, %p7797_p12 }
  0xa2   : > { %7807 = shalt.err (!%p7804_p10)
}
  0xa3   : > { %s7990_s27 = smov 64   ;;  %s7991_s25 = smov 4  }
  0xa4   : > { %7507 = dma.hbm_to_vmem [thread:$0]  (!%p8299_p6), %s8292_s10, 3200, %s8303_s16, %s8307_s0, %s7990_s27, %s7990_s27, %s7991_s25  }
  0xa5   : > { %p9450_p11 = scmp.ne.s32.totalorder %s9434_s15, 0 }
  0xa6   : > { %s274_s30 = sand.u32 (!%p9450_p11), 1, %s7948_s26   ;;  %p9451_p8 = scmp.ne.s32.totalorder (!%p9450_p11), %s9428_s11, 0 }
  0xa7   : > { %272 = sbr.rel (%p9450_p11) target bundleno = 1253 (0x4e5), region = 32  ;;  %s6142_s21 = sshll.u32 (!%p9450_p11), %s274_s30, 4 }
  0xa8   : > { %s275_s28 = scalar_lea.sflag (!%p9450_p11), [#allocation6], %s274_s30  ;;  %s278_s17 = scalar_lea.vmem (!%p9450_p11), [#allocation5], %s6142_s21 }
  0xae   : > { %7903 = dma.done.wait (%p9451_p8), %s275_s28, 256  }
  0xaf   : > { %7905 = vsyncadd (%p9451_p8), %s275_s28, 4294967040  ;;  %s283_s19 = sand.u32 1, %s8103_s9   ;;  %s285_s22 = sand.u32 1, %s7936_s23  }
  0xb0   : > { %s6978_s10 = smul.u32 200, %s285_s22  ;;  %s284_s16 = scalar_lea.sflag [#allocation9], %s283_s19 }
  0xb1   : > { %p9452_p6 = scmp.ne.s32.totalorder %s9429_s12, 0 }
  0xb2   : > { %s8344_s15 = scalar_lea.vmem [#allocation8], %s6978_s10 }
  0xb3   : > { %7907 = dma.done.wait (%p9452_p6), %s284_s16, 3200  }
  0xb4   : > { %7909 = vsyncadd (%p9452_p6), %s284_s16, 4294964096  ;;  %p9453_p1 = scmp.eq.s32.totalorder %s8103_s9, 0 }
  0xb6   : > { %7911 = dma.done.wait (%p9453_p1), [#allocation9], 1920   ;;  %p9454_p5 = pmov %p9453_p1 }
  0xb7   : > { %v7992_v0 = vmov 0.0   ;;  %vm7993_vm0 = vmmov 0   ;;  %v386_v1 = vld [vmem:[%s278_s17] sm:$0xff]  ;;  %v387_v2 = vld [vmem:[%s278_s17 + $0x8] sm:$0xff]  ;;  %vm622_vm1 = vcmask 130048   ;;  %v7661_v15 = vld [vmem:[%s8344_s15 + $0x18] sm:$0xff]  }
  0xb8   : > { %7913 = vsyncadd (%p9454_p5), [#allocation9], 4294965376  ;;  %6873 = vmatprep.subr.bf16.mxu0 %v7992_v0  ;;  %6875 = vmatprep.mubr.msk.bf16.mxu0 %vm7993_vm0, %v7992_v0  ;;  %v388_v3 = vmul.f32 255.0, %v386_v1  ;;  %v389_v4 = vmul.f32 255.0, %v387_v2  ;;  %v7658_v12 = vld [vmem:[%s8344_s15] sm:$0xff]   ;;  %v7659_v13 = vld [vmem:[%s8344_s15 + $0x8] sm:$0xff]  }
  0xb9   : > { %v7660_v14 = vld [vmem:[%s8344_s15 + $0x10] sm:$0xff]   ;;  %v7662_v16 = vld [vmem:[%s8344_s15 + $0x20] sm:$0xff]   ;;  %v7663_v17 = vld [vmem:[%s8344_s15 + $0x28] sm:$0xff]   ;;  %vm335_vm2 = vcmask 195584   ;;  %vm1275_vm3 = vcmask 1043456   ;;  %v7994_v38 = vmov 0  }
  0xba   : > { %v390_v5 = vfloor.f32 %v388_v3  ;;  %v391_v6 = vfloor.f32 %v389_v4  ;;  %v7664_v18 = vld [vmem:[%s8344_s15 + $0x30] sm:$0xff]   ;;  %v7665_v19 = vld [vmem:[%s8344_s15 + $0x38] sm:$0xff]   ;;  %v7666_v20 = vld [vmem:[%s8344_s15 + $0x40] sm:$0xff]   ;;  %336 = vst.msk [vmem:[#allocation2] sm:$0xff] %vm335_vm2, %v7992_v0  ;;  %1338 = vmatprep.mubr.bf16.mxu1 %v7994_v38  ;;  %s316_s9 = sand.u32 1, %s7924_s20   ;;  %s9455_s0 = sld [smem:[#allocation22_spill]] }
  0xbb   : > { %337 = vst.msk [vmem:[#allocation2 + $0x8] sm:$0xff] %vm335_vm2, %v7992_v0  ;;  %338 = vst.msk [vmem:[#allocation2 + $0x10] sm:$0xff] %vm335_vm2, %v7992_v0  ;;  %v7667_v21 = vld [vmem:[%s8344_s15 + $0x48] sm:$0xff]   ;;  %v7668_v22 = vld [vmem:[%s8344_s15 + $0x50] sm:$0xff]   ;;  %s8832_s11 = smul.u32 2000, %s316_s9  ;;  %s9456_s3 = sld [smem:[#allocation23_spill]] }
  0xbc   : > { %v392_v7 = vmax.f32 %v390_v5, 0.0  ;;  %v393_v8 = vmax.f32 %v391_v6, 0.0  ;;  %339 = vst.msk [vmem:[#allocation2 + $0x18] sm:$0xff] %vm335_vm2, %v7992_v0  ;;  %340 = vst.msk [vmem:[#allocation2 + $0x20] sm:$0xff] %vm335_vm2, %v7992_v0  ;;  %v7669_v23 = vld [vmem:[%s8344_s15 + $0x58] sm:$0xff]   ;;  %v1121_v29 = vld [vmem:[#allocation10 + $0x58] sm:$0xff] }
  0xbd   : > { %341 = vst.msk [vmem:[#allocation2 + $0x28] sm:$0xff] %vm335_vm2, %v7992_v0  ;;  %342 = vst.msk [vmem:[#allocation2 + $0x30] sm:$0xff] %vm335_vm2, %v7992_v0  ;;  %v7683_v24 = vld [vmem:[#allocation10 + $0x4] ss:$40 sps:$4 sm:$0xff]   ;;  %v7685_v25 = vld [vmem:[#allocation10] ss:$40 sps:$4 sm:$0xff]   ;;  %v6207_v33 = vcombine.high %v1121_v29, %v1121_v29  ;;  %v6206_v34 = vcombine.low %v1121_v29, %v1121_v29 }
  0xbe   : > { %v394_v9 = vmin.f32 %v392_v7, 255.0  ;;  %v395_v10 = vmin.f32 %v393_v8, 255.0  ;;  %343 = vst.msk [vmem:[#allocation2 + $0x38] sm:$0xff] %vm335_vm2, %v7992_v0  ;;  %344 = vst.msk [vmem:[#allocation2 + $0x40] sm:$0xff] %vm335_vm2, %v7992_v0  ;;  %v7686_v26 = vld [vmem:[#allocation10 + $0x8] ss:$40 sps:$4 sm:$0xff]   ;;  %1306 = vmatprep.subr.bf16.mxu1 %v7683_v24 }
  0xbf   : > { %345 = vst.msk [vmem:[#allocation2 + $0x48] sm:$0xff] %vm335_vm2, %v7992_v0  ;;  %346 = vst.msk [vmem:[#allocation2 + $0x50] sm:$0xff] %vm335_vm2, %v7992_v0  ;;  %v7688_v27 = vld [vmem:[#allocation10 + $0xc] ss:$40 sps:$4 sm:$0xff]   ;;  %1307 = vmatpush1.bf16.msra.mxu1 %v7685_v25  ;;  %v1283_v36 = vsel %vm1275_vm3, %v6206_v34, 0  ;;  %v7671_v39 = vld [vmem:[%s8344_s15 + $0x68] sm:$0xff]  }
  0xc0   : > { %v396_v11 = vpack.c.bf16 %v395_v10, %v394_v9  ;;  %347 = vst.msk [vmem:[#allocation2 + $0x58] sm:$0xff] %vm335_vm2, %v7992_v0  ;;  %348 = vst.msk [vmem:[#allocation2 + $0x60] sm:$0xff] %vm335_vm2, %v7992_v0  ;;  %v1120_v28 = vld [vmem:[#allocation10 + $0x50] sm:$0xff]  ;;  %v7672_v40 = vld [vmem:[%s8344_s15 + $0x70] sm:$0xff]   ;;  %s8841_s12 = scalar_lea.vmem [#allocation11], %s8832_s11  ;;  %s9457_s7 = sld [smem:[#allocation24_spill]] }
  0xc1   : > { %349 = vst.msk [vmem:[#allocation2 + $0x68] sm:$0xff] %vm335_vm2, %v7992_v0  ;;  %350 = vst.msk [vmem:[#allocation2 + $0x70] sm:$0xff] %vm335_vm2, %v7992_v0  ;;  %v7670_v30 = vld [vmem:[%s8344_s15 + $0x60] sm:$0xff]   ;;  %v6205_v31 = vcombine.high %v1120_v28, %v1120_v28  ;;  %v6204_v32 = vcombine.low %v1120_v28, %v1120_v28  ;;  %v7673_v41 = vld [vmem:[%s8344_s15 + $0x78] sm:$0xff]   ;;  %s7515_s14 = smul.u32 500, %s9455_s0  ;;  %s9458_s27 = sld [smem:[#allocation27_spill]] }
  0xc2   : > { %6874 = vmatpush3.bf16.msra.mxu0 %v396_v11  ;;  %351 = vst.msk [vmem:[#allocation2 + $0x78] sm:$0xff] %vm335_vm2, %v7992_v0  ;;  %352 = vst.msk [vmem:[#allocation2 + $0x80] sm:$0xff] %vm335_vm2, %v7992_v0  ;;  %v7695_v37 = vld [vmem:[#allocation10 + $0x14] ss:$40 sps:$4 sm:$0xff]   ;;  %v7676_v44 = vld [vmem:[%s8344_s15 + $0x90] sm:$0xff]   ;;  %s7481_s13 = smul.u32 1000, %s9456_s3 }
  0xc3   : > { %353 = vst.msk [vmem:[#allocation2 + $0x88] sm:$0xff] %vm335_vm2, %v7992_v0  ;;  %354 = vst.msk [vmem:[#allocation2 + $0x90] sm:$0xff] %vm335_vm2, %v7992_v0  ;;  %1589 = vmatprep.subr.bf16.mxu0 %v7688_v27  ;;  %6214 = vmatprep.subr.msk.bf16.mxu1 %vm1275_vm3, %v6205_v31  ;;  %v1277_v35 = vsel %vm1275_vm3, %v6204_v32, 0  ;;  %v7674_v42 = vld [vmem:[%s8344_s15 + $0x80] sm:$0xff]   ;;  %v7675_v43 = vld [vmem:[%s8344_s15 + $0x88] sm:$0xff]   ;;  %s5990_s30 = sshll.u32 %s8841_s12, 4  ;;  %s9305_s30 = int_to_ptr.vmem [resolvable:$true] %s5990_s30 }
  0xc4   : > { %355 = vst.msk [vmem:[#allocation2 + $0x98] sm:$0xff] %vm335_vm2, %v7992_v0  ;;  %356 = vst.msk [vmem:[#allocation2 + $0xa0] sm:$0xff] %vm335_vm2, %v7992_v0  ;;  %1309 = vmatpush1.bf16.msra.mxu1 %v1277_v35  ;;  %v7677_v45 = vld [vmem:[%s8344_s15 + $0x98] sm:$0xff]   ;;  %v7678_v46 = vld [vmem:[%s8344_s15 + $0xa0] sm:$0xff]   ;;  %s5985_s29 = sadd.s32 %s7515_s14, %s7481_s13  ;;  %s9459_s17 = sld [smem:[#allocation35_spill]] }
  0xc5   : > { %6876 = vmatmul.mubr.msk.bf16.vlgmr.msra.gmra.mrb[0].mxu0 %vm622_vm1, %v7658_v12  ;;  %357 = vst.msk [vmem:[#allocation2 + $0xa8] sm:$0xff] %vm335_vm2, %v7992_v0  ;;  %358 = vst.msk [vmem:[#allocation2 + $0xb0] sm:$0xff] %vm335_vm2, %v7992_v0  ;;  %1872 = vmatprep.subr.bf16.mxu1 %v7695_v37  ;;  %v7679_v47 = vld [vmem:[%s8344_s15 + $0xa8] sm:$0xff]   ;;  %v7680_v48 = vld [vmem:[%s8344_s15 + $0xb0] sm:$0xff]   ;;  %s9311_s22 = scalar_lea.sflag [#allocation7], %s316_s9  ;;  %s7808_s10 = scalar_lea.vmem %s9305_s30, 32000 }
  0xc6   : > { %6879 = vmatprep.mubr.msk.bf16.mxu0 %vm7993_vm0, %v7992_v0  ;;  %359 = vst.msk [vmem:[#allocation2 + $0xb8] sm:$0xff] %vm335_vm2, %v7992_v0  ;;  %360 = vst.msk [vmem:[#allocation2 + $0xc0] sm:$0xff] %vm335_vm2, %v7992_v0  ;;  %1590 = vmatpush1.bf16.msra.mxu0 %v7686_v26  ;;  %v7681_v49 = vld [vmem:[%s8344_s15 + $0xb8] sm:$0xff]   ;;  %v7682_v50 = vld [vmem:[%s8344_s15 + $0xc0] sm:$0xff]   ;;  %s7482_s4 = smul.u32 3000, %s9457_s7  ;;  %p7809_p9 = scmp.ne.s32.totalorder %s9305_s30, %s7808_s10 }
  0xc7   : > { %361 = vst.msk [vmem:[#allocation2 + $0xc8] sm:$0xff] %vm335_vm2, %v7992_v0  ;;  %362 = vst.msk [vmem:[#allocation2 + $0xd0] sm:$0xff] %vm335_vm2, %v7992_v0  ;;  %6240 = vmatprep.subr.msk.bf16.mxu0 %vm1275_vm3, %v6207_v33  ;;  %v397_v51 = vld [vmem:[#allocation2] sm:$0xff]  ;;  %v398_v53 = vld [vmem:[#allocation2 + $0x8] sm:$0xff]  ;;  %p9460_p13 = scmp.ne.s32.totalorder %s9458_s27, 0  ;;  %s7995_s16 = smov [#allocation11]  }
  0xc8   : > { %363 = vst.msk [vmem:[#allocation2 + $0xd8] sm:$0xff] %vm335_vm2, %v7992_v0  ;;  %364 = vst.msk [vmem:[#allocation2 + $0xe0] sm:$0xff] %vm335_vm2, %v7992_v0  ;;  %v399_v59 = vld [vmem:[#allocation2 + $0x10] sm:$0xff]  ;;  %v400_v61 = vld [vmem:[#allocation2 + $0x18] sm:$0xff]  ;;  %s5987_s18 = sadd.s32 %s7482_s4, %s5985_s29  ;;  %s7812_s15 = sshll.u32 %s7995_s16, 4  ;;  %s7813_s15 = int_to_ptr.vmem [resolvable:$false] %s7812_s15 }
  0xc9   : > { %365 = vst.msk [vmem:[#allocation2 + $0xe8] sm:$0xff] %vm335_vm2, %v7992_v0  ;;  %366 = vst.msk [vmem:[#allocation2 + $0xf0] sm:$0xff] %vm335_vm2, %v7992_v0  ;;  %v1122_v1 = vld [vmem:[#allocation10 + $0x60] sm:$0xff]  ;;  %v7693_v4 = vld [vmem:[#allocation10 + $0x10] ss:$40 sps:$4 sm:$0xff]   ;;  %s6594_s25 = sshll.u32 %s5987_s18, 6  ;;  %p7810_p3 = pnand %p7809_p9, %p9460_p13 }
  0xca   : > { %367 = vst.msk [vmem:[#allocation2 + $0xf8] sm:$0xff] %vm335_vm2, %v7992_v0  ;;  %368 = vst.msk [vmem:[#allocation2 + $0x100] sm:$0xff] %vm335_vm2, %v7992_v0  ;;  %1592 = vmatpush1.bf16.msra.mxu0 %v1283_v36  ;;  %v6209_v8 = vcombine.high %v1122_v1, %v1122_v1  ;;  %v6208_v9 = vcombine.low %v1122_v1, %v1122_v1  ;;  %v401_v10 = vld [vmem:[#allocation2 + $0x20] sm:$0xff]  ;;  %v402_v12 = vld [vmem:[#allocation2 + $0x28] sm:$0xff]  ;;  %s9303_s19 = scalar_lea.hbm %s9459_s17, %s6594_s25  ;;  %s7814_s11 = scalar_lea.vmem %s7813_s15, 64000 }
  0xcb   : > { %369 = vst.msk [vmem:[#allocation2 + $0x108] sm:$0xff] %vm335_vm2, %v7992_v0  ;;  %370 = vst.msk [vmem:[#allocation2 + $0x110] sm:$0xff] %vm335_vm2, %v7992_v0  ;;  %v404_v24 = vld [vmem:[#allocation2 + $0x38] sm:$0xff]  ;;  %v405_v33 = vld [vmem:[#allocation2 + $0x40] sm:$0xff]  ;;  %p7811_p4 = pneg %p7810_p3  ;;  %p7815_p12 = scmp.lt.s32.totalorder %s9305_s30, %s7813_s15 }
  0xcc   : > { %371 = vst.msk [vmem:[#allocation2 + $0x118] sm:$0xff] %vm335_vm2, %v7992_v0  ;;  %372 = vst.msk [vmem:[#allocation2 + $0x120] sm:$0xff] %vm335_vm2, %v7992_v0  ;;  %v406_v35 = vld [vmem:[#allocation2 + $0x48] sm:$0xff]  ;;  %p7816_p0 = scmp.lt.s32.totalorder %s7814_s11, %s7808_s10 }
  0xcd   : > { %6880 = vmatmul.mubr.msk.bf16.gmra.mrb[4].mxu0 %vm622_vm1, %v7659_v13  ;;  %373 = vst.msk [vmem:[#allocation2 + $0x128] sm:$0xff] %vm335_vm2, %v7992_v0  ;;  %374 = vst.msk [vmem:[#allocation2 + $0x130] sm:$0xff] %vm335_vm2, %v7992_v0 }
  0xce   : > { %6883 = vmatprep.mubr.msk.bf16.mxu0 %vm7993_vm0, %v7992_v0  ;;  %375 = vst.msk [vmem:[#allocation2 + $0x138] sm:$0xff] %vm335_vm2, %v7992_v0  ;;  %376 = vst.msk [vmem:[#allocation2 + $0x140] sm:$0xff] %vm335_vm2, %v7992_v0  ;;  %p7817_p7 = por %p7816_p0, %p7815_p12 }
  0xcf   : > { %377 = vst.msk [vmem:[#allocation2 + $0x148] sm:$0xff] %vm335_vm2, %v7992_v0  ;;  %378 = vst.msk [vmem:[#allocation2 + $0x150] sm:$0xff] %vm335_vm2, %v7992_v0 }
  0xd0   : > { %379 = vst.msk [vmem:[#allocation2 + $0x158] sm:$0xff] %vm335_vm2, %v7992_v0  ;;  %380 = vst.msk [vmem:[#allocation2 + $0x160] sm:$0xff] %vm335_vm2, %v7992_v0  ;;  %p7818_p2 = pnand %p7817_p7, %p7811_p4 }
  0xd1   : > { %381 = vst.msk [vmem:[#allocation2 + $0x168] sm:$0xff] %vm335_vm2, %v7992_v0  ;;  %382 = vst.msk [vmem:[#allocation2 + $0x170] sm:$0xff] %vm335_vm2, %v7992_v0 }
  0xd2   : > { %383 = vst.msk [vmem:[#allocation2 + $0x178] sm:$0xff] %vm335_vm2, %v7992_v0  ;;  %384 = vst.msk [vmem:[#allocation2 + $0x180] sm:$0xff] %vm335_vm2, %v7992_v0 }
  0xd3   : > { %385 = vst.msk [vmem:[#allocation2 + $0x188] sm:$0xff] %vm335_vm2, %v7992_v0 }
  0xd5   : > { %6884 = vmatmul.mubr.msk.bf16.gmra.mrb[8].mxu0 %vm622_vm1, %v7660_v14 }
  0xd6   : > { %6887 = vmatprep.mubr.msk.bf16.mxu0 %vm7993_vm0, %v7992_v0 }
  0xdd   : > { %6888 = vmatmul.mubr.msk.bf16.gmra.mrb[12].mxu0 %vm622_vm1, %v7661_v15  ;;  %v1289_v15 = vsel %vm1275_vm3, %v6208_v9, 0 }
  0xde   : > { %6891 = vmatprep.mubr.msk.bf16.mxu0 %vm7993_vm0, %v7992_v0 }
  0xe5   : > { %6892 = vmatmul.mubr.msk.bf16.gmra.mrb[16].mxu0 %vm622_vm1, %v7662_v16 }
  0xe6   : > { %6895 = vmatprep.mubr.msk.bf16.mxu0 %vm7993_vm0, %v7992_v0 }
  0xed   : > { %6896 = vmatmul.mubr.msk.bf16.gmra.mrb[20].mxu0 %vm622_vm1, %v7663_v17 }
  0xee   : > { %6899 = vmatprep.mubr.msk.bf16.mxu0 %vm7993_vm0, %v7992_v0 }
  0xf5   : > { %6900 = vmatmul.mubr.msk.bf16.gmra.mrb[24].mxu0 %vm622_vm1, %v7664_v18 }
  0xf6   : > { %6903 = vmatprep.mubr.msk.bf16.mxu0 %vm7993_vm0, %v7992_v0 }
  0xfd   : > { %6904 = vmatmul.mubr.msk.bf16.gmra.mrb[28].mxu0 %vm622_vm1, %v7665_v19 }
  0xfe   : > { %6907 = vmatprep.mubr.msk.bf16.mxu0 %vm7993_vm0, %v7992_v0 }
 0x105   : > { %6908 = vmatmul.mubr.msk.bf16.gmra.mrb[32].mxu0 %vm622_vm1, %v7666_v20 }
 0x106   : > { %6911 = vmatprep.mubr.msk.bf16.mxu0 %vm7993_vm0, %v7992_v0 }
 0x10d   : > { %6912 = vmatmul.mubr.msk.bf16.gmra.mrb[36].mxu0 %vm622_vm1, %v7667_v21 }
 0x10e   : > { %6915 = vmatprep.mubr.msk.bf16.mxu0 %vm7993_vm0, %v7992_v0 }
 0x115   : > { %6916 = vmatmul.mubr.msk.bf16.gmra.mrb[40].mxu0 %vm622_vm1, %v7668_v22  ;;  %v403_v22 = vld [vmem:[#allocation2 + $0x30] sm:$0xff] }
 0x116   : > { %6919 = vmatprep.mubr.msk.bf16.mxu0 %vm7993_vm0, %v7992_v0 }
 0x11d   : > { %6920 = vmatmul.mubr.msk.bf16.gmra.mrb[44].mxu0 %vm622_vm1, %v7669_v23 }
 0x11e   : > { %6923 = vmatprep.mubr.msk.bf16.mxu0 %vm7993_vm0, %v7992_v0 }
 0x125   : > { %6924 = vmatmul.mubr.msk.bf16.gmra.mrb[48].mxu0 %vm622_vm1, %v7670_v30 }
 0x126   : > { %6927 = vmatprep.mubr.msk.bf16.mxu0 %vm7993_vm0, %v7992_v0 }
 0x12d   : > { %6928 = vmatmul.mubr.msk.bf16.gmra.mrb[52].mxu0 %vm622_vm1, %v7671_v39 }
 0x12e   : > { %6931 = vmatprep.mubr.msk.bf16.mxu0 %vm7993_vm0, %v7992_v0 }
 0x135   : > { %6932 = vmatmul.mubr.msk.bf16.gmra.mrb[56].mxu0 %vm622_vm1, %v7672_v40 }
 0x136   : > { %6935 = vmatprep.mubr.msk.bf16.mxu0 %vm7993_vm0, %v7992_v0 }
 0x13d   : > { %6936 = vmatmul.mubr.msk.bf16.gmra.mrb[60].mxu0 %vm622_vm1, %v7673_v41 }
 0x13e   : > { %6939 = vmatprep.mubr.msk.bf16.mxu0 %vm7993_vm0, %v7992_v0 }
 0x145   : > { %6940 = vmatmul.mubr.msk.bf16.gmra.mrb[64].mxu0 %vm622_vm1, %v7674_v42 }
 0x146   : > { %6943 = vmatprep.mubr.msk.bf16.mxu0 %vm7993_vm0, %v7992_v0 }
 0x14d   : > { %6944 = vmatmul.mubr.msk.bf16.gmra.mrb[68].mxu0 %vm622_vm1, %v7675_v43 }
 0x14e   : > { %6947 = vmatprep.mubr.msk.bf16.mxu0 %vm7993_vm0, %v7992_v0 }
 0x155   : > { %6948 = vmatmul.mubr.msk.bf16.gmra.mrb[72].mxu0 %vm622_vm1, %v7676_v44 }
 0x156   : > { %6951 = vmatprep.mubr.msk.bf16.mxu0 %vm7993_vm0, %v7992_v0 }
 0x15d   : > { %6952 = vmatmul.mubr.msk.bf16.gmra.mrb[76].mxu0 %vm622_vm1, %v7677_v45  ;;  %v407_v45 = vld [vmem:[#allocation2 + $0x50] sm:$0xff] }
 0x15e   : > { %6955 = vmatprep.mubr.msk.bf16.mxu0 %vm7993_vm0, %v7992_v0 }
 0x165   : > { %6956 = vmatmul.mubr.msk.bf16.gmra.mrb[80].mxu0 %vm622_vm1, %v7678_v46 }
 0x166   : > { %6959 = vmatprep.mubr.msk.bf16.mxu0 %vm7993_vm0, %v7992_v0 }
 0x16d   : > { %6960 = vmatmul.mubr.msk.bf16.gmra.mrb[84].mxu0 %vm622_vm1, %v7679_v47  ;;  %v408_v47 = vld [vmem:[#allocation2 + $0x58] sm:$0xff] }
 0x16e   : > { %6963 = vmatprep.mubr.msk.bf16.mxu0 %vm7993_vm0, %v7992_v0 }
 0x175   : > { %6964 = vmatmul.mubr.msk.bf16.gmra.mrb[88].mxu0 %vm622_vm1, %v7680_v48 }
 0x176   : > { %6967 = vmatprep.mubr.msk.bf16.mxu0 %vm7993_vm0, %v7992_v0 }
 0x17d   : > { %6968 = vmatmul.mubr.msk.bf16.gmra.mrb[92].mxu0 %vm622_vm1, %v7681_v49 }
 0x17e   : > { %6971 = vmatprep.mubr.msk.bf16.mxu0 %vm7993_vm0, %v7992_v0 }
 0x185   : > { %6972 = vmatmul.mubr.msk.bf16.gmra.mrb[96].mxu0 %vm622_vm1, %v7682_v50 }
 0x186   : > { %1621 = vmatprep.mubr.bf16.mxu0 %v7994_v38 }
 0x198   : > { %v732_v52 = vpop.f32.mrb[0].mxu0 }
 0x199   : > { %v931_v54 = vadd.f32 %v732_v52, %v397_v51  ;;  %v6877_v55 = vpop.f32.mrb[1].mxu0 }
 0x19a   : > { %v735_v56 = vpop.f32.mrb[2].mxu0 }
 0x19b   : > { %982 = vst.msk [vmem:[#allocation2] sm:$0xff] %vm335_vm2, %v931_v54  ;;  %v932_v57 = vadd.f32 %v735_v56, %v398_v53  ;;  %v6878_v58 = vpop.f32.mrb[3].mxu0  ;;  %v409_v56 = vld [vmem:[#allocation2 + $0x60] sm:$0xff] }
 0x19c   : > { %v410_v58 = vld [vmem:[#allocation2 + $0x68] sm:$0xff] }
 0x19d   : > { %983 = vst.msk [vmem:[#allocation2 + $0x8] sm:$0xff] %vm335_vm2, %v932_v57 }
 0x1a0   : > { %v740_v60 = vpop.f32.mrb[4].mxu0 }
 0x1a1   : > { %v933_v62 = vadd.f32 %v740_v60, %v399_v59  ;;  %v6881_v63 = vpop.f32.mrb[5].mxu0 }
 0x1a2   : > { %v743_v0 = vpop.f32.mrb[6].mxu0  ;;  %v1035_v5 = vld [vmem:[#allocation2] sm:$0xff] }
 0x1a3   : > { %984 = vst.msk [vmem:[#allocation2 + $0x10] sm:$0xff] %vm335_vm2, %v933_v62  ;;  %v934_v2 = vadd.f32 %v743_v0, %v400_v61  ;;  %v6882_v3 = vpop.f32.mrb[7].mxu0 }
 0x1a4   : > { %v1036_v6 = vld [vmem:[#allocation2 + $0x8] sm:$0xff]  ;;  %v411_v3 = vld [vmem:[#allocation2 + $0x70] sm:$0xff] }
 0x1a5   : > { %985 = vst.msk [vmem:[#allocation2 + $0x18] sm:$0xff] %vm335_vm2, %v934_v2  ;;  %v8565_v7 = vpack.c.bf16 %v1036_v6, %v1035_v5  ;;  %v412_v5 = vld [vmem:[#allocation2 + $0x78] sm:$0xff] }
 0x1a7   : > { %6215 = vmatmul.mubr.msk.bf16.vlgmr.msra.gmra.mrb[0].mxu1 %vm335_vm2, %v8565_v7  ;;  %6241 = vmatmul.mubr.msk.bf16.vlgmr.msra.gmra.mrb[100].mxu0 %vm335_vm2, %v8565_v7 }
 0x1a8   : > { %1873 = vmatpush1.bf16.msra.mxu1 %v7693_v4  ;;  %v748_v11 = vpop.f32.mrb[8].mxu0  ;;  %1348 = vmatprep.mubr.bf16.mxu1 %v7994_v38 }
 0x1a9   : > { %v935_v13 = vadd.f32 %v748_v11, %v401_v10  ;;  %v6885_v14 = vpop.f32.mrb[9].mxu0  ;;  %1631 = vmatprep.mubr.bf16.mxu0 %v7994_v38  ;;  %6266 = vmatprep.subr.msk.bf16.mxu1 %vm1275_vm3, %v6209_v8 }
 0x1aa   : > { %v751_v16 = vpop.f32.mrb[10].mxu0  ;;  %v1037_v19 = vld [vmem:[#allocation2 + $0x10] sm:$0xff] }
 0x1ab   : > { %986 = vst.msk [vmem:[#allocation2 + $0x20] sm:$0xff] %vm335_vm2, %v935_v13  ;;  %v936_v17 = vadd.f32 %v751_v16, %v402_v12  ;;  %v6886_v18 = vpop.f32.mrb[11].mxu0 }
 0x1ac   : > { %v1038_v20 = vld [vmem:[#allocation2 + $0x18] sm:$0xff]  ;;  %1875 = vmatpush1.bf16.msra.mxu1 %v1289_v15  ;;  %v413_v15 = vld [vmem:[#allocation2 + $0x80] sm:$0xff] }
 0x1ad   : > { %987 = vst.msk [vmem:[#allocation2 + $0x28] sm:$0xff] %vm335_vm2, %v936_v17  ;;  %v8577_v21 = vpack.c.bf16 %v1038_v20, %v1037_v19  ;;  %v414_v17 = vld [vmem:[#allocation2 + $0x88] sm:$0xff] }
 0x1af   : > { %6216 = vmatmul.mubr.msk.bf16.gmra.mrb[4].mxu1 %vm335_vm2, %v8577_v21  ;;  %6242 = vmatmul.mubr.msk.bf16.gmra.mrb[104].mxu0 %vm335_vm2, %v8577_v21 }
 0x1b0   : > { %v756_v23 = vpop.f32.mrb[12].mxu0  ;;  %1358 = vmatprep.mubr.bf16.mxu1 %v7994_v38  ;;  %1641 = vmatprep.mubr.bf16.mxu0 %v7994_v38 }
 0x1b1   : > { %v937_v25 = vadd.f32 %v756_v23, %v403_v22  ;;  %v6889_v26 = vpop.f32.mrb[13].mxu0 }
 0x1b2   : > { %v759_v27 = vpop.f32.mrb[14].mxu0  ;;  %v1039_v30 = vld [vmem:[#allocation2 + $0x20] sm:$0xff] }
 0x1b3   : > { %988 = vst.msk [vmem:[#allocation2 + $0x30] sm:$0xff] %vm335_vm2, %v937_v25  ;;  %v938_v28 = vadd.f32 %v759_v27, %v404_v24  ;;  %v6890_v29 = vpop.f32.mrb[15].mxu0  ;;  %v415_v27 = vld [vmem:[#allocation2 + $0x90] sm:$0xff] }
 0x1b4   : > { %v1040_v31 = vld [vmem:[#allocation2 + $0x28] sm:$0xff]  ;;  %v416_v29 = vld [vmem:[#allocation2 + $0x98] sm:$0xff] }
 0x1b5   : > { %989 = vst.msk [vmem:[#allocation2 + $0x38] sm:$0xff] %vm335_vm2, %v938_v28  ;;  %v8587_v32 = vpack.c.bf16 %v1040_v31, %v1039_v30 }
 0x1b7   : > { %6217 = vmatmul.mubr.msk.bf16.gmra.mrb[8].mxu1 %vm335_vm2, %v8587_v32  ;;  %6243 = vmatmul.mubr.msk.bf16.gmra.mrb[108].mxu0 %vm335_vm2, %v8587_v32 }
 0x1b8   : > { %v764_v34 = vpop.f32.mrb[16].mxu0  ;;  %1368 = vmatprep.mubr.bf16.mxu1 %v7994_v38  ;;  %1651 = vmatprep.mubr.bf16.mxu0 %v7994_v38 }
 0x1b9   : > { %v939_v36 = vadd.f32 %v764_v34, %v405_v33  ;;  %v6893_v37 = vpop.f32.mrb[17].mxu0 }
 0x1ba   : > { %v767_v39 = vpop.f32.mrb[18].mxu0  ;;  %v1041_v42 = vld [vmem:[#allocation2 + $0x30] sm:$0xff] }
 0x1bb   : > { %990 = vst.msk [vmem:[#allocation2 + $0x40] sm:$0xff] %vm335_vm2, %v939_v36  ;;  %v940_v40 = vadd.f32 %v767_v39, %v406_v35  ;;  %v6894_v41 = vpop.f32.mrb[19].mxu0 }
 0x1bc   : > { %v1042_v43 = vld [vmem:[#allocation2 + $0x38] sm:$0xff]  ;;  %v417_v41 = vld [vmem:[#allocation2 + $0xa0] sm:$0xff] }
 0x1bd   : > { %991 = vst.msk [vmem:[#allocation2 + $0x48] sm:$0xff] %vm335_vm2, %v940_v40  ;;  %v8597_v44 = vpack.c.bf16 %v1042_v43, %v1041_v42  ;;  %v7700_v40 = vld [vmem:[#allocation10 + $0x1c] ss:$40 sps:$4 sm:$0xff]   ;;  %v7698_v42 = vld [vmem:[#allocation10 + $0x18] ss:$40 sps:$4 sm:$0xff]   ;;  %v1123_v43 = vld [vmem:[#allocation10 + $0x68] sm:$0xff] }
 0x1be   : > { %2155 = vmatprep.subr.bf16.mxu0 %v7700_v40 }
 0x1bf   : > { %6218 = vmatmul.mubr.msk.bf16.gmra.mrb[12].mxu1 %vm335_vm2, %v8597_v44  ;;  %6244 = vmatmul.mubr.msk.bf16.gmra.mrb[112].mxu0 %vm335_vm2, %v8597_v44 }
 0x1c0   : > { %v772_v46 = vpop.f32.mrb[20].mxu0  ;;  %1378 = vmatprep.mubr.bf16.mxu1 %v7994_v38  ;;  %1661 = vmatprep.mubr.bf16.mxu0 %v7994_v38 }
 0x1c1   : > { %v941_v48 = vadd.f32 %v772_v46, %v407_v45  ;;  %v6897_v49 = vpop.f32.mrb[21].mxu0  ;;  %v418_v46 = vld [vmem:[#allocation2 + $0xa8] sm:$0xff]  ;;  %2156 = vmatpush1.bf16.msra.mxu0 %v7698_v42 }
 0x1c2   : > { %v775_v50 = vpop.f32.mrb[22].mxu0  ;;  %v1043_v53 = vld [vmem:[#allocation2 + $0x40] sm:$0xff] }
 0x1c3   : > { %992 = vst.msk [vmem:[#allocation2 + $0x50] sm:$0xff] %vm335_vm2, %v941_v48  ;;  %v942_v51 = vadd.f32 %v775_v50, %v408_v47  ;;  %v6898_v52 = vpop.f32.mrb[23].mxu0  ;;  %v6211_v47 = vcombine.high %v1123_v43, %v1123_v43  ;;  %v6210_v48 = vcombine.low %v1123_v43, %v1123_v43  ;;  %v7705_v49 = vld [vmem:[#allocation10 + $0x24] ss:$40 sps:$4 sm:$0xff]  }
 0x1c4   : > { %v1044_v54 = vld [vmem:[#allocation2 + $0x48] sm:$0xff]  ;;  %2438 = vmatprep.subr.bf16.mxu1 %v7705_v49  ;;  %v427_v49 = vld [vmem:[#allocation2 + $0xf0] sm:$0xff] }
 0x1c5   : > { %993 = vst.msk [vmem:[#allocation2 + $0x58] sm:$0xff] %vm335_vm2, %v942_v51  ;;  %v8607_v55 = vpack.c.bf16 %v1044_v54, %v1043_v53  ;;  %6292 = vmatprep.subr.msk.bf16.mxu0 %vm1275_vm3, %v6211_v47 }
 0x1c7   : > { %6219 = vmatmul.mubr.msk.bf16.gmra.mrb[16].mxu1 %vm335_vm2, %v8607_v55  ;;  %6245 = vmatmul.mubr.msk.bf16.gmra.mrb[116].mxu0 %vm335_vm2, %v8607_v55 }
 0x1c8   : > { %v780_v57 = vpop.f32.mrb[24].mxu0  ;;  %1388 = vmatprep.mubr.bf16.mxu1 %v7994_v38  ;;  %1671 = vmatprep.mubr.bf16.mxu0 %v7994_v38 }
 0x1c9   : > { %v943_v59 = vadd.f32 %v780_v57, %v409_v56  ;;  %v6901_v60 = vpop.f32.mrb[25].mxu0  ;;  %v1295_v56 = vsel %vm1275_vm3, %v6210_v48, 0 }
 0x1ca   : > { %v783_v61 = vpop.f32.mrb[26].mxu0  ;;  %v1045_v0 = vld [vmem:[#allocation2 + $0x50] sm:$0xff]  ;;  %2158 = vmatpush1.bf16.msra.mxu0 %v1295_v56 }
 0x1cb   : > { %994 = vst.msk [vmem:[#allocation2 + $0x60] sm:$0xff] %vm335_vm2, %v943_v59  ;;  %v944_v62 = vadd.f32 %v783_v61, %v410_v58  ;;  %v6902_v63 = vpop.f32.mrb[27].mxu0  ;;  %v419_v60 = vld [vmem:[#allocation2 + $0xb0] sm:$0xff] }
 0x1cc   : > { %v1046_v1 = vld [vmem:[#allocation2 + $0x58] sm:$0xff] }
 0x1cd   : > { %995 = vst.msk [vmem:[#allocation2 + $0x68] sm:$0xff] %vm335_vm2, %v944_v62  ;;  %v8617_v2 = vpack.c.bf16 %v1046_v1, %v1045_v0  ;;  %v420_v62 = vld [vmem:[#allocation2 + $0xb8] sm:$0xff] }
 0x1cf   : > { %6220 = vmatmul.mubr.msk.bf16.gmra.mrb[20].mxu1 %vm335_vm2, %v8617_v2  ;;  %6246 = vmatmul.mubr.msk.bf16.gmra.mrb[120].mxu0 %vm335_vm2, %v8617_v2 }
 0x1d0   : > { %v788_v4 = vpop.f32.mrb[28].mxu0  ;;  %1398 = vmatprep.mubr.bf16.mxu1 %v7994_v38  ;;  %1681 = vmatprep.mubr.bf16.mxu0 %v7994_v38 }
 0x1d1   : > { %v945_v6 = vadd.f32 %v788_v4, %v411_v3  ;;  %v6905_v8 = vpop.f32.mrb[29].mxu0 }
 0x1d2   : > { %v791_v9 = vpop.f32.mrb[30].mxu0  ;;  %v1047_v12 = vld [vmem:[#allocation2 + $0x60] sm:$0xff] }
 0x1d3   : > { %996 = vst.msk [vmem:[#allocation2 + $0x70] sm:$0xff] %vm335_vm2, %v945_v6  ;;  %v946_v10 = vadd.f32 %v791_v9, %v412_v5  ;;  %v6906_v11 = vpop.f32.mrb[31].mxu0  ;;  %v421_v9 = vld [vmem:[#allocation2 + $0xc0] sm:$0xff] }
 0x1d4   : > { %v1048_v13 = vld [vmem:[#allocation2 + $0x68] sm:$0xff] }
 0x1d5   : > { %997 = vst.msk [vmem:[#allocation2 + $0x78] sm:$0xff] %vm335_vm2, %v946_v10  ;;  %v8627_v14 = vpack.c.bf16 %v1048_v13, %v1047_v12  ;;  %v422_v11 = vld [vmem:[#allocation2 + $0xc8] sm:$0xff] }
 0x1d7   : > { %6221 = vmatmul.mubr.msk.bf16.gmra.mrb[24].mxu1 %vm335_vm2, %v8627_v14  ;;  %6247 = vmatmul.mubr.msk.bf16.gmra.mrb[124].mxu0 %vm335_vm2, %v8627_v14 }
 0x1d8   : > { %v796_v16 = vpop.f32.mrb[32].mxu0  ;;  %1408 = vmatprep.mubr.bf16.mxu1 %v7994_v38  ;;  %1691 = vmatprep.mubr.bf16.mxu0 %v7994_v38 }
 0x1d9   : > { %v947_v18 = vadd.f32 %v796_v16, %v413_v15  ;;  %v6909_v19 = vpop.f32.mrb[33].mxu0 }
 0x1da   : > { %v799_v20 = vpop.f32.mrb[34].mxu0  ;;  %v1049_v24 = vld [vmem:[#allocation2 + $0x70] sm:$0xff] }
 0x1db   : > { %998 = vst.msk [vmem:[#allocation2 + $0x80] sm:$0xff] %vm335_vm2, %v947_v18  ;;  %v948_v22 = vadd.f32 %v799_v20, %v414_v17  ;;  %v6910_v23 = vpop.f32.mrb[35].mxu0 }
 0x1dc   : > { %v1050_v25 = vld [vmem:[#allocation2 + $0x78] sm:$0xff] }
 0x1dd   : > { %999 = vst.msk [vmem:[#allocation2 + $0x88] sm:$0xff] %vm335_vm2, %v948_v22  ;;  %v8637_v26 = vpack.c.bf16 %v1050_v25, %v1049_v24  ;;  %v423_v22 = vld [vmem:[#allocation2 + $0xd0] sm:$0xff]  ;;  %v424_v24 = vld [vmem:[#allocation2 + $0xd8] sm:$0xff] }
 0x1df   : > { %6222 = vmatmul.mubr.msk.bf16.gmra.mrb[28].mxu1 %vm335_vm2, %v8637_v26  ;;  %6248 = vmatmul.mubr.msk.bf16.gmra.mrb[128].mxu0 %vm335_vm2, %v8637_v26 }
 0x1e0   : > { %v804_v28 = vpop.f32.mrb[36].mxu0  ;;  %1418 = vmatprep.mubr.bf16.mxu1 %v7994_v38  ;;  %1701 = vmatprep.mubr.bf16.mxu0 %v7994_v38 }
 0x1e1   : > { %v949_v30 = vadd.f32 %v804_v28, %v415_v27  ;;  %v6913_v31 = vpop.f32.mrb[37].mxu0 }
 0x1e2   : > { %v807_v33 = vpop.f32.mrb[38].mxu0  ;;  %v1051_v36 = vld [vmem:[#allocation2 + $0x80] sm:$0xff] }
 0x1e3   : > { %1000 = vst.msk [vmem:[#allocation2 + $0x90] sm:$0xff] %vm335_vm2, %v949_v30  ;;  %v950_v34 = vadd.f32 %v807_v33, %v416_v29  ;;  %v6914_v35 = vpop.f32.mrb[39].mxu0 }
 0x1e4   : > { %v1052_v37 = vld [vmem:[#allocation2 + $0x88] sm:$0xff]  ;;  %v425_v35 = vld [vmem:[#allocation2 + $0xe0] sm:$0xff] }
 0x1e5   : > { %1001 = vst.msk [vmem:[#allocation2 + $0x98] sm:$0xff] %vm335_vm2, %v950_v34  ;;  %v8647_v39 = vpack.c.bf16 %v1052_v37, %v1051_v36  ;;  %v426_v37 = vld [vmem:[#allocation2 + $0xe8] sm:$0xff] }
 0x1e7   : > { %6223 = vmatmul.mubr.msk.bf16.gmra.mrb[32].mxu1 %vm335_vm2, %v8647_v39  ;;  %6249 = vmatmul.mubr.msk.bf16.gmra.mrb[132].mxu0 %vm335_vm2, %v8647_v39 }
 0x1e8   : > { %v812_v45 = vpop.f32.mrb[40].mxu0  ;;  %1428 = vmatprep.mubr.bf16.mxu1 %v7994_v38  ;;  %1711 = vmatprep.mubr.bf16.mxu0 %v7994_v38 }
 0x1e9   : > { %v951_v50 = vadd.f32 %v812_v45, %v417_v41  ;;  %v6917_v51 = vpop.f32.mrb[41].mxu0 }
 0x1ea   : > { %v815_v52 = vpop.f32.mrb[42].mxu0  ;;  %v1053_v57 = vld [vmem:[#allocation2 + $0x90] sm:$0xff]  ;;  %v428_v51 = vld [vmem:[#allocation2 + $0xf8] sm:$0xff] }
 0x1eb   : > { %1002 = vst.msk [vmem:[#allocation2 + $0xa0] sm:$0xff] %vm335_vm2, %v951_v50  ;;  %v952_v53 = vadd.f32 %v815_v52, %v418_v46  ;;  %v6918_v54 = vpop.f32.mrb[43].mxu0 }
 0x1ec   : > { %v1054_v58 = vld [vmem:[#allocation2 + $0x98] sm:$0xff] }
 0x1ed   : > { %1003 = vst.msk [vmem:[#allocation2 + $0xa8] sm:$0xff] %vm335_vm2, %v952_v53  ;;  %v8659_v59 = vpack.c.bf16 %v1054_v58, %v1053_v57 }
 0x1ef   : > { %6224 = vmatmul.mubr.msk.bf16.gmra.mrb[36].mxu1 %vm335_vm2, %v8659_v59  ;;  %6250 = vmatmul.mubr.msk.bf16.gmra.mrb[136].mxu0 %vm335_vm2, %v8659_v59 }
 0x1f0   : > { %v820_v61 = vpop.f32.mrb[44].mxu0  ;;  %1438 = vmatprep.mubr.bf16.mxu1 %v7994_v38  ;;  %1721 = vmatprep.mubr.bf16.mxu0 %v7994_v38 }
 0x1f1   : > { %v953_v63 = vadd.f32 %v820_v61, %v419_v60  ;;  %v6921_v0 = vpop.f32.mrb[45].mxu0 }
 0x1f2   : > { %v823_v1 = vpop.f32.mrb[46].mxu0  ;;  %v1055_v5 = vld [vmem:[#allocation2 + $0xa0] sm:$0xff]  ;;  %v430_v0 = vld [vmem:[#allocation2 + $0x108] sm:$0xff] }
 0x1f3   : > { %1004 = vst.msk [vmem:[#allocation2 + $0xb0] sm:$0xff] %vm335_vm2, %v953_v63  ;;  %v954_v3 = vadd.f32 %v823_v1, %v420_v62  ;;  %v6922_v4 = vpop.f32.mrb[47].mxu0  ;;  %v429_v62 = vld [vmem:[#allocation2 + $0x100] sm:$0xff] }
 0x1f4   : > { %v1056_v6 = vld [vmem:[#allocation2 + $0xa8] sm:$0xff] }
 0x1f5   : > { %1005 = vst.msk [vmem:[#allocation2 + $0xb8] sm:$0xff] %vm335_vm2, %v954_v3  ;;  %v8669_v8 = vpack.c.bf16 %v1056_v6, %v1055_v5 }
 0x1f7   : > { %6225 = vmatmul.mubr.msk.bf16.gmra.mrb[40].mxu1 %vm335_vm2, %v8669_v8  ;;  %6251 = vmatmul.mubr.msk.bf16.gmra.mrb[140].mxu0 %vm335_vm2, %v8669_v8 }
 0x1f8   : > { %v828_v10 = vpop.f32.mrb[48].mxu0  ;;  %1448 = vmatprep.mubr.bf16.mxu1 %v7994_v38  ;;  %1731 = vmatprep.mubr.bf16.mxu0 %v7994_v38 }
 0x1f9   : > { %v955_v12 = vadd.f32 %v828_v10, %v421_v9  ;;  %v6925_v13 = vpop.f32.mrb[49].mxu0 }
 0x1fa   : > { %v831_v15 = vpop.f32.mrb[50].mxu0  ;;  %v1057_v18 = vld [vmem:[#allocation2 + $0xb0] sm:$0xff] }
 0x1fb   : > { %1006 = vst.msk [vmem:[#allocation2 + $0xc0] sm:$0xff] %vm335_vm2, %v955_v12  ;;  %v956_v16 = vadd.f32 %v831_v15, %v422_v11  ;;  %v6926_v17 = vpop.f32.mrb[51].mxu0  ;;  %v431_v12 = vld [vmem:[#allocation2 + $0x110] sm:$0xff]  ;;  %v432_v15 = vld [vmem:[#allocation2 + $0x118] sm:$0xff] }
 0x1fc   : > { %v1058_v19 = vld [vmem:[#allocation2 + $0xb8] sm:$0xff] }
 0x1fd   : > { %1007 = vst.msk [vmem:[#allocation2 + $0xc8] sm:$0xff] %vm335_vm2, %v956_v16  ;;  %v8679_v20 = vpack.c.bf16 %v1058_v19, %v1057_v18 }
 0x1ff   : > { %6226 = vmatmul.mubr.msk.bf16.gmra.mrb[44].mxu1 %vm335_vm2, %v8679_v20  ;;  %6252 = vmatmul.mubr.msk.bf16.gmra.mrb[144].mxu0 %vm335_vm2, %v8679_v20 }
 0x200   : > { %v836_v23 = vpop.f32.mrb[52].mxu0  ;;  %1458 = vmatprep.mubr.bf16.mxu1 %v7994_v38  ;;  %1741 = vmatprep.mubr.bf16.mxu0 %v7994_v38 }
 0x201   : > { %v957_v25 = vadd.f32 %v836_v23, %v423_v22  ;;  %v6929_v27 = vpop.f32.mrb[53].mxu0 }
 0x202   : > { %v839_v28 = vpop.f32.mrb[54].mxu0  ;;  %v1059_v31 = vld [vmem:[#allocation2 + $0xc0] sm:$0xff] }
 0x203   : > { %1008 = vst.msk [vmem:[#allocation2 + $0xd0] sm:$0xff] %vm335_vm2, %v957_v25  ;;  %v958_v29 = vadd.f32 %v839_v28, %v424_v24  ;;  %v6930_v30 = vpop.f32.mrb[55].mxu0  ;;  %v433_v27 = vld [vmem:[#allocation2 + $0x120] sm:$0xff] }
 0x204   : > { %v1060_v33 = vld [vmem:[#allocation2 + $0xc8] sm:$0xff] }
 0x205   : > { %1009 = vst.msk [vmem:[#allocation2 + $0xd8] sm:$0xff] %vm335_vm2, %v958_v29  ;;  %v8689_v34 = vpack.c.bf16 %v1060_v33, %v1059_v31  ;;  %v434_v29 = vld [vmem:[#allocation2 + $0x128] sm:$0xff] }
 0x207   : > { %6227 = vmatmul.mubr.msk.bf16.gmra.mrb[48].mxu1 %vm335_vm2, %v8689_v34  ;;  %6253 = vmatmul.mubr.msk.bf16.gmra.mrb[148].mxu0 %vm335_vm2, %v8689_v34 }
 0x208   : > { %v844_v36 = vpop.f32.mrb[56].mxu0  ;;  %1468 = vmatprep.mubr.bf16.mxu1 %v7994_v38  ;;  %1751 = vmatprep.mubr.bf16.mxu0 %v7994_v38 }
 0x209   : > { %v959_v40 = vadd.f32 %v844_v36, %v425_v35  ;;  %v6933_v41 = vpop.f32.mrb[57].mxu0 }
 0x20a   : > { %v847_v42 = vpop.f32.mrb[58].mxu0  ;;  %v1061_v46 = vld [vmem:[#allocation2 + $0xd0] sm:$0xff] }
 0x20b   : > { %1010 = vst.msk [vmem:[#allocation2 + $0xe0] sm:$0xff] %vm335_vm2, %v959_v40  ;;  %v960_v43 = vadd.f32 %v847_v42, %v426_v37  ;;  %v6934_v45 = vpop.f32.mrb[59].mxu0  ;;  %v435_v42 = vld [vmem:[#allocation2 + $0x130] sm:$0xff] }
 0x20c   : > { %v1062_v47 = vld [vmem:[#allocation2 + $0xd8] sm:$0xff] }
 0x20d   : > { %1011 = vst.msk [vmem:[#allocation2 + $0xe8] sm:$0xff] %vm335_vm2, %v960_v43  ;;  %v8699_v48 = vpack.c.bf16 %v1062_v47, %v1061_v46  ;;  %v436_v45 = vld [vmem:[#allocation2 + $0x138] sm:$0xff] }
 0x20f   : > { %6228 = vmatmul.mubr.msk.bf16.gmra.mrb[52].mxu1 %vm335_vm2, %v8699_v48  ;;  %6254 = vmatmul.mubr.msk.bf16.gmra.mrb[152].mxu0 %vm335_vm2, %v8699_v48 }
 0x210   : > { %v852_v50 = vpop.f32.mrb[60].mxu0  ;;  %1478 = vmatprep.mubr.bf16.mxu1 %v7994_v38  ;;  %1761 = vmatprep.mubr.bf16.mxu0 %v7994_v38 }
 0x211   : > { %v961_v52 = vadd.f32 %v852_v50, %v427_v49  ;;  %v6937_v53 = vpop.f32.mrb[61].mxu0 }
 0x212   : > { %v855_v54 = vpop.f32.mrb[62].mxu0  ;;  %v1063_v58 = vld [vmem:[#allocation2 + $0xe0] sm:$0xff] }
 0x213   : > { %1012 = vst.msk [vmem:[#allocation2 + $0xf0] sm:$0xff] %vm335_vm2, %v961_v52  ;;  %v962_v56 = vadd.f32 %v855_v54, %v428_v51  ;;  %v6938_v57 = vpop.f32.mrb[63].mxu0 }
 0x214   : > { %v1064_v60 = vld [vmem:[#allocation2 + $0xe8] sm:$0xff] }
 0x215   : > { %1013 = vst.msk [vmem:[#allocation2 + $0xf8] sm:$0xff] %vm335_vm2, %v962_v56  ;;  %v8709_v61 = vpack.c.bf16 %v1064_v60, %v1063_v58  ;;  %v437_v56 = vld [vmem:[#allocation2 + $0x140] sm:$0xff]  ;;  %v438_v58 = vld [vmem:[#allocation2 + $0x148] sm:$0xff] }
 0x217   : > { %6229 = vmatmul.mubr.msk.bf16.gmra.mrb[56].mxu1 %vm335_vm2, %v8709_v61  ;;  %6255 = vmatmul.mubr.msk.bf16.gmra.mrb[156].mxu0 %vm335_vm2, %v8709_v61 }
 0x218   : > { %v860_v63 = vpop.f32.mrb[64].mxu0  ;;  %1488 = vmatprep.mubr.bf16.mxu1 %v7994_v38  ;;  %1771 = vmatprep.mubr.bf16.mxu0 %v7994_v38 }
 0x219   : > { %v963_v1 = vadd.f32 %v860_v63, %v429_v62  ;;  %v6941_v3 = vpop.f32.mrb[65].mxu0 }
 0x21a   : > { %v863_v4 = vpop.f32.mrb[66].mxu0  ;;  %v1065_v9 = vld [vmem:[#allocation2 + $0xf0] sm:$0xff] }
 0x21b   : > { %1014 = vst.msk [vmem:[#allocation2 + $0x100] sm:$0xff] %vm335_vm2, %v963_v1  ;;  %v964_v5 = vadd.f32 %v863_v4, %v430_v0  ;;  %v6942_v6 = vpop.f32.mrb[67].mxu0 }
 0x21c   : > { %v1066_v10 = vld [vmem:[#allocation2 + $0xf8] sm:$0xff]  ;;  %v439_v6 = vld [vmem:[#allocation2 + $0x150] sm:$0xff] }
 0x21d   : > { %1015 = vst.msk [vmem:[#allocation2 + $0x108] sm:$0xff] %vm335_vm2, %v964_v5  ;;  %v8719_v11 = vpack.c.bf16 %v1066_v10, %v1065_v9  ;;  %v440_v10 = vld [vmem:[#allocation2 + $0x158] sm:$0xff] }
 0x21f   : > { %6230 = vmatmul.mubr.msk.bf16.gmra.mrb[60].mxu1 %vm335_vm2, %v8719_v11  ;;  %6256 = vmatmul.mubr.msk.bf16.gmra.mrb[160].mxu0 %vm335_vm2, %v8719_v11 }
 0x220   : > { %v868_v13 = vpop.f32.mrb[68].mxu0  ;;  %1498 = vmatprep.mubr.bf16.mxu1 %v7994_v38  ;;  %1781 = vmatprep.mubr.bf16.mxu0 %v7994_v38 }
 0x221   : > { %v965_v16 = vadd.f32 %v868_v13, %v431_v12  ;;  %v6945_v17 = vpop.f32.mrb[69].mxu0 }
 0x222   : > { %v871_v18 = vpop.f32.mrb[70].mxu0  ;;  %v1067_v23 = vld [vmem:[#allocation2 + $0x100] sm:$0xff] }
 0x223   : > { %1016 = vst.msk [vmem:[#allocation2 + $0x110] sm:$0xff] %vm335_vm2, %v965_v16  ;;  %v966_v19 = vadd.f32 %v871_v18, %v432_v15  ;;  %v6946_v22 = vpop.f32.mrb[71].mxu0 }
 0x224   : > { %v1068_v24 = vld [vmem:[#allocation2 + $0x108] sm:$0xff] }
 0x225   : > { %1017 = vst.msk [vmem:[#allocation2 + $0x118] sm:$0xff] %vm335_vm2, %v966_v19  ;;  %v8729_v25 = vpack.c.bf16 %v1068_v24, %v1067_v23  ;;  %v441_v23 = vld [vmem:[#allocation2 + $0x160] sm:$0xff] }
 0x227   : > { %6231 = vmatmul.mubr.msk.bf16.gmra.mrb[64].mxu1 %vm335_vm2, %v8729_v25  ;;  %6257 = vmatmul.mubr.msk.bf16.gmra.mrb[164].mxu0 %vm335_vm2, %v8729_v25 }
 0x228   : > { %v876_v28 = vpop.f32.mrb[72].mxu0  ;;  %1508 = vmatprep.mubr.bf16.mxu1 %v7994_v38  ;;  %1791 = vmatprep.mubr.bf16.mxu0 %v7994_v38 }
 0x229   : > { %v967_v30 = vadd.f32 %v876_v28, %v433_v27  ;;  %v6949_v31 = vpop.f32.mrb[73].mxu0  ;;  %v442_v27 = vld [vmem:[#allocation2 + $0x168] sm:$0xff] }
 0x22a   : > { %v879_v33 = vpop.f32.mrb[74].mxu0  ;;  %v1069_v37 = vld [vmem:[#allocation2 + $0x110] sm:$0xff] }
 0x22b   : > { %1018 = vst.msk [vmem:[#allocation2 + $0x120] sm:$0xff] %vm335_vm2, %v967_v30  ;;  %v968_v35 = vadd.f32 %v879_v33, %v434_v29  ;;  %v6950_v36 = vpop.f32.mrb[75].mxu0 }
 0x22c   : > { %v1070_v40 = vld [vmem:[#allocation2 + $0x118] sm:$0xff] }
 0x22d   : > { %1019 = vst.msk [vmem:[#allocation2 + $0x128] sm:$0xff] %vm335_vm2, %v968_v35  ;;  %v8739_v41 = vpack.c.bf16 %v1070_v40, %v1069_v37  ;;  %v443_v40 = vld [vmem:[#allocation2 + $0x170] sm:$0xff] }
 0x22f   : > { %6232 = vmatmul.mubr.msk.bf16.gmra.mrb[68].mxu1 %vm335_vm2, %v8739_v41  ;;  %6258 = vmatmul.mubr.msk.bf16.gmra.mrb[168].mxu0 %vm335_vm2, %v8739_v41 }
 0x230   : > { %v884_v43 = vpop.f32.mrb[76].mxu0  ;;  %1518 = vmatprep.mubr.bf16.mxu1 %v7994_v38  ;;  %1801 = vmatprep.mubr.bf16.mxu0 %v7994_v38 }
 0x231   : > { %v969_v46 = vadd.f32 %v884_v43, %v435_v42  ;;  %v6953_v47 = vpop.f32.mrb[77].mxu0  ;;  %v444_v43 = vld [vmem:[#allocation2 + $0x178] sm:$0xff] }
 0x232   : > { %v887_v49 = vpop.f32.mrb[78].mxu0  ;;  %v1071_v52 = vld [vmem:[#allocation2 + $0x120] sm:$0xff] }
 0x233   : > { %1020 = vst.msk [vmem:[#allocation2 + $0x130] sm:$0xff] %vm335_vm2, %v969_v46  ;;  %v970_v50 = vadd.f32 %v887_v49, %v436_v45  ;;  %v6954_v51 = vpop.f32.mrb[79].mxu0 }
 0x234   : > { %v1072_v53 = vld [vmem:[#allocation2 + $0x128] sm:$0xff] }
 0x235   : > { %1021 = vst.msk [vmem:[#allocation2 + $0x138] sm:$0xff] %vm335_vm2, %v970_v50  ;;  %v8749_v54 = vpack.c.bf16 %v1072_v53, %v1071_v52 }
 0x237   : > { %6233 = vmatmul.mubr.msk.bf16.gmra.mrb[72].mxu1 %vm335_vm2, %v8749_v54  ;;  %6259 = vmatmul.mubr.msk.bf16.gmra.mrb[172].mxu0 %vm335_vm2, %v8749_v54 }
 0x238   : > { %v892_v57 = vpop.f32.mrb[80].mxu0  ;;  %1528 = vmatprep.mubr.bf16.mxu1 %v7994_v38  ;;  %1811 = vmatprep.mubr.bf16.mxu0 %v7994_v38 }
 0x239   : > { %v971_v60 = vadd.f32 %v892_v57, %v437_v56  ;;  %v6957_v62 = vpop.f32.mrb[81].mxu0  ;;  %v445_v56 = vld [vmem:[#allocation2 + $0x180] sm:$0xff] }
 0x23a   : > { %v895_v63 = vpop.f32.mrb[82].mxu0  ;;  %v1073_v3 = vld [vmem:[#allocation2 + $0x130] sm:$0xff] }
 0x23b   : > { %1022 = vst.msk [vmem:[#allocation2 + $0x140] sm:$0xff] %vm335_vm2, %v971_v60  ;;  %v972_v0 = vadd.f32 %v895_v63, %v438_v58  ;;  %v6958_v1 = vpop.f32.mrb[83].mxu0  ;;  %v446_v58 = vld [vmem:[#allocation2 + $0x188] sm:$0xff] }
 0x23c   : > { %v1074_v4 = vld [vmem:[#allocation2 + $0x138] sm:$0xff] }
 0x23d   : > { %1023 = vst.msk [vmem:[#allocation2 + $0x148] sm:$0xff] %vm335_vm2, %v972_v0  ;;  %v8759_v5 = vpack.c.bf16 %v1074_v4, %v1073_v3 }
 0x23f   : > { %6234 = vmatmul.mubr.msk.bf16.gmra.mrb[76].mxu1 %vm335_vm2, %v8759_v5  ;;  %6260 = vmatmul.mubr.msk.bf16.gmra.mrb[176].mxu0 %vm335_vm2, %v8759_v5 }
 0x240   : > { %v900_v9 = vpop.f32.mrb[84].mxu0  ;;  %1538 = vmatprep.mubr.bf16.mxu1 %v7994_v38  ;;  %1821 = vmatprep.mubr.bf16.mxu0 %v7994_v38 }
 0x241   : > { %v973_v12 = vadd.f32 %v900_v9, %v439_v6  ;;  %v6961_v13 = vpop.f32.mrb[85].mxu0 }
 0x242   : > { %v903_v15 = vpop.f32.mrb[86].mxu0  ;;  %v1075_v18 = vld [vmem:[#allocation2 + $0x140] sm:$0xff]  ;;  %v1124_v13 = vld [vmem:[#allocation10 + $0x70] sm:$0xff] }
 0x243   : > { %1024 = vst.msk [vmem:[#allocation2 + $0x150] sm:$0xff] %vm335_vm2, %v973_v12  ;;  %v974_v16 = vadd.f32 %v903_v15, %v440_v10  ;;  %v6962_v17 = vpop.f32.mrb[87].mxu0  ;;  %v7703_v15 = vld [vmem:[#allocation10 + $0x20] ss:$40 sps:$4 sm:$0xff]  }
 0x244   : > { %v1076_v19 = vld [vmem:[#allocation2 + $0x148] sm:$0xff]  ;;  %v6212_v17 = vcombine.low %v1124_v13, %v1124_v13 }
 0x245   : > { %1025 = vst.msk [vmem:[#allocation2 + $0x158] sm:$0xff] %vm335_vm2, %v974_v16  ;;  %v8769_v22 = vpack.c.bf16 %v1076_v19, %v1075_v18  ;;  %v6213_v16 = vcombine.high %v1124_v13, %v1124_v13 }
 0x246   : > { %v1301_v18 = vsel %vm1275_vm3, %v6212_v17, 0 }
 0x247   : > { %6235 = vmatmul.mubr.msk.bf16.gmra.mrb[80].mxu1 %vm335_vm2, %v8769_v22  ;;  %6261 = vmatmul.mubr.msk.bf16.gmra.mrb[180].mxu0 %vm335_vm2, %v8769_v22 }
 0x248   : > { %v908_v24 = vpop.f32.mrb[88].mxu0  ;;  %1548 = vmatprep.mubr.bf16.mxu1 %v7994_v38  ;;  %1831 = vmatprep.mubr.bf16.mxu0 %v7994_v38 }
 0x249   : > { %v975_v28 = vadd.f32 %v908_v24, %v441_v23  ;;  %v6965_v29 = vpop.f32.mrb[89].mxu0 }
 0x24a   : > { %v911_v30 = vpop.f32.mrb[90].mxu0  ;;  %v1077_v35 = vld [vmem:[#allocation2 + $0x150] sm:$0xff] }
 0x24b   : > { %1026 = vst.msk [vmem:[#allocation2 + $0x160] sm:$0xff] %vm335_vm2, %v975_v28  ;;  %v976_v31 = vadd.f32 %v911_v30, %v442_v27  ;;  %v6966_v33 = vpop.f32.mrb[91].mxu0 }
 0x24c   : > { %v1078_v36 = vld [vmem:[#allocation2 + $0x158] sm:$0xff] }
 0x24d   : > { %1027 = vst.msk [vmem:[#allocation2 + $0x168] sm:$0xff] %vm335_vm2, %v976_v31  ;;  %v8779_v37 = vpack.c.bf16 %v1078_v36, %v1077_v35 }
 0x24f   : > { %6236 = vmatmul.mubr.msk.bf16.gmra.mrb[84].mxu1 %vm335_vm2, %v8779_v37  ;;  %6262 = vmatmul.mubr.msk.bf16.gmra.mrb[184].mxu0 %vm335_vm2, %v8779_v37 }
 0x250   : > { %v916_v42 = vpop.f32.mrb[92].mxu0  ;;  %1558 = vmatprep.mubr.bf16.mxu1 %v7994_v38  ;;  %1841 = vmatprep.mubr.bf16.mxu0 %v7994_v38 }
 0x251   : > { %v977_v45 = vadd.f32 %v916_v42, %v443_v40  ;;  %v6969_v46 = vpop.f32.mrb[93].mxu0 }
 0x252   : > { %v919_v47 = vpop.f32.mrb[94].mxu0  ;;  %v1079_v51 = vld [vmem:[#allocation2 + $0x160] sm:$0xff] }
 0x253   : > { %1028 = vst.msk [vmem:[#allocation2 + $0x170] sm:$0xff] %vm335_vm2, %v977_v45  ;;  %v978_v49 = vadd.f32 %v919_v47, %v444_v43  ;;  %v6970_v50 = vpop.f32.mrb[95].mxu0 }
 0x254   : > { %v1080_v52 = vld [vmem:[#allocation2 + $0x168] sm:$0xff] }
 0x255   : > { %1029 = vst.msk [vmem:[#allocation2 + $0x178] sm:$0xff] %vm335_vm2, %v978_v49  ;;  %v8789_v53 = vpack.c.bf16 %v1080_v52, %v1079_v51 }
 0x257   : > { %6237 = vmatmul.mubr.msk.bf16.gmra.mrb[88].mxu1 %vm335_vm2, %v8789_v53  ;;  %6263 = vmatmul.mubr.msk.bf16.gmra.mrb[188].mxu0 %vm335_vm2, %v8789_v53 }
 0x258   : > { %v924_v57 = vpop.f32.mrb[96].mxu0  ;;  %1568 = vmatprep.mubr.bf16.mxu1 %v7994_v38  ;;  %1851 = vmatprep.mubr.bf16.mxu0 %v7994_v38 }
 0x259   : > { %v979_v60 = vadd.f32 %v924_v57, %v445_v56  ;;  %v6973_v62 = vpop.f32.mrb[97].mxu0 }
 0x25a   : > { %v927_v63 = vpop.f32.mrb[98].mxu0  ;;  %v1081_v3 = vld [vmem:[#allocation2 + $0x170] sm:$0xff] }
 0x25b   : > { %1030 = vst.msk [vmem:[#allocation2 + $0x180] sm:$0xff] %vm335_vm2, %v979_v60  ;;  %v980_v0 = vadd.f32 %v927_v63, %v446_v58  ;;  %v6974_v1 = vpop.f32.mrb[99].mxu0 }
 0x25c   : > { %v1082_v4 = vld [vmem:[#allocation2 + $0x178] sm:$0xff] }
 0x25d   : > { %1031 = vst.msk [vmem:[#allocation2 + $0x188] sm:$0xff] %vm335_vm2, %v980_v0  ;;  %v8799_v6 = vpack.c.bf16 %v1082_v4, %v1081_v3 }
 0x25f   : > { %6238 = vmatmul.mubr.msk.bf16.gmra.mrb[92].mxu1 %vm335_vm2, %v8799_v6  ;;  %6264 = vmatmul.mubr.msk.bf16.gmra.mrb[192].mxu0 %vm335_vm2, %v8799_v6 }
 0x260   : > { %1578 = vmatprep.mubr.bf16.mxu1 %v7994_v38  ;;  %1861 = vmatprep.mubr.bf16.mxu0 %v7994_v38 }
 0x262   : > { %v1083_v9 = vld [vmem:[#allocation2 + $0x180] sm:$0xff] }
 0x264   : > { %v1084_v10 = vld [vmem:[#allocation2 + $0x188] sm:$0xff] }
 0x265   : > { %v8807_v12 = vpack.c.bf16 %v1084_v10, %v1083_v9 }
 0x267   : > { %6239 = vmatmul.mubr.msk.bf16.gmra.mrb[96].mxu1 %vm335_vm2, %v8807_v12  ;;  %6265 = vmatmul.mubr.msk.bf16.gmra.mrb[196].mxu0 %vm335_vm2, %v8807_v12 }
 0x268   : > { %1904 = vmatprep.mubr.bf16.mxu1 %v7994_v38  ;;  %2187 = vmatprep.mubr.bf16.mxu0 %v7994_v38 }
 0x26f   : > { %6267 = vmatmul.mubr.msk.bf16.vlgmr.msra.gmra.mrb[100].mxu1 %vm335_vm2, %v8565_v7  ;;  %6293 = vmatmul.mubr.msk.bf16.vlgmr.msra.gmra.mrb[200].mxu0 %vm335_vm2, %v8565_v7 }
 0x270   : > { %2439 = vmatpush1.bf16.msra.mxu1 %v7703_v15  ;;  %1914 = vmatprep.mubr.bf16.mxu1 %v7994_v38 }
 0x271   : > { %2197 = vmatprep.mubr.bf16.mxu0 %v7994_v38  ;;  %6318 = vmatprep.subr.msk.bf16.mxu1 %vm1275_vm3, %v6213_v16 }
 0x274   : > { %2441 = vmatpush1.bf16.msra.mxu1 %v1301_v18 }
 0x277   : > { %6268 = vmatmul.mubr.msk.bf16.gmra.mrb[104].mxu1 %vm335_vm2, %v8577_v21  ;;  %6294 = vmatmul.mubr.msk.bf16.gmra.mrb[204].mxu0 %vm335_vm2, %v8577_v21 }
 0x278   : > { %1924 = vmatprep.mubr.bf16.mxu1 %v7994_v38  ;;  %2207 = vmatprep.mubr.bf16.mxu0 %v7994_v38 }
 0x27a   : > { %v1340_v19 = vpop.f32.mrb[0].mxu1  ;;  %v1623_v23 = vpop.f32.mrb[100].mxu0 }
 0x27b   : > { %v6980_v24 = vround.rtne.f32 %v1340_v19  ;;  %v6982_v27 = vround.rtne.f32 %v1623_v23  ;;  %v1342_v28 = vpop.f32.mrb[1].mxu1  ;;  %v1625_v29 = vpop.f32.mrb[101].mxu0 }
 0x27c   : > { %v6981_v30 = vround.rtne.f32 %v1342_v28  ;;  %v6983_v31 = vround.rtne.f32 %v1625_v29  ;;  %v1344_v33 = vpop.f32.mrb[2].mxu1  ;;  %v1627_v35 = vpop.f32.mrb[102].mxu0 }
 0x27d   : > { %v3221_v36 = vmax.f32 %v6980_v24, 0.0  ;;  %v3223_v40 = vmax.f32 %v6982_v27, 0.0  ;;  %v6990_v42 = vround.rtne.f32 %v1344_v33  ;;  %v6992_v43 = vround.rtne.f32 %v1627_v35  ;;  %v1346_v45 = vpop.f32.mrb[3].mxu1  ;;  %v1629_v46 = vpop.f32.mrb[103].mxu0 }
 0x27e   : > { %v3222_v47 = vmax.f32 %v6981_v30, 0.0  ;;  %v3224_v49 = vmax.f32 %v6983_v31, 0.0  ;;  %v6991_v50 = vround.rtne.f32 %v1346_v45  ;;  %v6993_v51 = vround.rtne.f32 %v1629_v46 }
 0x27f   : > { %v3721_v52 = vmin.f32 %v3221_v36, 255.0  ;;  %v3723_v56 = vmin.f32 %v3223_v40, 255.0  ;;  %v3231_v57 = vmax.f32 %v6990_v42, 0.0  ;;  %v3233_v58 = vmax.f32 %v6992_v43, 0.0  ;;  %6269 = vmatmul.mubr.msk.bf16.gmra.mrb[108].mxu1 %vm335_vm2, %v8587_v32  ;;  %6295 = vmatmul.mubr.msk.bf16.gmra.mrb[208].mxu0 %vm335_vm2, %v8587_v32 }
 0x280   : > { %v3722_v60 = vmin.f32 %v3222_v47, 255.0  ;;  %v3724_v62 = vmin.f32 %v3224_v49, 255.0  ;;  %v3232_v63 = vmax.f32 %v6991_v50, 0.0  ;;  %v3234_v0 = vmax.f32 %v6993_v51, 0.0  ;;  %1934 = vmatprep.mubr.bf16.mxu1 %v7994_v38  ;;  %2217 = vmatprep.mubr.bf16.mxu0 %v7994_v38 }
 0x281   : > { %v3731_v1 = vmin.f32 %v3231_v57, 255.0  ;;  %v3733_v3 = vmin.f32 %v3233_v58, 255.0 }
 0x282   : > { %v6597_v4 = vpack.c.bf16 %v3722_v60, %v3721_v52  ;;  %v6598_v9 = vpack.c.bf16 %v3724_v62, %v3723_v56  ;;  %v3732_v10 = vmin.f32 %v3232_v63, 255.0  ;;  %v3734_v13 = vmin.f32 %v3234_v0, 255.0  ;;  %v1350_v15 = vpop.f32.mrb[4].mxu1  ;;  %v1633_v16 = vpop.f32.mrb[104].mxu0 }
 0x283   : > { %v7000_v17 = vround.rtne.f32 %v1350_v15  ;;  %v7002_v18 = vround.rtne.f32 %v1633_v16  ;;  %v1352_v19 = vpop.f32.mrb[5].mxu1  ;;  %v1635_v23 = vpop.f32.mrb[105].mxu0 }
 0x284   : > { %5721 = vst [vmem:[%s8841_s12] sm:$0xff] %v6597_v4  ;;  %5722 = vst [vmem:[%s8841_s12 + $0x8] sm:$0xff] %v6598_v9  ;;  %v6602_v24 = vpack.c.bf16 %v3732_v10, %v3731_v1  ;;  %v6603_v27 = vpack.c.bf16 %v3734_v13, %v3733_v3  ;;  %v7001_v28 = vround.rtne.f32 %v1352_v19  ;;  %v7003_v29 = vround.rtne.f32 %v1635_v23  ;;  %v1354_v30 = vpop.f32.mrb[6].mxu1  ;;  %v1637_v31 = vpop.f32.mrb[106].mxu0 }
 0x285   : > { %v3241_v33 = vmax.f32 %v7000_v17, 0.0  ;;  %v3243_v35 = vmax.f32 %v7002_v18, 0.0  ;;  %v7010_v36 = vround.rtne.f32 %v1354_v30  ;;  %v7012_v40 = vround.rtne.f32 %v1637_v31  ;;  %v1356_v42 = vpop.f32.mrb[7].mxu1  ;;  %v1639_v43 = vpop.f32.mrb[107].mxu0 }
 0x286   : > { %5726 = vst [vmem:[%s8841_s12 + $0x28] sm:$0xff] %v6602_v24  ;;  %5727 = vst [vmem:[%s8841_s12 + $0x30] sm:$0xff] %v6603_v27  ;;  %v3242_v45 = vmax.f32 %v7001_v28, 0.0  ;;  %v3244_v46 = vmax.f32 %v7003_v29, 0.0  ;;  %v7011_v47 = vround.rtne.f32 %v1356_v42  ;;  %v7013_v49 = vround.rtne.f32 %v1639_v43 }
 0x287   : > { %v3741_v50 = vmin.f32 %v3241_v33, 255.0  ;;  %v3743_v51 = vmin.f32 %v3243_v35, 255.0  ;;  %v3251_v52 = vmax.f32 %v7010_v36, 0.0  ;;  %v3253_v56 = vmax.f32 %v7012_v40, 0.0  ;;  %6270 = vmatmul.mubr.msk.bf16.gmra.mrb[112].mxu1 %vm335_vm2, %v8597_v44  ;;  %6296 = vmatmul.mubr.msk.bf16.gmra.mrb[212].mxu0 %vm335_vm2, %v8597_v44 }
 0x288   : > { %v3742_v57 = vmin.f32 %v3242_v45, 255.0  ;;  %v3744_v58 = vmin.f32 %v3244_v46, 255.0  ;;  %v3252_v60 = vmax.f32 %v7011_v47, 0.0  ;;  %v3254_v62 = vmax.f32 %v7013_v49, 0.0  ;;  %1944 = vmatprep.mubr.bf16.mxu1 %v7994_v38  ;;  %2227 = vmatprep.mubr.bf16.mxu0 %v7994_v38 }
 0x289   : > { %v3751_v63 = vmin.f32 %v3251_v52, 255.0  ;;  %v3753_v0 = vmin.f32 %v3253_v56, 255.0 }
 0x28a   : > { %v6607_v1 = vpack.c.bf16 %v3742_v57, %v3741_v50  ;;  %v6608_v3 = vpack.c.bf16 %v3744_v58, %v3743_v51  ;;  %v3752_v4 = vmin.f32 %v3252_v60, 255.0  ;;  %v3754_v9 = vmin.f32 %v3254_v62, 255.0  ;;  %v1360_v10 = vpop.f32.mrb[8].mxu1  ;;  %v1643_v13 = vpop.f32.mrb[108].mxu0 }
 0x28b   : > { %v7020_v15 = vround.rtne.f32 %v1360_v10  ;;  %v7022_v16 = vround.rtne.f32 %v1643_v13  ;;  %v1362_v17 = vpop.f32.mrb[9].mxu1  ;;  %v1645_v18 = vpop.f32.mrb[109].mxu0 }
 0x28c   : > { %5731 = vst [vmem:[%s8841_s12 + $0x50] sm:$0xff] %v6607_v1  ;;  %5732 = vst [vmem:[%s8841_s12 + $0x58] sm:$0xff] %v6608_v3  ;;  %v6612_v19 = vpack.c.bf16 %v3752_v4, %v3751_v63  ;;  %v6613_v23 = vpack.c.bf16 %v3754_v9, %v3753_v0  ;;  %v7021_v24 = vround.rtne.f32 %v1362_v17  ;;  %v7023_v27 = vround.rtne.f32 %v1645_v18  ;;  %v1364_v28 = vpop.f32.mrb[10].mxu1  ;;  %v1647_v29 = vpop.f32.mrb[110].mxu0 }
 0x28d   : > { %v3261_v30 = vmax.f32 %v7020_v15, 0.0  ;;  %v3263_v31 = vmax.f32 %v7022_v16, 0.0  ;;  %v7030_v33 = vround.rtne.f32 %v1364_v28  ;;  %v7032_v35 = vround.rtne.f32 %v1647_v29  ;;  %v1366_v36 = vpop.f32.mrb[11].mxu1  ;;  %v1649_v40 = vpop.f32.mrb[111].mxu0 }
 0x28e   : > { %5736 = vst [vmem:[%s8841_s12 + $0x78] sm:$0xff] %v6612_v19  ;;  %5737 = vst [vmem:[%s8841_s12 + $0x80] sm:$0xff] %v6613_v23  ;;  %v3262_v42 = vmax.f32 %v7021_v24, 0.0  ;;  %v3264_v43 = vmax.f32 %v7023_v27, 0.0  ;;  %v7031_v45 = vround.rtne.f32 %v1366_v36  ;;  %v7033_v46 = vround.rtne.f32 %v1649_v40 }
 0x28f   : > { %v3761_v47 = vmin.f32 %v3261_v30, 255.0  ;;  %v3763_v49 = vmin.f32 %v3263_v31, 255.0  ;;  %v3271_v50 = vmax.f32 %v7030_v33, 0.0  ;;  %v3273_v51 = vmax.f32 %v7032_v35, 0.0  ;;  %6271 = vmatmul.mubr.msk.bf16.gmra.mrb[116].mxu1 %vm335_vm2, %v8607_v55  ;;  %6297 = vmatmul.mubr.msk.bf16.gmra.mrb[216].mxu0 %vm335_vm2, %v8607_v55 }
 0x290   : > { %v3762_v52 = vmin.f32 %v3262_v42, 255.0  ;;  %v3764_v56 = vmin.f32 %v3264_v43, 255.0  ;;  %v3272_v57 = vmax.f32 %v7031_v45, 0.0  ;;  %v3274_v58 = vmax.f32 %v7033_v46, 0.0  ;;  %1954 = vmatprep.mubr.bf16.mxu1 %v7994_v38  ;;  %2237 = vmatprep.mubr.bf16.mxu0 %v7994_v38 }
 0x291   : > { %v3771_v60 = vmin.f32 %v3271_v50, 255.0  ;;  %v3773_v62 = vmin.f32 %v3273_v51, 255.0 }
 0x292   : > { %v6617_v63 = vpack.c.bf16 %v3762_v52, %v3761_v47  ;;  %v6618_v0 = vpack.c.bf16 %v3764_v56, %v3763_v49  ;;  %v3772_v1 = vmin.f32 %v3272_v57, 255.0  ;;  %v3774_v3 = vmin.f32 %v3274_v58, 255.0  ;;  %v1370_v4 = vpop.f32.mrb[12].mxu1  ;;  %v1653_v9 = vpop.f32.mrb[112].mxu0 }
 0x293   : > { %v7040_v10 = vround.rtne.f32 %v1370_v4  ;;  %v7042_v13 = vround.rtne.f32 %v1653_v9  ;;  %v1372_v15 = vpop.f32.mrb[13].mxu1  ;;  %v1655_v16 = vpop.f32.mrb[113].mxu0 }
 0x294   : > { %5741 = vst [vmem:[%s8841_s12 + $0xa0] sm:$0xff] %v6617_v63  ;;  %5742 = vst [vmem:[%s8841_s12 + $0xa8] sm:$0xff] %v6618_v0  ;;  %v6622_v17 = vpack.c.bf16 %v3772_v1, %v3771_v60  ;;  %v6623_v18 = vpack.c.bf16 %v3774_v3, %v3773_v62  ;;  %v7041_v19 = vround.rtne.f32 %v1372_v15  ;;  %v7043_v23 = vround.rtne.f32 %v1655_v16  ;;  %v1374_v24 = vpop.f32.mrb[14].mxu1  ;;  %v1657_v27 = vpop.f32.mrb[114].mxu0 }
 0x295   : > { %v3281_v28 = vmax.f32 %v7040_v10, 0.0  ;;  %v3283_v29 = vmax.f32 %v7042_v13, 0.0  ;;  %v7050_v30 = vround.rtne.f32 %v1374_v24  ;;  %v7052_v31 = vround.rtne.f32 %v1657_v27  ;;  %v1376_v33 = vpop.f32.mrb[15].mxu1  ;;  %v1659_v35 = vpop.f32.mrb[115].mxu0 }
 0x296   : > { %5746 = vst [vmem:[%s8841_s12 + $0xc8] sm:$0xff] %v6622_v17  ;;  %5747 = vst [vmem:[%s8841_s12 + $0xd0] sm:$0xff] %v6623_v18  ;;  %v3282_v36 = vmax.f32 %v7041_v19, 0.0  ;;  %v3284_v40 = vmax.f32 %v7043_v23, 0.0  ;;  %v7051_v42 = vround.rtne.f32 %v1376_v33  ;;  %v7053_v43 = vround.rtne.f32 %v1659_v35 }
 0x297   : > { %v3781_v45 = vmin.f32 %v3281_v28, 255.0  ;;  %v3783_v46 = vmin.f32 %v3283_v29, 255.0  ;;  %v3291_v47 = vmax.f32 %v7050_v30, 0.0  ;;  %v3293_v49 = vmax.f32 %v7052_v31, 0.0  ;;  %6272 = vmatmul.mubr.msk.bf16.gmra.mrb[120].mxu1 %vm335_vm2, %v8617_v2  ;;  %6298 = vmatmul.mubr.msk.bf16.gmra.mrb[220].mxu0 %vm335_vm2, %v8617_v2 }
 0x298   : > { %v3782_v50 = vmin.f32 %v3282_v36, 255.0  ;;  %v3784_v51 = vmin.f32 %v3284_v40, 255.0  ;;  %v3292_v52 = vmax.f32 %v7051_v42, 0.0  ;;  %v3294_v56 = vmax.f32 %v7053_v43, 0.0  ;;  %1964 = vmatprep.mubr.bf16.mxu1 %v7994_v38  ;;  %2247 = vmatprep.mubr.bf16.mxu0 %v7994_v38 }
 0x299   : > { %v3791_v57 = vmin.f32 %v3291_v47, 255.0  ;;  %v3793_v58 = vmin.f32 %v3293_v49, 255.0 }
 0x29a   : > { %v6627_v60 = vpack.c.bf16 %v3782_v50, %v3781_v45  ;;  %v6628_v62 = vpack.c.bf16 %v3784_v51, %v3783_v46  ;;  %v3792_v63 = vmin.f32 %v3292_v52, 255.0  ;;  %v3794_v0 = vmin.f32 %v3294_v56, 255.0  ;;  %v1380_v1 = vpop.f32.mrb[16].mxu1  ;;  %v1663_v3 = vpop.f32.mrb[116].mxu0 }
 0x29b   : > { %v7060_v4 = vround.rtne.f32 %v1380_v1  ;;  %v7062_v9 = vround.rtne.f32 %v1663_v3  ;;  %v1382_v10 = vpop.f32.mrb[17].mxu1  ;;  %v1665_v13 = vpop.f32.mrb[117].mxu0 }
 0x29c   : > { %5751 = vst [vmem:[%s8841_s12 + $0xf0] sm:$0xff] %v6627_v60  ;;  %5752 = vst [vmem:[%s8841_s12 + $0xf8] sm:$0xff] %v6628_v62  ;;  %v6632_v15 = vpack.c.bf16 %v3792_v63, %v3791_v57  ;;  %v6633_v16 = vpack.c.bf16 %v3794_v0, %v3793_v58  ;;  %v7061_v17 = vround.rtne.f32 %v1382_v10  ;;  %v7063_v18 = vround.rtne.f32 %v1665_v13  ;;  %v1384_v19 = vpop.f32.mrb[18].mxu1  ;;  %v1667_v23 = vpop.f32.mrb[118].mxu0 }
 0x29d   : > { %v3301_v24 = vmax.f32 %v7060_v4, 0.0  ;;  %v3303_v27 = vmax.f32 %v7062_v9, 0.0  ;;  %v7070_v28 = vround.rtne.f32 %v1384_v19  ;;  %v7072_v29 = vround.rtne.f32 %v1667_v23  ;;  %v1386_v30 = vpop.f32.mrb[19].mxu1  ;;  %v1669_v31 = vpop.f32.mrb[119].mxu0 }
 0x29e   : > { %5756 = vst [vmem:[%s8841_s12 + $0x118] sm:$0xff] %v6632_v15  ;;  %5757 = vst [vmem:[%s8841_s12 + $0x120] sm:$0xff] %v6633_v16  ;;  %v3302_v33 = vmax.f32 %v7061_v17, 0.0  ;;  %v3304_v35 = vmax.f32 %v7063_v18, 0.0  ;;  %v7071_v36 = vround.rtne.f32 %v1386_v30  ;;  %v7073_v40 = vround.rtne.f32 %v1669_v31 }
 0x29f   : > { %v3801_v42 = vmin.f32 %v3301_v24, 255.0  ;;  %v3803_v43 = vmin.f32 %v3303_v27, 255.0  ;;  %v3311_v45 = vmax.f32 %v7070_v28, 0.0  ;;  %v3313_v46 = vmax.f32 %v7072_v29, 0.0  ;;  %6273 = vmatmul.mubr.msk.bf16.gmra.mrb[124].mxu1 %vm335_vm2, %v8627_v14  ;;  %6299 = vmatmul.mubr.msk.bf16.gmra.mrb[224].mxu0 %vm335_vm2, %v8627_v14 }
 0x2a0   : > { %v3802_v47 = vmin.f32 %v3302_v33, 255.0  ;;  %v3804_v49 = vmin.f32 %v3304_v35, 255.0  ;;  %v3312_v50 = vmax.f32 %v7071_v36, 0.0  ;;  %v3314_v51 = vmax.f32 %v7073_v40, 0.0  ;;  %1974 = vmatprep.mubr.bf16.mxu1 %v7994_v38  ;;  %2257 = vmatprep.mubr.bf16.mxu0 %v7994_v38 }
 0x2a1   : > { %v3811_v52 = vmin.f32 %v3311_v45, 255.0  ;;  %v3813_v56 = vmin.f32 %v3313_v46, 255.0 }
 0x2a2   : > { %v6637_v57 = vpack.c.bf16 %v3802_v47, %v3801_v42  ;;  %v6638_v58 = vpack.c.bf16 %v3804_v49, %v3803_v43  ;;  %v3812_v60 = vmin.f32 %v3312_v50, 255.0  ;;  %v3814_v62 = vmin.f32 %v3314_v51, 255.0  ;;  %v1390_v63 = vpop.f32.mrb[20].mxu1  ;;  %v1673_v0 = vpop.f32.mrb[120].mxu0 }
 0x2a3   : > { %v7080_v1 = vround.rtne.f32 %v1390_v63  ;;  %v7082_v3 = vround.rtne.f32 %v1673_v0  ;;  %v1392_v4 = vpop.f32.mrb[21].mxu1  ;;  %v1675_v9 = vpop.f32.mrb[121].mxu0 }
 0x2a4   : > { %5761 = vst [vmem:[%s8841_s12 + $0x140] sm:$0xff] %v6637_v57  ;;  %5762 = vst [vmem:[%s8841_s12 + $0x148] sm:$0xff] %v6638_v58  ;;  %v6642_v10 = vpack.c.bf16 %v3812_v60, %v3811_v52  ;;  %v6643_v13 = vpack.c.bf16 %v3814_v62, %v3813_v56  ;;  %v7081_v15 = vround.rtne.f32 %v1392_v4  ;;  %v7083_v16 = vround.rtne.f32 %v1675_v9  ;;  %v1394_v17 = vpop.f32.mrb[22].mxu1  ;;  %v1677_v18 = vpop.f32.mrb[122].mxu0 }
 0x2a5   : > { %v3321_v19 = vmax.f32 %v7080_v1, 0.0  ;;  %v3323_v23 = vmax.f32 %v7082_v3, 0.0  ;;  %v7090_v24 = vround.rtne.f32 %v1394_v17  ;;  %v7092_v27 = vround.rtne.f32 %v1677_v18  ;;  %v1396_v28 = vpop.f32.mrb[23].mxu1  ;;  %v1679_v29 = vpop.f32.mrb[123].mxu0 }
 0x2a6   : > { %5766 = vst [vmem:[%s8841_s12 + $0x168] sm:$0xff] %v6642_v10  ;;  %5767 = vst [vmem:[%s8841_s12 + $0x170] sm:$0xff] %v6643_v13  ;;  %v3322_v30 = vmax.f32 %v7081_v15, 0.0  ;;  %v3324_v31 = vmax.f32 %v7083_v16, 0.0  ;;  %v7091_v33 = vround.rtne.f32 %v1396_v28  ;;  %v7093_v35 = vround.rtne.f32 %v1679_v29 }
 0x2a7   : > { %v3821_v36 = vmin.f32 %v3321_v19, 255.0  ;;  %v3823_v40 = vmin.f32 %v3323_v23, 255.0  ;;  %v3331_v42 = vmax.f32 %v7090_v24, 0.0  ;;  %v3333_v43 = vmax.f32 %v7092_v27, 0.0  ;;  %6274 = vmatmul.mubr.msk.bf16.gmra.mrb[128].mxu1 %vm335_vm2, %v8637_v26  ;;  %6300 = vmatmul.mubr.msk.bf16.gmra.mrb[228].mxu0 %vm335_vm2, %v8637_v26 }
 0x2a8   : > { %v3822_v45 = vmin.f32 %v3322_v30, 255.0  ;;  %v3824_v46 = vmin.f32 %v3324_v31, 255.0  ;;  %v3332_v47 = vmax.f32 %v7091_v33, 0.0  ;;  %v3334_v49 = vmax.f32 %v7093_v35, 0.0  ;;  %1984 = vmatprep.mubr.bf16.mxu1 %v7994_v38  ;;  %2267 = vmatprep.mubr.bf16.mxu0 %v7994_v38 }
 0x2a9   : > { %v3831_v50 = vmin.f32 %v3331_v42, 255.0  ;;  %v3833_v51 = vmin.f32 %v3333_v43, 255.0 }
 0x2aa   : > { %v6647_v52 = vpack.c.bf16 %v3822_v45, %v3821_v36  ;;  %v6648_v56 = vpack.c.bf16 %v3824_v46, %v3823_v40  ;;  %v3832_v57 = vmin.f32 %v3332_v47, 255.0  ;;  %v3834_v58 = vmin.f32 %v3334_v49, 255.0  ;;  %v1400_v60 = vpop.f32.mrb[24].mxu1  ;;  %v1683_v62 = vpop.f32.mrb[124].mxu0 }
 0x2ab   : > { %v7100_v63 = vround.rtne.f32 %v1400_v60  ;;  %v7102_v0 = vround.rtne.f32 %v1683_v62  ;;  %v1402_v1 = vpop.f32.mrb[25].mxu1  ;;  %v1685_v3 = vpop.f32.mrb[125].mxu0 }
 0x2ac   : > { %5771 = vst [vmem:[%s8841_s12 + $0x190] sm:$0xff] %v6647_v52  ;;  %5772 = vst [vmem:[%s8841_s12 + $0x198] sm:$0xff] %v6648_v56  ;;  %v6652_v4 = vpack.c.bf16 %v3832_v57, %v3831_v50  ;;  %v6653_v9 = vpack.c.bf16 %v3834_v58, %v3833_v51  ;;  %v7101_v10 = vround.rtne.f32 %v1402_v1  ;;  %v7103_v13 = vround.rtne.f32 %v1685_v3  ;;  %v1404_v15 = vpop.f32.mrb[26].mxu1  ;;  %v1687_v16 = vpop.f32.mrb[126].mxu0 }
 0x2ad   : > { %v3341_v17 = vmax.f32 %v7100_v63, 0.0  ;;  %v3343_v18 = vmax.f32 %v7102_v0, 0.0  ;;  %v7110_v19 = vround.rtne.f32 %v1404_v15  ;;  %v7112_v23 = vround.rtne.f32 %v1687_v16  ;;  %v1406_v24 = vpop.f32.mrb[27].mxu1  ;;  %v1689_v27 = vpop.f32.mrb[127].mxu0 }
 0x2ae   : > { %5776 = vst [vmem:[%s8841_s12 + $0x1b8] sm:$0xff] %v6652_v4  ;;  %5777 = vst [vmem:[%s8841_s12 + $0x1c0] sm:$0xff] %v6653_v9  ;;  %v3342_v28 = vmax.f32 %v7101_v10, 0.0  ;;  %v3344_v29 = vmax.f32 %v7103_v13, 0.0  ;;  %v7111_v30 = vround.rtne.f32 %v1406_v24  ;;  %v7113_v31 = vround.rtne.f32 %v1689_v27 }
 0x2af   : > { %v3841_v33 = vmin.f32 %v3341_v17, 255.0  ;;  %v3843_v35 = vmin.f32 %v3343_v18, 255.0  ;;  %v3351_v36 = vmax.f32 %v7110_v19, 0.0  ;;  %v3353_v40 = vmax.f32 %v7112_v23, 0.0  ;;  %6275 = vmatmul.mubr.msk.bf16.gmra.mrb[132].mxu1 %vm335_vm2, %v8647_v39  ;;  %6301 = vmatmul.mubr.msk.bf16.gmra.mrb[232].mxu0 %vm335_vm2, %v8647_v39 }
 0x2b0   : > { %v3842_v42 = vmin.f32 %v3342_v28, 255.0  ;;  %v3844_v43 = vmin.f32 %v3344_v29, 255.0  ;;  %v3352_v45 = vmax.f32 %v7111_v30, 0.0  ;;  %v3354_v46 = vmax.f32 %v7113_v31, 0.0  ;;  %1994 = vmatprep.mubr.bf16.mxu1 %v7994_v38  ;;  %2277 = vmatprep.mubr.bf16.mxu0 %v7994_v38 }
 0x2b1   : > { %v3851_v47 = vmin.f32 %v3351_v36, 255.0  ;;  %v3853_v49 = vmin.f32 %v3353_v40, 255.0 }
 0x2b2   : > { %v6657_v50 = vpack.c.bf16 %v3842_v42, %v3841_v33  ;;  %v6658_v51 = vpack.c.bf16 %v3844_v43, %v3843_v35  ;;  %v3852_v52 = vmin.f32 %v3352_v45, 255.0  ;;  %v3854_v56 = vmin.f32 %v3354_v46, 255.0  ;;  %v1410_v57 = vpop.f32.mrb[28].mxu1  ;;  %v1693_v58 = vpop.f32.mrb[128].mxu0 }
 0x2b3   : > { %v7120_v60 = vround.rtne.f32 %v1410_v57  ;;  %v7122_v62 = vround.rtne.f32 %v1693_v58  ;;  %v1412_v63 = vpop.f32.mrb[29].mxu1  ;;  %v1695_v0 = vpop.f32.mrb[129].mxu0 }
 0x2b4   : > { %5781 = vst [vmem:[%s8841_s12 + $0x1e0] sm:$0xff] %v6657_v50  ;;  %5782 = vst [vmem:[%s8841_s12 + $0x1e8] sm:$0xff] %v6658_v51  ;;  %v6662_v1 = vpack.c.bf16 %v3852_v52, %v3851_v47  ;;  %v6663_v3 = vpack.c.bf16 %v3854_v56, %v3853_v49  ;;  %v7121_v4 = vround.rtne.f32 %v1412_v63  ;;  %v7123_v9 = vround.rtne.f32 %v1695_v0  ;;  %v1414_v10 = vpop.f32.mrb[30].mxu1  ;;  %v1697_v13 = vpop.f32.mrb[130].mxu0 }
 0x2b5   : > { %v3361_v15 = vmax.f32 %v7120_v60, 0.0  ;;  %v3363_v16 = vmax.f32 %v7122_v62, 0.0  ;;  %v7130_v17 = vround.rtne.f32 %v1414_v10  ;;  %v7132_v18 = vround.rtne.f32 %v1697_v13  ;;  %v1416_v19 = vpop.f32.mrb[31].mxu1  ;;  %v1699_v23 = vpop.f32.mrb[131].mxu0 }
 0x2b6   : > { %5786 = vst [vmem:[%s8841_s12 + $0x208] sm:$0xff] %v6662_v1  ;;  %5787 = vst [vmem:[%s8841_s12 + $0x210] sm:$0xff] %v6663_v3  ;;  %v3362_v24 = vmax.f32 %v7121_v4, 0.0  ;;  %v3364_v27 = vmax.f32 %v7123_v9, 0.0  ;;  %v7131_v28 = vround.rtne.f32 %v1416_v19  ;;  %v7133_v29 = vround.rtne.f32 %v1699_v23 }
 0x2b7   : > { %v3861_v30 = vmin.f32 %v3361_v15, 255.0  ;;  %v3863_v31 = vmin.f32 %v3363_v16, 255.0  ;;  %v3371_v33 = vmax.f32 %v7130_v17, 0.0  ;;  %v3373_v35 = vmax.f32 %v7132_v18, 0.0  ;;  %6276 = vmatmul.mubr.msk.bf16.gmra.mrb[136].mxu1 %vm335_vm2, %v8659_v59  ;;  %6302 = vmatmul.mubr.msk.bf16.gmra.mrb[236].mxu0 %vm335_vm2, %v8659_v59 }
 0x2b8   : > { %v3862_v36 = vmin.f32 %v3362_v24, 255.0  ;;  %v3864_v40 = vmin.f32 %v3364_v27, 255.0  ;;  %v3372_v42 = vmax.f32 %v7131_v28, 0.0  ;;  %v3374_v43 = vmax.f32 %v7133_v29, 0.0  ;;  %2004 = vmatprep.mubr.bf16.mxu1 %v7994_v38  ;;  %2287 = vmatprep.mubr.bf16.mxu0 %v7994_v38 }
 0x2b9   : > { %v3871_v45 = vmin.f32 %v3371_v33, 255.0  ;;  %v3873_v46 = vmin.f32 %v3373_v35, 255.0 }
 0x2ba   : > { %v6667_v47 = vpack.c.bf16 %v3862_v36, %v3861_v30  ;;  %v6668_v49 = vpack.c.bf16 %v3864_v40, %v3863_v31  ;;  %v3872_v50 = vmin.f32 %v3372_v42, 255.0  ;;  %v3874_v51 = vmin.f32 %v3374_v43, 255.0  ;;  %v1420_v52 = vpop.f32.mrb[32].mxu1  ;;  %v1703_v56 = vpop.f32.mrb[132].mxu0 }
 0x2bb   : > { %v7140_v57 = vround.rtne.f32 %v1420_v52  ;;  %v7142_v58 = vround.rtne.f32 %v1703_v56  ;;  %v1422_v60 = vpop.f32.mrb[33].mxu1  ;;  %v1705_v62 = vpop.f32.mrb[133].mxu0 }
 0x2bc   : > { %5791 = vst [vmem:[%s8841_s12 + $0x230] sm:$0xff] %v6667_v47  ;;  %5792 = vst [vmem:[%s8841_s12 + $0x238] sm:$0xff] %v6668_v49  ;;  %v6672_v63 = vpack.c.bf16 %v3872_v50, %v3871_v45  ;;  %v6673_v0 = vpack.c.bf16 %v3874_v51, %v3873_v46  ;;  %v7141_v1 = vround.rtne.f32 %v1422_v60  ;;  %v7143_v3 = vround.rtne.f32 %v1705_v62  ;;  %v1424_v4 = vpop.f32.mrb[34].mxu1  ;;  %v1707_v9 = vpop.f32.mrb[134].mxu0 }
 0x2bd   : > { %v3381_v10 = vmax.f32 %v7140_v57, 0.0  ;;  %v3383_v13 = vmax.f32 %v7142_v58, 0.0  ;;  %v7150_v15 = vround.rtne.f32 %v1424_v4  ;;  %v7152_v16 = vround.rtne.f32 %v1707_v9  ;;  %v1426_v17 = vpop.f32.mrb[35].mxu1  ;;  %v1709_v18 = vpop.f32.mrb[135].mxu0 }
 0x2be   : > { %5796 = vst [vmem:[%s8841_s12 + $0x258] sm:$0xff] %v6672_v63  ;;  %5797 = vst [vmem:[%s8841_s12 + $0x260] sm:$0xff] %v6673_v0  ;;  %v3382_v19 = vmax.f32 %v7141_v1, 0.0  ;;  %v3384_v23 = vmax.f32 %v7143_v3, 0.0  ;;  %v7151_v24 = vround.rtne.f32 %v1426_v17  ;;  %v7153_v27 = vround.rtne.f32 %v1709_v18 }
 0x2bf   : > { %v3881_v28 = vmin.f32 %v3381_v10, 255.0  ;;  %v3883_v29 = vmin.f32 %v3383_v13, 255.0  ;;  %v3391_v30 = vmax.f32 %v7150_v15, 0.0  ;;  %v3393_v31 = vmax.f32 %v7152_v16, 0.0  ;;  %6277 = vmatmul.mubr.msk.bf16.gmra.mrb[140].mxu1 %vm335_vm2, %v8669_v8  ;;  %6303 = vmatmul.mubr.msk.bf16.gmra.mrb[240].mxu0 %vm335_vm2, %v8669_v8 }
 0x2c0   : > { %v3882_v33 = vmin.f32 %v3382_v19, 255.0  ;;  %v3884_v35 = vmin.f32 %v3384_v23, 255.0  ;;  %v3392_v36 = vmax.f32 %v7151_v24, 0.0  ;;  %v3394_v40 = vmax.f32 %v7153_v27, 0.0  ;;  %2014 = vmatprep.mubr.bf16.mxu1 %v7994_v38  ;;  %2297 = vmatprep.mubr.bf16.mxu0 %v7994_v38 }
 0x2c1   : > { %v3891_v42 = vmin.f32 %v3391_v30, 255.0  ;;  %v3893_v43 = vmin.f32 %v3393_v31, 255.0 }
 0x2c2   : > { %v6677_v45 = vpack.c.bf16 %v3882_v33, %v3881_v28  ;;  %v6678_v46 = vpack.c.bf16 %v3884_v35, %v3883_v29  ;;  %v3892_v47 = vmin.f32 %v3392_v36, 255.0  ;;  %v3894_v49 = vmin.f32 %v3394_v40, 255.0  ;;  %v1430_v50 = vpop.f32.mrb[36].mxu1  ;;  %v1713_v51 = vpop.f32.mrb[136].mxu0 }
 0x2c3   : > { %v7160_v52 = vround.rtne.f32 %v1430_v50  ;;  %v7162_v56 = vround.rtne.f32 %v1713_v51  ;;  %v1432_v57 = vpop.f32.mrb[37].mxu1  ;;  %v1715_v58 = vpop.f32.mrb[137].mxu0 }
 0x2c4   : > { %5801 = vst [vmem:[%s8841_s12 + $0x280] sm:$0xff] %v6677_v45  ;;  %5802 = vst [vmem:[%s8841_s12 + $0x288] sm:$0xff] %v6678_v46  ;;  %v6682_v60 = vpack.c.bf16 %v3892_v47, %v3891_v42  ;;  %v6683_v62 = vpack.c.bf16 %v3894_v49, %v3893_v43  ;;  %v7161_v63 = vround.rtne.f32 %v1432_v57  ;;  %v7163_v0 = vround.rtne.f32 %v1715_v58  ;;  %v1434_v1 = vpop.f32.mrb[38].mxu1  ;;  %v1717_v3 = vpop.f32.mrb[138].mxu0 }
 0x2c5   : > { %v3401_v4 = vmax.f32 %v7160_v52, 0.0  ;;  %v3403_v9 = vmax.f32 %v7162_v56, 0.0  ;;  %v7170_v10 = vround.rtne.f32 %v1434_v1  ;;  %v7172_v13 = vround.rtne.f32 %v1717_v3  ;;  %v1436_v15 = vpop.f32.mrb[39].mxu1  ;;  %v1719_v16 = vpop.f32.mrb[139].mxu0 }
 0x2c6   : > { %5806 = vst [vmem:[%s8841_s12 + $0x2a8] sm:$0xff] %v6682_v60  ;;  %5807 = vst [vmem:[%s8841_s12 + $0x2b0] sm:$0xff] %v6683_v62  ;;  %v3402_v17 = vmax.f32 %v7161_v63, 0.0  ;;  %v3404_v18 = vmax.f32 %v7163_v0, 0.0  ;;  %v7171_v19 = vround.rtne.f32 %v1436_v15  ;;  %v7173_v23 = vround.rtne.f32 %v1719_v16 }
 0x2c7   : > { %v3901_v24 = vmin.f32 %v3401_v4, 255.0  ;;  %v3903_v27 = vmin.f32 %v3403_v9, 255.0  ;;  %v3411_v28 = vmax.f32 %v7170_v10, 0.0  ;;  %v3413_v29 = vmax.f32 %v7172_v13, 0.0  ;;  %6278 = vmatmul.mubr.msk.bf16.gmra.mrb[144].mxu1 %vm335_vm2, %v8679_v20  ;;  %6304 = vmatmul.mubr.msk.bf16.gmra.mrb[244].mxu0 %vm335_vm2, %v8679_v20 }
 0x2c8   : > { %v3902_v30 = vmin.f32 %v3402_v17, 255.0  ;;  %v3904_v31 = vmin.f32 %v3404_v18, 255.0  ;;  %v3412_v33 = vmax.f32 %v7171_v19, 0.0  ;;  %v3414_v35 = vmax.f32 %v7173_v23, 0.0  ;;  %2024 = vmatprep.mubr.bf16.mxu1 %v7994_v38  ;;  %2307 = vmatprep.mubr.bf16.mxu0 %v7994_v38 }
 0x2c9   : > { %v3911_v36 = vmin.f32 %v3411_v28, 255.0  ;;  %v3913_v40 = vmin.f32 %v3413_v29, 255.0 }
 0x2ca   : > { %v6687_v42 = vpack.c.bf16 %v3902_v30, %v3901_v24  ;;  %v6688_v43 = vpack.c.bf16 %v3904_v31, %v3903_v27  ;;  %v3912_v45 = vmin.f32 %v3412_v33, 255.0  ;;  %v3914_v46 = vmin.f32 %v3414_v35, 255.0  ;;  %v1440_v47 = vpop.f32.mrb[40].mxu1  ;;  %v1723_v49 = vpop.f32.mrb[140].mxu0 }
 0x2cb   : > { %v7180_v50 = vround.rtne.f32 %v1440_v47  ;;  %v7182_v51 = vround.rtne.f32 %v1723_v49  ;;  %v1442_v52 = vpop.f32.mrb[41].mxu1  ;;  %v1725_v56 = vpop.f32.mrb[141].mxu0 }
 0x2cc   : > { %5811 = vst [vmem:[%s8841_s12 + $0x2d0] sm:$0xff] %v6687_v42  ;;  %5812 = vst [vmem:[%s8841_s12 + $0x2d8] sm:$0xff] %v6688_v43  ;;  %v6692_v57 = vpack.c.bf16 %v3912_v45, %v3911_v36  ;;  %v6693_v58 = vpack.c.bf16 %v3914_v46, %v3913_v40  ;;  %v7181_v60 = vround.rtne.f32 %v1442_v52  ;;  %v7183_v62 = vround.rtne.f32 %v1725_v56  ;;  %v1444_v63 = vpop.f32.mrb[42].mxu1  ;;  %v1727_v0 = vpop.f32.mrb[142].mxu0 }
 0x2cd   : > { %v3421_v1 = vmax.f32 %v7180_v50, 0.0  ;;  %v3423_v3 = vmax.f32 %v7182_v51, 0.0  ;;  %v7190_v4 = vround.rtne.f32 %v1444_v63  ;;  %v7192_v9 = vround.rtne.f32 %v1727_v0  ;;  %v1446_v10 = vpop.f32.mrb[43].mxu1  ;;  %v1729_v13 = vpop.f32.mrb[143].mxu0 }
 0x2ce   : > { %5816 = vst [vmem:[%s8841_s12 + $0x2f8] sm:$0xff] %v6692_v57  ;;  %5817 = vst [vmem:[%s8841_s12 + $0x300] sm:$0xff] %v6693_v58  ;;  %v3422_v15 = vmax.f32 %v7181_v60, 0.0  ;;  %v3424_v16 = vmax.f32 %v7183_v62, 0.0  ;;  %v7191_v17 = vround.rtne.f32 %v1446_v10  ;;  %v7193_v18 = vround.rtne.f32 %v1729_v13 }
 0x2cf   : > { %v3921_v19 = vmin.f32 %v3421_v1, 255.0  ;;  %v3923_v23 = vmin.f32 %v3423_v3, 255.0  ;;  %v3431_v24 = vmax.f32 %v7190_v4, 0.0  ;;  %v3433_v27 = vmax.f32 %v7192_v9, 0.0  ;;  %6279 = vmatmul.mubr.msk.bf16.gmra.mrb[148].mxu1 %vm335_vm2, %v8689_v34  ;;  %6305 = vmatmul.mubr.msk.bf16.gmra.mrb[248].mxu0 %vm335_vm2, %v8689_v34 }
 0x2d0   : > { %v3922_v28 = vmin.f32 %v3422_v15, 255.0  ;;  %v3924_v29 = vmin.f32 %v3424_v16, 255.0  ;;  %v3432_v30 = vmax.f32 %v7191_v17, 0.0  ;;  %v3434_v31 = vmax.f32 %v7193_v18, 0.0  ;;  %2034 = vmatprep.mubr.bf16.mxu1 %v7994_v38  ;;  %2317 = vmatprep.mubr.bf16.mxu0 %v7994_v38 }
 0x2d1   : > { %v3931_v33 = vmin.f32 %v3431_v24, 255.0  ;;  %v3933_v35 = vmin.f32 %v3433_v27, 255.0 }
 0x2d2   : > { %v6697_v36 = vpack.c.bf16 %v3922_v28, %v3921_v19  ;;  %v6698_v40 = vpack.c.bf16 %v3924_v29, %v3923_v23  ;;  %v3932_v42 = vmin.f32 %v3432_v30, 255.0  ;;  %v3934_v43 = vmin.f32 %v3434_v31, 255.0  ;;  %v1450_v45 = vpop.f32.mrb[44].mxu1  ;;  %v1733_v46 = vpop.f32.mrb[144].mxu0 }
 0x2d3   : > { %v7200_v47 = vround.rtne.f32 %v1450_v45  ;;  %v7202_v49 = vround.rtne.f32 %v1733_v46  ;;  %v1452_v50 = vpop.f32.mrb[45].mxu1  ;;  %v1735_v51 = vpop.f32.mrb[145].mxu0 }
 0x2d4   : > { %5821 = vst [vmem:[%s8841_s12 + $0x320] sm:$0xff] %v6697_v36  ;;  %5822 = vst [vmem:[%s8841_s12 + $0x328] sm:$0xff] %v6698_v40  ;;  %v6702_v52 = vpack.c.bf16 %v3932_v42, %v3931_v33  ;;  %v6703_v56 = vpack.c.bf16 %v3934_v43, %v3933_v35  ;;  %v7201_v57 = vround.rtne.f32 %v1452_v50  ;;  %v7203_v58 = vround.rtne.f32 %v1735_v51  ;;  %v1454_v60 = vpop.f32.mrb[46].mxu1  ;;  %v1737_v62 = vpop.f32.mrb[146].mxu0 }
 0x2d5   : > { %v3441_v63 = vmax.f32 %v7200_v47, 0.0  ;;  %v3443_v0 = vmax.f32 %v7202_v49, 0.0  ;;  %v7210_v1 = vround.rtne.f32 %v1454_v60  ;;  %v7212_v3 = vround.rtne.f32 %v1737_v62  ;;  %v1456_v4 = vpop.f32.mrb[47].mxu1  ;;  %v1739_v9 = vpop.f32.mrb[147].mxu0 }
 0x2d6   : > { %5826 = vst [vmem:[%s8841_s12 + $0x348] sm:$0xff] %v6702_v52  ;;  %5827 = vst [vmem:[%s8841_s12 + $0x350] sm:$0xff] %v6703_v56  ;;  %v3442_v10 = vmax.f32 %v7201_v57, 0.0  ;;  %v3444_v13 = vmax.f32 %v7203_v58, 0.0  ;;  %v7211_v15 = vround.rtne.f32 %v1456_v4  ;;  %v7213_v16 = vround.rtne.f32 %v1739_v9 }
 0x2d7   : > { %v3941_v17 = vmin.f32 %v3441_v63, 255.0  ;;  %v3943_v18 = vmin.f32 %v3443_v0, 255.0  ;;  %v3451_v19 = vmax.f32 %v7210_v1, 0.0  ;;  %v3453_v23 = vmax.f32 %v7212_v3, 0.0  ;;  %6280 = vmatmul.mubr.msk.bf16.gmra.mrb[152].mxu1 %vm335_vm2, %v8699_v48  ;;  %6306 = vmatmul.mubr.msk.bf16.gmra.mrb[252].mxu0 %vm335_vm2, %v8699_v48 }
 0x2d8   : > { %v3942_v24 = vmin.f32 %v3442_v10, 255.0  ;;  %v3944_v27 = vmin.f32 %v3444_v13, 255.0  ;;  %v3452_v28 = vmax.f32 %v7211_v15, 0.0  ;;  %v3454_v29 = vmax.f32 %v7213_v16, 0.0  ;;  %2044 = vmatprep.mubr.bf16.mxu1 %v7994_v38  ;;  %2327 = vmatprep.mubr.bf16.mxu0 %v7994_v38 }
 0x2d9   : > { %v3951_v30 = vmin.f32 %v3451_v19, 255.0  ;;  %v3953_v31 = vmin.f32 %v3453_v23, 255.0 }
 0x2da   : > { %v6707_v33 = vpack.c.bf16 %v3942_v24, %v3941_v17  ;;  %v6708_v35 = vpack.c.bf16 %v3944_v27, %v3943_v18  ;;  %v3952_v36 = vmin.f32 %v3452_v28, 255.0  ;;  %v3954_v40 = vmin.f32 %v3454_v29, 255.0  ;;  %v1460_v42 = vpop.f32.mrb[48].mxu1  ;;  %v1743_v43 = vpop.f32.mrb[148].mxu0 }
 0x2db   : > { %v7220_v45 = vround.rtne.f32 %v1460_v42  ;;  %v7222_v46 = vround.rtne.f32 %v1743_v43  ;;  %v1462_v47 = vpop.f32.mrb[49].mxu1  ;;  %v1745_v49 = vpop.f32.mrb[149].mxu0 }
 0x2dc   : > { %5831 = vst [vmem:[%s8841_s12 + $0x370] sm:$0xff] %v6707_v33  ;;  %5832 = vst [vmem:[%s8841_s12 + $0x378] sm:$0xff] %v6708_v35  ;;  %v6712_v50 = vpack.c.bf16 %v3952_v36, %v3951_v30  ;;  %v6713_v51 = vpack.c.bf16 %v3954_v40, %v3953_v31  ;;  %v7221_v52 = vround.rtne.f32 %v1462_v47  ;;  %v7223_v56 = vround.rtne.f32 %v1745_v49  ;;  %v1464_v57 = vpop.f32.mrb[50].mxu1  ;;  %v1747_v58 = vpop.f32.mrb[150].mxu0 }
 0x2dd   : > { %v3461_v60 = vmax.f32 %v7220_v45, 0.0  ;;  %v3463_v62 = vmax.f32 %v7222_v46, 0.0  ;;  %v7230_v63 = vround.rtne.f32 %v1464_v57  ;;  %v7232_v0 = vround.rtne.f32 %v1747_v58  ;;  %v1466_v1 = vpop.f32.mrb[51].mxu1  ;;  %v1749_v3 = vpop.f32.mrb[151].mxu0 }
 0x2de   : > { %5836 = vst [vmem:[%s8841_s12 + $0x398] sm:$0xff] %v6712_v50  ;;  %5837 = vst [vmem:[%s8841_s12 + $0x3a0] sm:$0xff] %v6713_v51  ;;  %v3462_v4 = vmax.f32 %v7221_v52, 0.0  ;;  %v3464_v9 = vmax.f32 %v7223_v56, 0.0  ;;  %v7231_v10 = vround.rtne.f32 %v1466_v1  ;;  %v7233_v13 = vround.rtne.f32 %v1749_v3 }
 0x2df   : > { %v3961_v15 = vmin.f32 %v3461_v60, 255.0  ;;  %v3963_v16 = vmin.f32 %v3463_v62, 255.0  ;;  %v3471_v17 = vmax.f32 %v7230_v63, 0.0  ;;  %v3473_v18 = vmax.f32 %v7232_v0, 0.0  ;;  %6281 = vmatmul.mubr.msk.bf16.gmra.mrb[156].mxu1 %vm335_vm2, %v8709_v61  ;;  %6307 = vmatmul.mubr.msk.bf16.gmra.mrb[0].mxu0 %vm335_vm2, %v8709_v61 }
 0x2e0   : > { %v3962_v19 = vmin.f32 %v3462_v4, 255.0  ;;  %v3964_v23 = vmin.f32 %v3464_v9, 255.0  ;;  %v3472_v24 = vmax.f32 %v7231_v10, 0.0  ;;  %v3474_v27 = vmax.f32 %v7233_v13, 0.0  ;;  %2054 = vmatprep.mubr.bf16.mxu1 %v7994_v38  ;;  %2337 = vmatprep.mubr.bf16.mxu0 %v7994_v38 }
 0x2e1   : > { %v3971_v28 = vmin.f32 %v3471_v17, 255.0  ;;  %v3973_v29 = vmin.f32 %v3473_v18, 255.0 }
 0x2e2   : > { %v6717_v30 = vpack.c.bf16 %v3962_v19, %v3961_v15  ;;  %v6718_v31 = vpack.c.bf16 %v3964_v23, %v3963_v16  ;;  %v3972_v33 = vmin.f32 %v3472_v24, 255.0  ;;  %v3974_v35 = vmin.f32 %v3474_v27, 255.0  ;;  %v1470_v36 = vpop.f32.mrb[52].mxu1  ;;  %v1753_v40 = vpop.f32.mrb[152].mxu0 }
 0x2e3   : > { %v7240_v42 = vround.rtne.f32 %v1470_v36  ;;  %v7242_v43 = vround.rtne.f32 %v1753_v40  ;;  %v1472_v45 = vpop.f32.mrb[53].mxu1  ;;  %v1755_v46 = vpop.f32.mrb[153].mxu0 }
 0x2e4   : > { %5841 = vst [vmem:[%s8841_s12 + $0x3c0] sm:$0xff] %v6717_v30  ;;  %5842 = vst [vmem:[%s8841_s12 + $0x3c8] sm:$0xff] %v6718_v31  ;;  %v6722_v47 = vpack.c.bf16 %v3972_v33, %v3971_v28  ;;  %v6723_v49 = vpack.c.bf16 %v3974_v35, %v3973_v29  ;;  %v7241_v50 = vround.rtne.f32 %v1472_v45  ;;  %v7243_v51 = vround.rtne.f32 %v1755_v46  ;;  %v1474_v52 = vpop.f32.mrb[54].mxu1  ;;  %v1757_v56 = vpop.f32.mrb[154].mxu0 }
 0x2e5   : > { %v3481_v57 = vmax.f32 %v7240_v42, 0.0  ;;  %v3483_v58 = vmax.f32 %v7242_v43, 0.0  ;;  %v7250_v60 = vround.rtne.f32 %v1474_v52  ;;  %v7252_v62 = vround.rtne.f32 %v1757_v56  ;;  %v1476_v63 = vpop.f32.mrb[55].mxu1  ;;  %v1759_v0 = vpop.f32.mrb[155].mxu0 }
 0x2e6   : > { %5846 = vst [vmem:[%s8841_s12 + $0x3e8] sm:$0xff] %v6722_v47  ;;  %5847 = vst [vmem:[%s8841_s12 + $0x3f0] sm:$0xff] %v6723_v49  ;;  %v3482_v1 = vmax.f32 %v7241_v50, 0.0  ;;  %v3484_v3 = vmax.f32 %v7243_v51, 0.0  ;;  %v7251_v4 = vround.rtne.f32 %v1476_v63  ;;  %v7253_v9 = vround.rtne.f32 %v1759_v0 }
 0x2e7   : > { %v3981_v10 = vmin.f32 %v3481_v57, 255.0  ;;  %v3983_v13 = vmin.f32 %v3483_v58, 255.0  ;;  %v3491_v15 = vmax.f32 %v7250_v60, 0.0  ;;  %v3493_v16 = vmax.f32 %v7252_v62, 0.0  ;;  %6282 = vmatmul.mubr.msk.bf16.gmra.mrb[160].mxu1 %vm335_vm2, %v8719_v11  ;;  %6308 = vmatmul.mubr.msk.bf16.gmra.mrb[4].mxu0 %vm335_vm2, %v8719_v11 }
 0x2e8   : > { %v3982_v17 = vmin.f32 %v3482_v1, 255.0  ;;  %v3984_v18 = vmin.f32 %v3484_v3, 255.0  ;;  %v3492_v19 = vmax.f32 %v7251_v4, 0.0  ;;  %v3494_v23 = vmax.f32 %v7253_v9, 0.0  ;;  %2064 = vmatprep.mubr.bf16.mxu1 %v7994_v38  ;;  %2347 = vmatprep.mubr.bf16.mxu0 %v7994_v38 }
 0x2e9   : > { %v3991_v24 = vmin.f32 %v3491_v15, 255.0  ;;  %v3993_v27 = vmin.f32 %v3493_v16, 255.0 }
 0x2ea   : > { %v6727_v28 = vpack.c.bf16 %v3982_v17, %v3981_v10  ;;  %v6728_v29 = vpack.c.bf16 %v3984_v18, %v3983_v13  ;;  %v3992_v30 = vmin.f32 %v3492_v19, 255.0  ;;  %v3994_v31 = vmin.f32 %v3494_v23, 255.0  ;;  %v1480_v33 = vpop.f32.mrb[56].mxu1  ;;  %v1763_v35 = vpop.f32.mrb[156].mxu0 }
 0x2eb   : > { %v7260_v36 = vround.rtne.f32 %v1480_v33  ;;  %v7262_v40 = vround.rtne.f32 %v1763_v35  ;;  %v1482_v42 = vpop.f32.mrb[57].mxu1  ;;  %v1765_v43 = vpop.f32.mrb[157].mxu0 }
 0x2ec   : > { %5851 = vst [vmem:[%s8841_s12 + $0x410] sm:$0xff] %v6727_v28  ;;  %5852 = vst [vmem:[%s8841_s12 + $0x418] sm:$0xff] %v6728_v29  ;;  %v6732_v45 = vpack.c.bf16 %v3992_v30, %v3991_v24  ;;  %v6733_v46 = vpack.c.bf16 %v3994_v31, %v3993_v27  ;;  %v7261_v47 = vround.rtne.f32 %v1482_v42  ;;  %v7263_v49 = vround.rtne.f32 %v1765_v43  ;;  %v1484_v50 = vpop.f32.mrb[58].mxu1  ;;  %v1767_v51 = vpop.f32.mrb[158].mxu0 }
 0x2ed   : > { %v3501_v52 = vmax.f32 %v7260_v36, 0.0  ;;  %v3503_v56 = vmax.f32 %v7262_v40, 0.0  ;;  %v7270_v57 = vround.rtne.f32 %v1484_v50  ;;  %v7272_v58 = vround.rtne.f32 %v1767_v51  ;;  %v1486_v60 = vpop.f32.mrb[59].mxu1  ;;  %v1769_v62 = vpop.f32.mrb[159].mxu0 }
 0x2ee   : > { %5856 = vst [vmem:[%s8841_s12 + $0x438] sm:$0xff] %v6732_v45  ;;  %5857 = vst [vmem:[%s8841_s12 + $0x440] sm:$0xff] %v6733_v46  ;;  %v3502_v63 = vmax.f32 %v7261_v47, 0.0  ;;  %v3504_v0 = vmax.f32 %v7263_v49, 0.0  ;;  %v7271_v1 = vround.rtne.f32 %v1486_v60  ;;  %v7273_v3 = vround.rtne.f32 %v1769_v62 }
 0x2ef   : > { %v4001_v4 = vmin.f32 %v3501_v52, 255.0  ;;  %v4003_v9 = vmin.f32 %v3503_v56, 255.0  ;;  %v3511_v10 = vmax.f32 %v7270_v57, 0.0  ;;  %v3513_v13 = vmax.f32 %v7272_v58, 0.0  ;;  %6283 = vmatmul.mubr.msk.bf16.gmra.mrb[164].mxu1 %vm335_vm2, %v8729_v25  ;;  %6309 = vmatmul.mubr.msk.bf16.gmra.mrb[8].mxu0 %vm335_vm2, %v8729_v25 }
 0x2f0   : > { %v4002_v15 = vmin.f32 %v3502_v63, 255.0  ;;  %v4004_v16 = vmin.f32 %v3504_v0, 255.0  ;;  %v3512_v17 = vmax.f32 %v7271_v1, 0.0  ;;  %v3514_v18 = vmax.f32 %v7273_v3, 0.0  ;;  %2074 = vmatprep.mubr.bf16.mxu1 %v7994_v38  ;;  %2357 = vmatprep.mubr.bf16.mxu0 %v7994_v38 }
 0x2f1   : > { %v4011_v19 = vmin.f32 %v3511_v10, 255.0  ;;  %v4013_v23 = vmin.f32 %v3513_v13, 255.0 }
 0x2f2   : > { %v6737_v24 = vpack.c.bf16 %v4002_v15, %v4001_v4  ;;  %v6738_v27 = vpack.c.bf16 %v4004_v16, %v4003_v9  ;;  %v4012_v28 = vmin.f32 %v3512_v17, 255.0  ;;  %v4014_v29 = vmin.f32 %v3514_v18, 255.0  ;;  %v1490_v30 = vpop.f32.mrb[60].mxu1  ;;  %v1773_v31 = vpop.f32.mrb[160].mxu0 }
 0x2f3   : > { %v7280_v33 = vround.rtne.f32 %v1490_v30  ;;  %v7282_v35 = vround.rtne.f32 %v1773_v31  ;;  %v1492_v36 = vpop.f32.mrb[61].mxu1  ;;  %v1775_v40 = vpop.f32.mrb[161].mxu0 }
 0x2f4   : > { %5861 = vst [vmem:[%s8841_s12 + $0x460] sm:$0xff] %v6737_v24  ;;  %5862 = vst [vmem:[%s8841_s12 + $0x468] sm:$0xff] %v6738_v27  ;;  %v6742_v42 = vpack.c.bf16 %v4012_v28, %v4011_v19  ;;  %v6743_v43 = vpack.c.bf16 %v4014_v29, %v4013_v23  ;;  %v7281_v45 = vround.rtne.f32 %v1492_v36  ;;  %v7283_v46 = vround.rtne.f32 %v1775_v40  ;;  %v1494_v47 = vpop.f32.mrb[62].mxu1  ;;  %v1777_v49 = vpop.f32.mrb[162].mxu0 }
 0x2f5   : > { %v3521_v50 = vmax.f32 %v7280_v33, 0.0  ;;  %v3523_v51 = vmax.f32 %v7282_v35, 0.0  ;;  %v7290_v52 = vround.rtne.f32 %v1494_v47  ;;  %v7292_v56 = vround.rtne.f32 %v1777_v49  ;;  %v1496_v57 = vpop.f32.mrb[63].mxu1  ;;  %v1779_v58 = vpop.f32.mrb[163].mxu0 }
 0x2f6   : > { %5866 = vst [vmem:[%s8841_s12 + $0x488] sm:$0xff] %v6742_v42  ;;  %5867 = vst [vmem:[%s8841_s12 + $0x490] sm:$0xff] %v6743_v43  ;;  %v3522_v60 = vmax.f32 %v7281_v45, 0.0  ;;  %v3524_v62 = vmax.f32 %v7283_v46, 0.0  ;;  %v7291_v63 = vround.rtne.f32 %v1496_v57  ;;  %v7293_v0 = vround.rtne.f32 %v1779_v58 }
 0x2f7   : > { %v4021_v1 = vmin.f32 %v3521_v50, 255.0  ;;  %v4023_v3 = vmin.f32 %v3523_v51, 255.0  ;;  %v3531_v4 = vmax.f32 %v7290_v52, 0.0  ;;  %v3533_v9 = vmax.f32 %v7292_v56, 0.0  ;;  %6284 = vmatmul.mubr.msk.bf16.gmra.mrb[168].mxu1 %vm335_vm2, %v8739_v41  ;;  %6310 = vmatmul.mubr.msk.bf16.gmra.mrb[12].mxu0 %vm335_vm2, %v8739_v41 }
 0x2f8   : > { %v4022_v10 = vmin.f32 %v3522_v60, 255.0  ;;  %v4024_v13 = vmin.f32 %v3524_v62, 255.0  ;;  %v3532_v15 = vmax.f32 %v7291_v63, 0.0  ;;  %v3534_v16 = vmax.f32 %v7293_v0, 0.0  ;;  %2084 = vmatprep.mubr.bf16.mxu1 %v7994_v38  ;;  %2367 = vmatprep.mubr.bf16.mxu0 %v7994_v38 }
 0x2f9   : > { %v4031_v17 = vmin.f32 %v3531_v4, 255.0  ;;  %v4033_v18 = vmin.f32 %v3533_v9, 255.0 }
 0x2fa   : > { %v6747_v19 = vpack.c.bf16 %v4022_v10, %v4021_v1  ;;  %v6748_v23 = vpack.c.bf16 %v4024_v13, %v4023_v3  ;;  %v4032_v24 = vmin.f32 %v3532_v15, 255.0  ;;  %v4034_v27 = vmin.f32 %v3534_v16, 255.0  ;;  %v1500_v28 = vpop.f32.mrb[64].mxu1  ;;  %v1783_v29 = vpop.f32.mrb[164].mxu0 }
 0x2fb   : > { %v7300_v30 = vround.rtne.f32 %v1500_v28  ;;  %v7302_v31 = vround.rtne.f32 %v1783_v29  ;;  %v1502_v33 = vpop.f32.mrb[65].mxu1  ;;  %v1785_v35 = vpop.f32.mrb[165].mxu0 }
 0x2fc   : > { %5871 = vst [vmem:[%s8841_s12 + $0x4b0] sm:$0xff] %v6747_v19  ;;  %5872 = vst [vmem:[%s8841_s12 + $0x4b8] sm:$0xff] %v6748_v23  ;;  %v6752_v36 = vpack.c.bf16 %v4032_v24, %v4031_v17  ;;  %v6753_v40 = vpack.c.bf16 %v4034_v27, %v4033_v18  ;;  %v7301_v42 = vround.rtne.f32 %v1502_v33  ;;  %v7303_v43 = vround.rtne.f32 %v1785_v35  ;;  %v1504_v45 = vpop.f32.mrb[66].mxu1  ;;  %v1787_v46 = vpop.f32.mrb[166].mxu0 }
 0x2fd   : > { %v3541_v47 = vmax.f32 %v7300_v30, 0.0  ;;  %v3543_v49 = vmax.f32 %v7302_v31, 0.0  ;;  %v7310_v50 = vround.rtne.f32 %v1504_v45  ;;  %v7312_v51 = vround.rtne.f32 %v1787_v46  ;;  %v1506_v52 = vpop.f32.mrb[67].mxu1  ;;  %v1789_v56 = vpop.f32.mrb[167].mxu0 }
 0x2fe   : > { %5876 = vst [vmem:[%s8841_s12 + $0x4d8] sm:$0xff] %v6752_v36  ;;  %5877 = vst [vmem:[%s8841_s12 + $0x4e0] sm:$0xff] %v6753_v40  ;;  %v3542_v57 = vmax.f32 %v7301_v42, 0.0  ;;  %v3544_v58 = vmax.f32 %v7303_v43, 0.0  ;;  %v7311_v60 = vround.rtne.f32 %v1506_v52  ;;  %v7313_v62 = vround.rtne.f32 %v1789_v56 }
 0x2ff   : > { %v4041_v63 = vmin.f32 %v3541_v47, 255.0  ;;  %v4043_v0 = vmin.f32 %v3543_v49, 255.0  ;;  %v3551_v1 = vmax.f32 %v7310_v50, 0.0  ;;  %v3553_v3 = vmax.f32 %v7312_v51, 0.0  ;;  %6285 = vmatmul.mubr.msk.bf16.gmra.mrb[172].mxu1 %vm335_vm2, %v8749_v54  ;;  %6311 = vmatmul.mubr.msk.bf16.gmra.mrb[16].mxu0 %vm335_vm2, %v8749_v54 }
 0x300   : > { %v4042_v4 = vmin.f32 %v3542_v57, 255.0  ;;  %v4044_v9 = vmin.f32 %v3544_v58, 255.0  ;;  %v3552_v10 = vmax.f32 %v7311_v60, 0.0  ;;  %v3554_v13 = vmax.f32 %v7313_v62, 0.0  ;;  %2094 = vmatprep.mubr.bf16.mxu1 %v7994_v38  ;;  %2377 = vmatprep.mubr.bf16.mxu0 %v7994_v38 }
 0x301   : > { %v4051_v15 = vmin.f32 %v3551_v1, 255.0  ;;  %v4053_v16 = vmin.f32 %v3553_v3, 255.0 }
 0x302   : > { %v6757_v17 = vpack.c.bf16 %v4042_v4, %v4041_v63  ;;  %v6758_v18 = vpack.c.bf16 %v4044_v9, %v4043_v0  ;;  %v4052_v19 = vmin.f32 %v3552_v10, 255.0  ;;  %v4054_v23 = vmin.f32 %v3554_v13, 255.0  ;;  %v1510_v24 = vpop.f32.mrb[68].mxu1  ;;  %v1793_v27 = vpop.f32.mrb[168].mxu0 }
 0x303   : > { %v7320_v28 = vround.rtne.f32 %v1510_v24  ;;  %v7322_v29 = vround.rtne.f32 %v1793_v27  ;;  %v1512_v30 = vpop.f32.mrb[69].mxu1  ;;  %v1795_v31 = vpop.f32.mrb[169].mxu0 }
 0x304   : > { %5881 = vst [vmem:[%s8841_s12 + $0x500] sm:$0xff] %v6757_v17  ;;  %5882 = vst [vmem:[%s8841_s12 + $0x508] sm:$0xff] %v6758_v18  ;;  %v6762_v33 = vpack.c.bf16 %v4052_v19, %v4051_v15  ;;  %v6763_v35 = vpack.c.bf16 %v4054_v23, %v4053_v16  ;;  %v7321_v36 = vround.rtne.f32 %v1512_v30  ;;  %v7323_v40 = vround.rtne.f32 %v1795_v31  ;;  %v1514_v42 = vpop.f32.mrb[70].mxu1  ;;  %v1797_v43 = vpop.f32.mrb[170].mxu0 }
 0x305   : > { %v3561_v45 = vmax.f32 %v7320_v28, 0.0  ;;  %v3563_v46 = vmax.f32 %v7322_v29, 0.0  ;;  %v7330_v47 = vround.rtne.f32 %v1514_v42  ;;  %v7332_v49 = vround.rtne.f32 %v1797_v43  ;;  %v1516_v50 = vpop.f32.mrb[71].mxu1  ;;  %v1799_v51 = vpop.f32.mrb[171].mxu0 }
 0x306   : > { %5886 = vst [vmem:[%s8841_s12 + $0x528] sm:$0xff] %v6762_v33  ;;  %5887 = vst [vmem:[%s8841_s12 + $0x530] sm:$0xff] %v6763_v35  ;;  %v3562_v52 = vmax.f32 %v7321_v36, 0.0  ;;  %v3564_v56 = vmax.f32 %v7323_v40, 0.0  ;;  %v7331_v57 = vround.rtne.f32 %v1516_v50  ;;  %v7333_v58 = vround.rtne.f32 %v1799_v51 }
 0x307   : > { %v4061_v60 = vmin.f32 %v3561_v45, 255.0  ;;  %v4063_v62 = vmin.f32 %v3563_v46, 255.0  ;;  %v3571_v63 = vmax.f32 %v7330_v47, 0.0  ;;  %v3573_v0 = vmax.f32 %v7332_v49, 0.0  ;;  %6286 = vmatmul.mubr.msk.bf16.gmra.mrb[176].mxu1 %vm335_vm2, %v8759_v5  ;;  %6312 = vmatmul.mubr.msk.bf16.gmra.mrb[20].mxu0 %vm335_vm2, %v8759_v5 }
 0x308   : > { %v4062_v1 = vmin.f32 %v3562_v52, 255.0  ;;  %v4064_v3 = vmin.f32 %v3564_v56, 255.0  ;;  %v3572_v4 = vmax.f32 %v7331_v57, 0.0  ;;  %v3574_v9 = vmax.f32 %v7333_v58, 0.0  ;;  %2104 = vmatprep.mubr.bf16.mxu1 %v7994_v38  ;;  %2387 = vmatprep.mubr.bf16.mxu0 %v7994_v38 }
 0x309   : > { %v4071_v10 = vmin.f32 %v3571_v63, 255.0  ;;  %v4073_v13 = vmin.f32 %v3573_v0, 255.0 }
 0x30a   : > { %v6767_v15 = vpack.c.bf16 %v4062_v1, %v4061_v60  ;;  %v6768_v16 = vpack.c.bf16 %v4064_v3, %v4063_v62  ;;  %v4072_v17 = vmin.f32 %v3572_v4, 255.0  ;;  %v4074_v18 = vmin.f32 %v3574_v9, 255.0  ;;  %v1520_v19 = vpop.f32.mrb[72].mxu1  ;;  %v1803_v23 = vpop.f32.mrb[172].mxu0 }
 0x30b   : > { %v7340_v24 = vround.rtne.f32 %v1520_v19  ;;  %v7342_v27 = vround.rtne.f32 %v1803_v23  ;;  %v1522_v28 = vpop.f32.mrb[73].mxu1  ;;  %v1805_v29 = vpop.f32.mrb[173].mxu0 }
 0x30c   : > { %5891 = vst [vmem:[%s8841_s12 + $0x550] sm:$0xff] %v6767_v15  ;;  %5892 = vst [vmem:[%s8841_s12 + $0x558] sm:$0xff] %v6768_v16  ;;  %v6772_v30 = vpack.c.bf16 %v4072_v17, %v4071_v10  ;;  %v6773_v31 = vpack.c.bf16 %v4074_v18, %v4073_v13  ;;  %v7341_v33 = vround.rtne.f32 %v1522_v28  ;;  %v7343_v35 = vround.rtne.f32 %v1805_v29  ;;  %v1524_v36 = vpop.f32.mrb[74].mxu1  ;;  %v1807_v40 = vpop.f32.mrb[174].mxu0 }
 0x30d   : > { %v3581_v42 = vmax.f32 %v7340_v24, 0.0  ;;  %v3583_v43 = vmax.f32 %v7342_v27, 0.0  ;;  %v7350_v45 = vround.rtne.f32 %v1524_v36  ;;  %v7352_v46 = vround.rtne.f32 %v1807_v40  ;;  %v1526_v47 = vpop.f32.mrb[75].mxu1  ;;  %v1809_v49 = vpop.f32.mrb[175].mxu0 }
 0x30e   : > { %5896 = vst [vmem:[%s8841_s12 + $0x578] sm:$0xff] %v6772_v30  ;;  %5897 = vst [vmem:[%s8841_s12 + $0x580] sm:$0xff] %v6773_v31  ;;  %v3582_v50 = vmax.f32 %v7341_v33, 0.0  ;;  %v3584_v51 = vmax.f32 %v7343_v35, 0.0  ;;  %v7351_v52 = vround.rtne.f32 %v1526_v47  ;;  %v7353_v56 = vround.rtne.f32 %v1809_v49 }
 0x30f   : > { %v4081_v57 = vmin.f32 %v3581_v42, 255.0  ;;  %v4083_v58 = vmin.f32 %v3583_v43, 255.0  ;;  %v3591_v60 = vmax.f32 %v7350_v45, 0.0  ;;  %v3593_v62 = vmax.f32 %v7352_v46, 0.0  ;;  %6287 = vmatmul.mubr.msk.bf16.gmra.mrb[180].mxu1 %vm335_vm2, %v8769_v22  ;;  %6313 = vmatmul.mubr.msk.bf16.gmra.mrb[24].mxu0 %vm335_vm2, %v8769_v22 }
 0x310   : > { %v4082_v63 = vmin.f32 %v3582_v50, 255.0  ;;  %v4084_v0 = vmin.f32 %v3584_v51, 255.0  ;;  %v3592_v1 = vmax.f32 %v7351_v52, 0.0  ;;  %v3594_v3 = vmax.f32 %v7353_v56, 0.0  ;;  %2114 = vmatprep.mubr.bf16.mxu1 %v7994_v38  ;;  %2397 = vmatprep.mubr.bf16.mxu0 %v7994_v38 }
 0x311   : > { %v4091_v4 = vmin.f32 %v3591_v60, 255.0  ;;  %v4093_v9 = vmin.f32 %v3593_v62, 255.0 }
 0x312   : > { %v6777_v10 = vpack.c.bf16 %v4082_v63, %v4081_v57  ;;  %v6778_v13 = vpack.c.bf16 %v4084_v0, %v4083_v58  ;;  %v4092_v15 = vmin.f32 %v3592_v1, 255.0  ;;  %v4094_v16 = vmin.f32 %v3594_v3, 255.0  ;;  %v1530_v17 = vpop.f32.mrb[76].mxu1  ;;  %v1813_v18 = vpop.f32.mrb[176].mxu0 }
 0x313   : > { %v7360_v19 = vround.rtne.f32 %v1530_v17  ;;  %v7362_v23 = vround.rtne.f32 %v1813_v18  ;;  %v1532_v24 = vpop.f32.mrb[77].mxu1  ;;  %v1815_v27 = vpop.f32.mrb[177].mxu0 }
 0x314   : > { %5901 = vst [vmem:[%s8841_s12 + $0x5a0] sm:$0xff] %v6777_v10  ;;  %5902 = vst [vmem:[%s8841_s12 + $0x5a8] sm:$0xff] %v6778_v13  ;;  %v6782_v28 = vpack.c.bf16 %v4092_v15, %v4091_v4  ;;  %v6783_v29 = vpack.c.bf16 %v4094_v16, %v4093_v9  ;;  %v7361_v30 = vround.rtne.f32 %v1532_v24  ;;  %v7363_v31 = vround.rtne.f32 %v1815_v27  ;;  %v1534_v33 = vpop.f32.mrb[78].mxu1  ;;  %v1817_v35 = vpop.f32.mrb[178].mxu0 }
 0x315   : > { %v3601_v36 = vmax.f32 %v7360_v19, 0.0  ;;  %v3603_v40 = vmax.f32 %v7362_v23, 0.0  ;;  %v7370_v42 = vround.rtne.f32 %v1534_v33  ;;  %v7372_v43 = vround.rtne.f32 %v1817_v35  ;;  %v1536_v45 = vpop.f32.mrb[79].mxu1  ;;  %v1819_v46 = vpop.f32.mrb[179].mxu0 }
 0x316   : > { %5906 = vst [vmem:[%s8841_s12 + $0x5c8] sm:$0xff] %v6782_v28  ;;  %5907 = vst [vmem:[%s8841_s12 + $0x5d0] sm:$0xff] %v6783_v29  ;;  %v3602_v47 = vmax.f32 %v7361_v30, 0.0  ;;  %v3604_v49 = vmax.f32 %v7363_v31, 0.0  ;;  %v7371_v50 = vround.rtne.f32 %v1536_v45  ;;  %v7373_v51 = vround.rtne.f32 %v1819_v46 }
 0x317   : > { %v4101_v52 = vmin.f32 %v3601_v36, 255.0  ;;  %v4103_v56 = vmin.f32 %v3603_v40, 255.0  ;;  %v3611_v57 = vmax.f32 %v7370_v42, 0.0  ;;  %v3613_v58 = vmax.f32 %v7372_v43, 0.0  ;;  %6288 = vmatmul.mubr.msk.bf16.gmra.mrb[184].mxu1 %vm335_vm2, %v8779_v37  ;;  %6314 = vmatmul.mubr.msk.bf16.gmra.mrb[28].mxu0 %vm335_vm2, %v8779_v37 }
 0x318   : > { %v4102_v60 = vmin.f32 %v3602_v47, 255.0  ;;  %v4104_v62 = vmin.f32 %v3604_v49, 255.0  ;;  %v3612_v63 = vmax.f32 %v7371_v50, 0.0  ;;  %v3614_v0 = vmax.f32 %v7373_v51, 0.0  ;;  %2124 = vmatprep.mubr.bf16.mxu1 %v7994_v38  ;;  %2407 = vmatprep.mubr.bf16.mxu0 %v7994_v38 }
 0x319   : > { %v4111_v1 = vmin.f32 %v3611_v57, 255.0  ;;  %v4113_v3 = vmin.f32 %v3613_v58, 255.0 }
 0x31a   : > { %v6787_v4 = vpack.c.bf16 %v4102_v60, %v4101_v52  ;;  %v6788_v9 = vpack.c.bf16 %v4104_v62, %v4103_v56  ;;  %v4112_v10 = vmin.f32 %v3612_v63, 255.0  ;;  %v4114_v13 = vmin.f32 %v3614_v0, 255.0  ;;  %v1540_v15 = vpop.f32.mrb[80].mxu1  ;;  %v1823_v16 = vpop.f32.mrb[180].mxu0 }
 0x31b   : > { %v7380_v17 = vround.rtne.f32 %v1540_v15  ;;  %v7382_v18 = vround.rtne.f32 %v1823_v16  ;;  %v1542_v19 = vpop.f32.mrb[81].mxu1  ;;  %v1825_v23 = vpop.f32.mrb[181].mxu0 }
 0x31c   : > { %5911 = vst [vmem:[%s8841_s12 + $0x5f0] sm:$0xff] %v6787_v4  ;;  %5912 = vst [vmem:[%s8841_s12 + $0x5f8] sm:$0xff] %v6788_v9  ;;  %v6792_v24 = vpack.c.bf16 %v4112_v10, %v4111_v1  ;;  %v6793_v27 = vpack.c.bf16 %v4114_v13, %v4113_v3  ;;  %v7381_v28 = vround.rtne.f32 %v1542_v19  ;;  %v7383_v29 = vround.rtne.f32 %v1825_v23  ;;  %v1544_v30 = vpop.f32.mrb[82].mxu1  ;;  %v1827_v31 = vpop.f32.mrb[182].mxu0 }
 0x31d   : > { %v3621_v33 = vmax.f32 %v7380_v17, 0.0  ;;  %v3623_v35 = vmax.f32 %v7382_v18, 0.0  ;;  %v7390_v36 = vround.rtne.f32 %v1544_v30  ;;  %v7392_v40 = vround.rtne.f32 %v1827_v31  ;;  %v1546_v42 = vpop.f32.mrb[83].mxu1  ;;  %v1829_v43 = vpop.f32.mrb[183].mxu0 }
 0x31e   : > { %5916 = vst [vmem:[%s8841_s12 + $0x618] sm:$0xff] %v6792_v24  ;;  %5917 = vst [vmem:[%s8841_s12 + $0x620] sm:$0xff] %v6793_v27  ;;  %v3622_v45 = vmax.f32 %v7381_v28, 0.0  ;;  %v3624_v46 = vmax.f32 %v7383_v29, 0.0  ;;  %v7391_v47 = vround.rtne.f32 %v1546_v42  ;;  %v7393_v49 = vround.rtne.f32 %v1829_v43 }
 0x31f   : > { %v4121_v50 = vmin.f32 %v3621_v33, 255.0  ;;  %v4123_v51 = vmin.f32 %v3623_v35, 255.0  ;;  %v3631_v52 = vmax.f32 %v7390_v36, 0.0  ;;  %v3633_v56 = vmax.f32 %v7392_v40, 0.0  ;;  %6289 = vmatmul.mubr.msk.bf16.gmra.mrb[188].mxu1 %vm335_vm2, %v8789_v53  ;;  %6315 = vmatmul.mubr.msk.bf16.gmra.mrb[32].mxu0 %vm335_vm2, %v8789_v53 }
 0x320   : > { %v4122_v57 = vmin.f32 %v3622_v45, 255.0  ;;  %v4124_v58 = vmin.f32 %v3624_v46, 255.0  ;;  %v3632_v60 = vmax.f32 %v7391_v47, 0.0  ;;  %v3634_v62 = vmax.f32 %v7393_v49, 0.0  ;;  %2134 = vmatprep.mubr.bf16.mxu1 %v7994_v38  ;;  %2417 = vmatprep.mubr.bf16.mxu0 %v7994_v38 }
 0x321   : > { %v4131_v63 = vmin.f32 %v3631_v52, 255.0  ;;  %v4133_v0 = vmin.f32 %v3633_v56, 255.0 }
 0x322   : > { %v6797_v1 = vpack.c.bf16 %v4122_v57, %v4121_v50  ;;  %v6798_v3 = vpack.c.bf16 %v4124_v58, %v4123_v51  ;;  %v4132_v4 = vmin.f32 %v3632_v60, 255.0  ;;  %v4134_v9 = vmin.f32 %v3634_v62, 255.0  ;;  %v1550_v10 = vpop.f32.mrb[84].mxu1  ;;  %v1833_v13 = vpop.f32.mrb[184].mxu0 }
 0x323   : > { %v7400_v15 = vround.rtne.f32 %v1550_v10  ;;  %v7402_v16 = vround.rtne.f32 %v1833_v13  ;;  %v1552_v17 = vpop.f32.mrb[85].mxu1  ;;  %v1835_v18 = vpop.f32.mrb[185].mxu0 }
 0x324   : > { %5921 = vst [vmem:[%s8841_s12 + $0x640] sm:$0xff] %v6797_v1  ;;  %5922 = vst [vmem:[%s8841_s12 + $0x648] sm:$0xff] %v6798_v3  ;;  %v6802_v19 = vpack.c.bf16 %v4132_v4, %v4131_v63  ;;  %v6803_v23 = vpack.c.bf16 %v4134_v9, %v4133_v0  ;;  %v7401_v24 = vround.rtne.f32 %v1552_v17  ;;  %v7403_v27 = vround.rtne.f32 %v1835_v18  ;;  %v1554_v28 = vpop.f32.mrb[86].mxu1  ;;  %v1837_v29 = vpop.f32.mrb[186].mxu0 }
 0x325   : > { %v3641_v30 = vmax.f32 %v7400_v15, 0.0  ;;  %v3643_v31 = vmax.f32 %v7402_v16, 0.0  ;;  %v7410_v33 = vround.rtne.f32 %v1554_v28  ;;  %v7412_v35 = vround.rtne.f32 %v1837_v29  ;;  %v1556_v36 = vpop.f32.mrb[87].mxu1  ;;  %v1839_v40 = vpop.f32.mrb[187].mxu0 }
 0x326   : > { %5926 = vst [vmem:[%s8841_s12 + $0x668] sm:$0xff] %v6802_v19  ;;  %5927 = vst [vmem:[%s8841_s12 + $0x670] sm:$0xff] %v6803_v23  ;;  %v3642_v42 = vmax.f32 %v7401_v24, 0.0  ;;  %v3644_v43 = vmax.f32 %v7403_v27, 0.0  ;;  %v7411_v45 = vround.rtne.f32 %v1556_v36  ;;  %v7413_v46 = vround.rtne.f32 %v1839_v40 }
 0x327   : > { %v4141_v47 = vmin.f32 %v3641_v30, 255.0  ;;  %v4143_v49 = vmin.f32 %v3643_v31, 255.0  ;;  %v3651_v50 = vmax.f32 %v7410_v33, 0.0  ;;  %v3653_v51 = vmax.f32 %v7412_v35, 0.0  ;;  %6290 = vmatmul.mubr.msk.bf16.gmra.mrb[192].mxu1 %vm335_vm2, %v8799_v6  ;;  %6316 = vmatmul.mubr.msk.bf16.gmra.mrb[36].mxu0 %vm335_vm2, %v8799_v6 }
 0x328   : > { %v4142_v52 = vmin.f32 %v3642_v42, 255.0  ;;  %v4144_v56 = vmin.f32 %v3644_v43, 255.0  ;;  %v3652_v57 = vmax.f32 %v7411_v45, 0.0  ;;  %v3654_v58 = vmax.f32 %v7413_v46, 0.0  ;;  %2144 = vmatprep.mubr.bf16.mxu1 %v7994_v38  ;;  %2427 = vmatprep.mubr.bf16.mxu0 %v7994_v38 }
 0x329   : > { %v4151_v60 = vmin.f32 %v3651_v50, 255.0  ;;  %v4153_v62 = vmin.f32 %v3653_v51, 255.0 }
 0x32a   : > { %v6807_v63 = vpack.c.bf16 %v4142_v52, %v4141_v47  ;;  %v6808_v0 = vpack.c.bf16 %v4144_v56, %v4143_v49  ;;  %v4152_v1 = vmin.f32 %v3652_v57, 255.0  ;;  %v4154_v3 = vmin.f32 %v3654_v58, 255.0  ;;  %v1560_v4 = vpop.f32.mrb[88].mxu1  ;;  %v1843_v9 = vpop.f32.mrb[188].mxu0 }
 0x32b   : > { %v7420_v10 = vround.rtne.f32 %v1560_v4  ;;  %v7422_v13 = vround.rtne.f32 %v1843_v9  ;;  %v1562_v15 = vpop.f32.mrb[89].mxu1  ;;  %v1845_v16 = vpop.f32.mrb[189].mxu0 }
 0x32c   : > { %5931 = vst [vmem:[%s8841_s12 + $0x690] sm:$0xff] %v6807_v63  ;;  %5932 = vst [vmem:[%s8841_s12 + $0x698] sm:$0xff] %v6808_v0  ;;  %v6812_v17 = vpack.c.bf16 %v4152_v1, %v4151_v60  ;;  %v6813_v18 = vpack.c.bf16 %v4154_v3, %v4153_v62  ;;  %v7421_v19 = vround.rtne.f32 %v1562_v15  ;;  %v7423_v23 = vround.rtne.f32 %v1845_v16  ;;  %v1564_v24 = vpop.f32.mrb[90].mxu1  ;;  %v1847_v27 = vpop.f32.mrb[190].mxu0 }
 0x32d   : > { %v3661_v28 = vmax.f32 %v7420_v10, 0.0  ;;  %v3663_v29 = vmax.f32 %v7422_v13, 0.0  ;;  %v7430_v30 = vround.rtne.f32 %v1564_v24  ;;  %v7432_v31 = vround.rtne.f32 %v1847_v27  ;;  %v1566_v33 = vpop.f32.mrb[91].mxu1  ;;  %v1849_v35 = vpop.f32.mrb[191].mxu0 }
 0x32e   : > { %5936 = vst [vmem:[%s8841_s12 + $0x6b8] sm:$0xff] %v6812_v17  ;;  %5937 = vst [vmem:[%s8841_s12 + $0x6c0] sm:$0xff] %v6813_v18  ;;  %v3662_v36 = vmax.f32 %v7421_v19, 0.0  ;;  %v3664_v40 = vmax.f32 %v7423_v23, 0.0  ;;  %v7431_v42 = vround.rtne.f32 %v1566_v33  ;;  %v7433_v43 = vround.rtne.f32 %v1849_v35 }
 0x32f   : > { %v4161_v45 = vmin.f32 %v3661_v28, 255.0  ;;  %v4163_v46 = vmin.f32 %v3663_v29, 255.0  ;;  %v3671_v47 = vmax.f32 %v7430_v30, 0.0  ;;  %v3673_v49 = vmax.f32 %v7432_v31, 0.0  ;;  %6291 = vmatmul.mubr.msk.bf16.gmra.mrb[196].mxu1 %vm335_vm2, %v8807_v12  ;;  %6317 = vmatmul.mubr.msk.bf16.gmra.mrb[40].mxu0 %vm335_vm2, %v8807_v12 }
 0x330   : > { %v4162_v50 = vmin.f32 %v3662_v36, 255.0  ;;  %v4164_v51 = vmin.f32 %v3664_v40, 255.0  ;;  %v3672_v52 = vmax.f32 %v7431_v42, 0.0  ;;  %v3674_v56 = vmax.f32 %v7433_v43, 0.0  ;;  %2470 = vmatprep.mubr.bf16.mxu1 %v7994_v38 }
 0x331   : > { %v4171_v57 = vmin.f32 %v3671_v47, 255.0  ;;  %v4173_v58 = vmin.f32 %v3673_v49, 255.0 }
 0x332   : > { %v6817_v60 = vpack.c.bf16 %v4162_v50, %v4161_v45  ;;  %v6818_v62 = vpack.c.bf16 %v4164_v51, %v4163_v46  ;;  %v4172_v63 = vmin.f32 %v3672_v52, 255.0  ;;  %v4174_v0 = vmin.f32 %v3674_v56, 255.0  ;;  %v1570_v1 = vpop.f32.mrb[92].mxu1  ;;  %v1853_v3 = vpop.f32.mrb[192].mxu0 }
 0x333   : > { %v7440_v4 = vround.rtne.f32 %v1570_v1  ;;  %v7442_v9 = vround.rtne.f32 %v1853_v3  ;;  %v1572_v10 = vpop.f32.mrb[93].mxu1  ;;  %v1855_v13 = vpop.f32.mrb[193].mxu0 }
 0x334   : > { %5941 = vst [vmem:[%s8841_s12 + $0x6e0] sm:$0xff] %v6817_v60  ;;  %5942 = vst [vmem:[%s8841_s12 + $0x6e8] sm:$0xff] %v6818_v62  ;;  %v6822_v15 = vpack.c.bf16 %v4172_v63, %v4171_v57  ;;  %v6823_v16 = vpack.c.bf16 %v4174_v0, %v4173_v58  ;;  %v7441_v17 = vround.rtne.f32 %v1572_v10  ;;  %v7443_v18 = vround.rtne.f32 %v1855_v13  ;;  %v1574_v19 = vpop.f32.mrb[94].mxu1  ;;  %v1857_v23 = vpop.f32.mrb[194].mxu0 }
 0x335   : > { %v3681_v24 = vmax.f32 %v7440_v4, 0.0  ;;  %v3683_v27 = vmax.f32 %v7442_v9, 0.0  ;;  %v7450_v28 = vround.rtne.f32 %v1574_v19  ;;  %v7452_v29 = vround.rtne.f32 %v1857_v23  ;;  %v1576_v30 = vpop.f32.mrb[95].mxu1  ;;  %v1859_v31 = vpop.f32.mrb[195].mxu0 }
 0x336   : > { %5946 = vst [vmem:[%s8841_s12 + $0x708] sm:$0xff] %v6822_v15  ;;  %5947 = vst [vmem:[%s8841_s12 + $0x710] sm:$0xff] %v6823_v16  ;;  %v3682_v33 = vmax.f32 %v7441_v17, 0.0  ;;  %v3684_v35 = vmax.f32 %v7443_v18, 0.0  ;;  %v7451_v36 = vround.rtne.f32 %v1576_v30  ;;  %v7453_v40 = vround.rtne.f32 %v1859_v31 }
 0x337   : > { %v4181_v42 = vmin.f32 %v3681_v24, 255.0  ;;  %v4183_v43 = vmin.f32 %v3683_v27, 255.0  ;;  %v3691_v45 = vmax.f32 %v7450_v28, 0.0  ;;  %v3693_v46 = vmax.f32 %v7452_v29, 0.0  ;;  %6319 = vmatmul.mubr.msk.bf16.vlgmr.msra.gmra.mrb[200].mxu1 %vm335_vm2, %v8565_v7 }
 0x338   : > { %v4182_v47 = vmin.f32 %v3682_v33, 255.0  ;;  %v4184_v49 = vmin.f32 %v3684_v35, 255.0  ;;  %v3692_v50 = vmax.f32 %v7451_v36, 0.0  ;;  %v3694_v51 = vmax.f32 %v7453_v40, 0.0  ;;  %2480 = vmatprep.mubr.bf16.mxu1 %v7994_v38 }
 0x339   : > { %v4191_v52 = vmin.f32 %v3691_v45, 255.0  ;;  %v4193_v56 = vmin.f32 %v3693_v46, 255.0 }
 0x33a   : > { %v6827_v57 = vpack.c.bf16 %v4182_v47, %v4181_v42  ;;  %v6828_v58 = vpack.c.bf16 %v4184_v49, %v4183_v43  ;;  %v4192_v60 = vmin.f32 %v3692_v50, 255.0  ;;  %v4194_v62 = vmin.f32 %v3694_v51, 255.0  ;;  %v1580_v63 = vpop.f32.mrb[96].mxu1  ;;  %v1863_v0 = vpop.f32.mrb[196].mxu0 }
 0x33b   : > { %v7460_v1 = vround.rtne.f32 %v1580_v63  ;;  %v7462_v3 = vround.rtne.f32 %v1863_v0  ;;  %v1582_v4 = vpop.f32.mrb[97].mxu1  ;;  %v1865_v7 = vpop.f32.mrb[197].mxu0 }
 0x33c   : > { %5951 = vst [vmem:[%s8841_s12 + $0x730] sm:$0xff] %v6827_v57  ;;  %5952 = vst [vmem:[%s8841_s12 + $0x738] sm:$0xff] %v6828_v58  ;;  %v6832_v9 = vpack.c.bf16 %v4192_v60, %v4191_v52  ;;  %v6833_v10 = vpack.c.bf16 %v4194_v62, %v4193_v56  ;;  %v7461_v13 = vround.rtne.f32 %v1582_v4  ;;  %v7463_v15 = vround.rtne.f32 %v1865_v7  ;;  %v1584_v16 = vpop.f32.mrb[98].mxu1  ;;  %v1867_v17 = vpop.f32.mrb[198].mxu0 }
 0x33d   : > { %v3701_v18 = vmax.f32 %v7460_v1, 0.0  ;;  %v3703_v19 = vmax.f32 %v7462_v3, 0.0  ;;  %v7470_v23 = vround.rtne.f32 %v1584_v16  ;;  %v7472_v24 = vround.rtne.f32 %v1867_v17  ;;  %v1586_v27 = vpop.f32.mrb[99].mxu1  ;;  %v1869_v28 = vpop.f32.mrb[199].mxu0 }
 0x33e   : > { %5956 = vst [vmem:[%s8841_s12 + $0x758] sm:$0xff] %v6832_v9  ;;  %5957 = vst [vmem:[%s8841_s12 + $0x760] sm:$0xff] %v6833_v10  ;;  %v3702_v29 = vmax.f32 %v7461_v13, 0.0  ;;  %v3704_v30 = vmax.f32 %v7463_v15, 0.0  ;;  %v7471_v31 = vround.rtne.f32 %v1586_v27  ;;  %v7473_v33 = vround.rtne.f32 %v1869_v28 }
 0x33f   : > { %v4201_v35 = vmin.f32 %v3701_v18, 255.0  ;;  %v4203_v36 = vmin.f32 %v3703_v19, 255.0  ;;  %v3711_v40 = vmax.f32 %v7470_v23, 0.0  ;;  %v3713_v42 = vmax.f32 %v7472_v24, 0.0  ;;  %6320 = vmatmul.mubr.msk.bf16.gmra.mrb[204].mxu1 %vm335_vm2, %v8577_v21 }
 0x340   : > { %v4202_v43 = vmin.f32 %v3702_v29, 255.0  ;;  %v4204_v45 = vmin.f32 %v3704_v30, 255.0  ;;  %v3712_v46 = vmax.f32 %v7471_v31, 0.0  ;;  %v3714_v47 = vmax.f32 %v7473_v33, 0.0  ;;  %2490 = vmatprep.mubr.bf16.mxu1 %v7994_v38 }
 0x341   : > { %v4211_v49 = vmin.f32 %v3711_v40, 255.0  ;;  %v4213_v50 = vmin.f32 %v3713_v42, 255.0 }
 0x342   : > { %v6837_v51 = vpack.c.bf16 %v4202_v43, %v4201_v35  ;;  %v6838_v52 = vpack.c.bf16 %v4204_v45, %v4203_v36  ;;  %v4212_v56 = vmin.f32 %v3712_v46, 255.0  ;;  %v4214_v57 = vmin.f32 %v3714_v47, 255.0  ;;  %v1906_v58 = vpop.f32.mrb[100].mxu1  ;;  %v2189_v60 = vpop.f32.mrb[200].mxu0 }
 0x343   : > { %v6984_v62 = vround.rtne.f32 %v1906_v58  ;;  %v6986_v63 = vround.rtne.f32 %v2189_v60  ;;  %v1908_v0 = vpop.f32.mrb[101].mxu1  ;;  %v2191_v21 = vpop.f32.mrb[201].mxu0 }
 0x344   : > { %5961 = vst [vmem:[%s8841_s12 + $0x780] sm:$0xff] %v6837_v51  ;;  %5962 = vst [vmem:[%s8841_s12 + $0x788] sm:$0xff] %v6838_v52  ;;  %v6842_v1 = vpack.c.bf16 %v4212_v56, %v4211_v49  ;;  %v6843_v3 = vpack.c.bf16 %v4214_v57, %v4213_v50  ;;  %v6985_v4 = vround.rtne.f32 %v1908_v0  ;;  %v6987_v7 = vround.rtne.f32 %v2191_v21  ;;  %v1910_v9 = vpop.f32.mrb[102].mxu1  ;;  %v2193_v10 = vpop.f32.mrb[202].mxu0 }
 0x345   : > { %v3225_v13 = vmax.f32 %v6984_v62, 0.0  ;;  %v3227_v15 = vmax.f32 %v6986_v63, 0.0  ;;  %v6994_v16 = vround.rtne.f32 %v1910_v9  ;;  %v6996_v17 = vround.rtne.f32 %v2193_v10  ;;  %v1912_v18 = vpop.f32.mrb[103].mxu1  ;;  %v2195_v19 = vpop.f32.mrb[203].mxu0 }
 0x346   : > { %5966 = vst [vmem:[%s8841_s12 + $0x7a8] sm:$0xff] %v6842_v1  ;;  %5967 = vst [vmem:[%s8841_s12 + $0x7b0] sm:$0xff] %v6843_v3  ;;  %v3226_v23 = vmax.f32 %v6985_v4, 0.0  ;;  %v3228_v24 = vmax.f32 %v6987_v7, 0.0  ;;  %v6995_v27 = vround.rtne.f32 %v1912_v18  ;;  %v6997_v28 = vround.rtne.f32 %v2195_v19 }
 0x347   : > { %v3725_v29 = vmin.f32 %v3225_v13, 255.0  ;;  %v3727_v30 = vmin.f32 %v3227_v15, 255.0  ;;  %v3235_v31 = vmax.f32 %v6994_v16, 0.0  ;;  %v3237_v33 = vmax.f32 %v6996_v17, 0.0  ;;  %6321 = vmatmul.mubr.msk.bf16.gmra.mrb[208].mxu1 %vm335_vm2, %v8587_v32 }
 0x348   : > { %v3726_v35 = vmin.f32 %v3226_v23, 255.0  ;;  %v3728_v36 = vmin.f32 %v3228_v24, 255.0  ;;  %v3236_v40 = vmax.f32 %v6995_v27, 0.0  ;;  %v3238_v42 = vmax.f32 %v6997_v28, 0.0  ;;  %2500 = vmatprep.mubr.bf16.mxu1 %v7994_v38 }
 0x349   : > { %v3735_v43 = vmin.f32 %v3235_v31, 255.0  ;;  %v3737_v45 = vmin.f32 %v3237_v33, 255.0 }
 0x34a   : > { %v6599_v46 = vpack.c.bf16 %v3726_v35, %v3725_v29  ;;  %v6600_v47 = vpack.c.bf16 %v3728_v36, %v3727_v30  ;;  %v3736_v49 = vmin.f32 %v3236_v40, 255.0  ;;  %v3738_v50 = vmin.f32 %v3238_v42, 255.0  ;;  %v1916_v51 = vpop.f32.mrb[104].mxu1  ;;  %v2199_v52 = vpop.f32.mrb[204].mxu0 }
 0x34b   : > { %v7004_v56 = vround.rtne.f32 %v1916_v51  ;;  %v7006_v57 = vround.rtne.f32 %v2199_v52  ;;  %v1918_v58 = vpop.f32.mrb[105].mxu1  ;;  %v2201_v32 = vpop.f32.mrb[205].mxu0 }
 0x34c   : > { %5723 = vst [vmem:[%s8841_s12 + $0x10] sm:$0xff] %v6599_v46  ;;  %5724 = vst [vmem:[%s8841_s12 + $0x18] sm:$0xff] %v6600_v47  ;;  %v6604_v60 = vpack.c.bf16 %v3736_v49, %v3735_v43  ;;  %v6605_v62 = vpack.c.bf16 %v3738_v50, %v3737_v45  ;;  %v7005_v63 = vround.rtne.f32 %v1918_v58  ;;  %v7007_v0 = vround.rtne.f32 %v2201_v32  ;;  %v1920_v21 = vpop.f32.mrb[106].mxu1  ;;  %v2203_v1 = vpop.f32.mrb[206].mxu0 }
 0x34d   : > { %v3245_v3 = vmax.f32 %v7004_v56, 0.0  ;;  %v3247_v4 = vmax.f32 %v7006_v57, 0.0  ;;  %v7014_v7 = vround.rtne.f32 %v1920_v21  ;;  %v7016_v9 = vround.rtne.f32 %v2203_v1  ;;  %v1922_v10 = vpop.f32.mrb[107].mxu1  ;;  %v2205_v13 = vpop.f32.mrb[207].mxu0 }
 0x34e   : > { %5728 = vst [vmem:[%s8841_s12 + $0x38] sm:$0xff] %v6604_v60  ;;  %5729 = vst [vmem:[%s8841_s12 + $0x40] sm:$0xff] %v6605_v62  ;;  %v3246_v15 = vmax.f32 %v7005_v63, 0.0  ;;  %v3248_v16 = vmax.f32 %v7007_v0, 0.0  ;;  %v7015_v17 = vround.rtne.f32 %v1922_v10  ;;  %v7017_v18 = vround.rtne.f32 %v2205_v13 }
 0x34f   : > { %v3745_v19 = vmin.f32 %v3245_v3, 255.0  ;;  %v3747_v23 = vmin.f32 %v3247_v4, 255.0  ;;  %v3255_v24 = vmax.f32 %v7014_v7, 0.0  ;;  %v3257_v27 = vmax.f32 %v7016_v9, 0.0  ;;  %6322 = vmatmul.mubr.msk.bf16.gmra.mrb[212].mxu1 %vm335_vm2, %v8597_v44 }
 0x350   : > { %v3746_v28 = vmin.f32 %v3246_v15, 255.0  ;;  %v3748_v29 = vmin.f32 %v3248_v16, 255.0  ;;  %v3256_v30 = vmax.f32 %v7015_v17, 0.0  ;;  %v3258_v31 = vmax.f32 %v7017_v18, 0.0  ;;  %2510 = vmatprep.mubr.bf16.mxu1 %v7994_v38 }
 0x351   : > { %v3755_v33 = vmin.f32 %v3255_v24, 255.0  ;;  %v3757_v35 = vmin.f32 %v3257_v27, 255.0 }
 0x352   : > { %v6609_v36 = vpack.c.bf16 %v3746_v28, %v3745_v19  ;;  %v6610_v40 = vpack.c.bf16 %v3748_v29, %v3747_v23  ;;  %v3756_v42 = vmin.f32 %v3256_v30, 255.0  ;;  %v3758_v43 = vmin.f32 %v3258_v31, 255.0  ;;  %v1926_v45 = vpop.f32.mrb[108].mxu1  ;;  %v2209_v46 = vpop.f32.mrb[208].mxu0 }
 0x353   : > { %v7024_v47 = vround.rtne.f32 %v1926_v45  ;;  %v7026_v49 = vround.rtne.f32 %v2209_v46  ;;  %v1928_v50 = vpop.f32.mrb[109].mxu1  ;;  %v2211_v44 = vpop.f32.mrb[209].mxu0 }
 0x354   : > { %5733 = vst [vmem:[%s8841_s12 + $0x60] sm:$0xff] %v6609_v36  ;;  %5734 = vst [vmem:[%s8841_s12 + $0x68] sm:$0xff] %v6610_v40  ;;  %v6614_v51 = vpack.c.bf16 %v3756_v42, %v3755_v33  ;;  %v6615_v52 = vpack.c.bf16 %v3758_v43, %v3757_v35  ;;  %v7025_v56 = vround.rtne.f32 %v1928_v50  ;;  %v7027_v57 = vround.rtne.f32 %v2211_v44  ;;  %v1930_v58 = vpop.f32.mrb[110].mxu1  ;;  %v2213_v32 = vpop.f32.mrb[210].mxu0 }
 0x355   : > { %v3265_v60 = vmax.f32 %v7024_v47, 0.0  ;;  %v3267_v62 = vmax.f32 %v7026_v49, 0.0  ;;  %v7034_v63 = vround.rtne.f32 %v1930_v58  ;;  %v7036_v0 = vround.rtne.f32 %v2213_v32  ;;  %v1932_v21 = vpop.f32.mrb[111].mxu1  ;;  %v2215_v1 = vpop.f32.mrb[211].mxu0 }
 0x356   : > { %5738 = vst [vmem:[%s8841_s12 + $0x88] sm:$0xff] %v6614_v51  ;;  %5739 = vst [vmem:[%s8841_s12 + $0x90] sm:$0xff] %v6615_v52  ;;  %v3266_v3 = vmax.f32 %v7025_v56, 0.0  ;;  %v3268_v4 = vmax.f32 %v7027_v57, 0.0  ;;  %v7035_v7 = vround.rtne.f32 %v1932_v21  ;;  %v7037_v9 = vround.rtne.f32 %v2215_v1 }
 0x357   : > { %v3765_v10 = vmin.f32 %v3265_v60, 255.0  ;;  %v3767_v13 = vmin.f32 %v3267_v62, 255.0  ;;  %v3275_v15 = vmax.f32 %v7034_v63, 0.0  ;;  %v3277_v16 = vmax.f32 %v7036_v0, 0.0  ;;  %6323 = vmatmul.mubr.msk.bf16.gmra.mrb[216].mxu1 %vm335_vm2, %v8607_v55 }
 0x358   : > { %v3766_v17 = vmin.f32 %v3266_v3, 255.0  ;;  %v3768_v18 = vmin.f32 %v3268_v4, 255.0  ;;  %v3276_v19 = vmax.f32 %v7035_v7, 0.0  ;;  %v3278_v23 = vmax.f32 %v7037_v9, 0.0  ;;  %2520 = vmatprep.mubr.bf16.mxu1 %v7994_v38 }
 0x359   : > { %v3775_v24 = vmin.f32 %v3275_v15, 255.0  ;;  %v3777_v27 = vmin.f32 %v3277_v16, 255.0 }
 0x35a   : > { %v6619_v28 = vpack.c.bf16 %v3766_v17, %v3765_v10  ;;  %v6620_v29 = vpack.c.bf16 %v3768_v18, %v3767_v13  ;;  %v3776_v30 = vmin.f32 %v3276_v19, 255.0  ;;  %v3778_v31 = vmin.f32 %v3278_v23, 255.0  ;;  %v1936_v33 = vpop.f32.mrb[112].mxu1  ;;  %v2219_v35 = vpop.f32.mrb[212].mxu0 }
 0x35b   : > { %v7044_v36 = vround.rtne.f32 %v1936_v33  ;;  %v7046_v40 = vround.rtne.f32 %v2219_v35  ;;  %v1938_v42 = vpop.f32.mrb[113].mxu1  ;;  %v2221_v55 = vpop.f32.mrb[213].mxu0 }
 0x35c   : > { %5743 = vst [vmem:[%s8841_s12 + $0xb0] sm:$0xff] %v6619_v28  ;;  %5744 = vst [vmem:[%s8841_s12 + $0xb8] sm:$0xff] %v6620_v29  ;;  %v6624_v43 = vpack.c.bf16 %v3776_v30, %v3775_v24  ;;  %v6625_v45 = vpack.c.bf16 %v3778_v31, %v3777_v27  ;;  %v7045_v46 = vround.rtne.f32 %v1938_v42  ;;  %v7047_v47 = vround.rtne.f32 %v2221_v55  ;;  %v1940_v49 = vpop.f32.mrb[114].mxu1  ;;  %v2223_v50 = vpop.f32.mrb[214].mxu0 }
 0x35d   : > { %v3285_v44 = vmax.f32 %v7044_v36, 0.0  ;;  %v3287_v51 = vmax.f32 %v7046_v40, 0.0  ;;  %v7054_v52 = vround.rtne.f32 %v1940_v49  ;;  %v7056_v56 = vround.rtne.f32 %v2223_v50  ;;  %v1942_v57 = vpop.f32.mrb[115].mxu1  ;;  %v2225_v58 = vpop.f32.mrb[215].mxu0 }
 0x35e   : > { %5748 = vst [vmem:[%s8841_s12 + $0xd8] sm:$0xff] %v6624_v43  ;;  %5749 = vst [vmem:[%s8841_s12 + $0xe0] sm:$0xff] %v6625_v45  ;;  %v3286_v32 = vmax.f32 %v7045_v46, 0.0  ;;  %v3288_v60 = vmax.f32 %v7047_v47, 0.0  ;;  %v7055_v62 = vround.rtne.f32 %v1942_v57  ;;  %v7057_v63 = vround.rtne.f32 %v2225_v58 }
 0x35f   : > { %v3785_v0 = vmin.f32 %v3285_v44, 255.0  ;;  %v3787_v21 = vmin.f32 %v3287_v51, 255.0  ;;  %v3295_v1 = vmax.f32 %v7054_v52, 0.0  ;;  %v3297_v3 = vmax.f32 %v7056_v56, 0.0  ;;  %6324 = vmatmul.mubr.msk.bf16.gmra.mrb[220].mxu1 %vm335_vm2, %v8617_v2 }
 0x360   : > { %v3786_v4 = vmin.f32 %v3286_v32, 255.0  ;;  %v3788_v7 = vmin.f32 %v3288_v60, 255.0  ;;  %v3296_v9 = vmax.f32 %v7055_v62, 0.0  ;;  %v3298_v10 = vmax.f32 %v7057_v63, 0.0  ;;  %2530 = vmatprep.mubr.bf16.mxu1 %v7994_v38 }
 0x361   : > { %v3795_v13 = vmin.f32 %v3295_v1, 255.0  ;;  %v3797_v15 = vmin.f32 %v3297_v3, 255.0 }
 0x362   : > { %v6629_v16 = vpack.c.bf16 %v3786_v4, %v3785_v0  ;;  %v6630_v17 = vpack.c.bf16 %v3788_v7, %v3787_v21  ;;  %v3796_v18 = vmin.f32 %v3296_v9, 255.0  ;;  %v3798_v19 = vmin.f32 %v3298_v10, 255.0  ;;  %v1946_v23 = vpop.f32.mrb[116].mxu1  ;;  %v2229_v24 = vpop.f32.mrb[216].mxu0 }
 0x363   : > { %v7064_v27 = vround.rtne.f32 %v1946_v23  ;;  %v7066_v28 = vround.rtne.f32 %v2229_v24  ;;  %v1948_v29 = vpop.f32.mrb[117].mxu1  ;;  %v2231_v2 = vpop.f32.mrb[217].mxu0 }
 0x364   : > { %5753 = vst [vmem:[%s8841_s12 + $0x100] sm:$0xff] %v6629_v16  ;;  %5754 = vst [vmem:[%s8841_s12 + $0x108] sm:$0xff] %v6630_v17  ;;  %v6634_v30 = vpack.c.bf16 %v3796_v18, %v3795_v13  ;;  %v6635_v31 = vpack.c.bf16 %v3798_v19, %v3797_v15  ;;  %v7065_v33 = vround.rtne.f32 %v1948_v29  ;;  %v7067_v35 = vround.rtne.f32 %v2231_v2  ;;  %v1950_v36 = vpop.f32.mrb[118].mxu1  ;;  %v2233_v40 = vpop.f32.mrb[218].mxu0 }
 0x365   : > { %v3305_v42 = vmax.f32 %v7064_v27, 0.0  ;;  %v3307_v55 = vmax.f32 %v7066_v28, 0.0  ;;  %v7074_v43 = vround.rtne.f32 %v1950_v36  ;;  %v7076_v45 = vround.rtne.f32 %v2233_v40  ;;  %v1952_v46 = vpop.f32.mrb[119].mxu1  ;;  %v2235_v47 = vpop.f32.mrb[219].mxu0 }
 0x366   : > { %5758 = vst [vmem:[%s8841_s12 + $0x128] sm:$0xff] %v6634_v30  ;;  %5759 = vst [vmem:[%s8841_s12 + $0x130] sm:$0xff] %v6635_v31  ;;  %v3306_v49 = vmax.f32 %v7065_v33, 0.0  ;;  %v3308_v50 = vmax.f32 %v7067_v35, 0.0  ;;  %v7075_v44 = vround.rtne.f32 %v1952_v46  ;;  %v7077_v51 = vround.rtne.f32 %v2235_v47 }
 0x367   : > { %v3805_v52 = vmin.f32 %v3305_v42, 255.0  ;;  %v3807_v56 = vmin.f32 %v3307_v55, 255.0  ;;  %v3315_v57 = vmax.f32 %v7074_v43, 0.0  ;;  %v3317_v58 = vmax.f32 %v7076_v45, 0.0  ;;  %6325 = vmatmul.mubr.msk.bf16.gmra.mrb[224].mxu1 %vm335_vm2, %v8627_v14 }
 0x368   : > { %v3806_v32 = vmin.f32 %v3306_v49, 255.0  ;;  %v3808_v60 = vmin.f32 %v3308_v50, 255.0  ;;  %v3316_v62 = vmax.f32 %v7075_v44, 0.0  ;;  %v3318_v63 = vmax.f32 %v7077_v51, 0.0  ;;  %2540 = vmatprep.mubr.bf16.mxu1 %v7994_v38 }
 0x369   : > { %v3815_v0 = vmin.f32 %v3315_v57, 255.0  ;;  %v3817_v21 = vmin.f32 %v3317_v58, 255.0 }
 0x36a   : > { %v6639_v1 = vpack.c.bf16 %v3806_v32, %v3805_v52  ;;  %v6640_v3 = vpack.c.bf16 %v3808_v60, %v3807_v56  ;;  %v3816_v4 = vmin.f32 %v3316_v62, 255.0  ;;  %v3818_v7 = vmin.f32 %v3318_v63, 255.0  ;;  %v1956_v9 = vpop.f32.mrb[120].mxu1  ;;  %v2239_v10 = vpop.f32.mrb[220].mxu0 }
 0x36b   : > { %v7084_v13 = vround.rtne.f32 %v1956_v9  ;;  %v7086_v15 = vround.rtne.f32 %v2239_v10  ;;  %v1958_v16 = vpop.f32.mrb[121].mxu1  ;;  %v2241_v14 = vpop.f32.mrb[221].mxu0 }
 0x36c   : > { %5763 = vst [vmem:[%s8841_s12 + $0x150] sm:$0xff] %v6639_v1  ;;  %5764 = vst [vmem:[%s8841_s12 + $0x158] sm:$0xff] %v6640_v3  ;;  %v6644_v17 = vpack.c.bf16 %v3816_v4, %v3815_v0  ;;  %v6645_v18 = vpack.c.bf16 %v3818_v7, %v3817_v21  ;;  %v7085_v19 = vround.rtne.f32 %v1958_v16  ;;  %v7087_v23 = vround.rtne.f32 %v2241_v14  ;;  %v1960_v24 = vpop.f32.mrb[122].mxu1  ;;  %v2243_v27 = vpop.f32.mrb[222].mxu0 }
 0x36d   : > { %v3325_v28 = vmax.f32 %v7084_v13, 0.0  ;;  %v3327_v29 = vmax.f32 %v7086_v15, 0.0  ;;  %v7094_v2 = vround.rtne.f32 %v1960_v24  ;;  %v7096_v30 = vround.rtne.f32 %v2243_v27  ;;  %v1962_v31 = vpop.f32.mrb[123].mxu1  ;;  %v2245_v33 = vpop.f32.mrb[223].mxu0 }
 0x36e   : > { %5768 = vst [vmem:[%s8841_s12 + $0x178] sm:$0xff] %v6644_v17  ;;  %5769 = vst [vmem:[%s8841_s12 + $0x180] sm:$0xff] %v6645_v18  ;;  %v3326_v35 = vmax.f32 %v7085_v19, 0.0  ;;  %v3328_v36 = vmax.f32 %v7087_v23, 0.0  ;;  %v7095_v40 = vround.rtne.f32 %v1962_v31  ;;  %v7097_v42 = vround.rtne.f32 %v2245_v33 }
 0x36f   : > { %v3825_v55 = vmin.f32 %v3325_v28, 255.0  ;;  %v3827_v43 = vmin.f32 %v3327_v29, 255.0  ;;  %v3335_v45 = vmax.f32 %v7094_v2, 0.0  ;;  %v3337_v46 = vmax.f32 %v7096_v30, 0.0  ;;  %6326 = vmatmul.mubr.msk.bf16.gmra.mrb[228].mxu1 %vm335_vm2, %v8637_v26 }
 0x370   : > { %v3826_v47 = vmin.f32 %v3326_v35, 255.0  ;;  %v3828_v49 = vmin.f32 %v3328_v36, 255.0  ;;  %v3336_v50 = vmax.f32 %v7095_v40, 0.0  ;;  %v3338_v44 = vmax.f32 %v7097_v42, 0.0  ;;  %2550 = vmatprep.mubr.bf16.mxu1 %v7994_v38 }
 0x371   : > { %v3835_v51 = vmin.f32 %v3335_v45, 255.0  ;;  %v3837_v52 = vmin.f32 %v3337_v46, 255.0 }
 0x372   : > { %v6649_v56 = vpack.c.bf16 %v3826_v47, %v3825_v55  ;;  %v6650_v57 = vpack.c.bf16 %v3828_v49, %v3827_v43  ;;  %v3836_v58 = vmin.f32 %v3336_v50, 255.0  ;;  %v3838_v32 = vmin.f32 %v3338_v44, 255.0  ;;  %v1966_v60 = vpop.f32.mrb[124].mxu1  ;;  %v2249_v62 = vpop.f32.mrb[224].mxu0 }
 0x373   : > { %v7104_v63 = vround.rtne.f32 %v1966_v60  ;;  %v7106_v0 = vround.rtne.f32 %v2249_v62  ;;  %v1968_v21 = vpop.f32.mrb[125].mxu1  ;;  %v2251_v26 = vpop.f32.mrb[225].mxu0 }
 0x374   : > { %5773 = vst [vmem:[%s8841_s12 + $0x1a0] sm:$0xff] %v6649_v56  ;;  %5774 = vst [vmem:[%s8841_s12 + $0x1a8] sm:$0xff] %v6650_v57  ;;  %v6654_v1 = vpack.c.bf16 %v3836_v58, %v3835_v51  ;;  %v6655_v3 = vpack.c.bf16 %v3838_v32, %v3837_v52  ;;  %v7105_v4 = vround.rtne.f32 %v1968_v21  ;;  %v7107_v7 = vround.rtne.f32 %v2251_v26  ;;  %v1970_v9 = vpop.f32.mrb[126].mxu1  ;;  %v2253_v10 = vpop.f32.mrb[226].mxu0 }
 0x375   : > { %v3345_v13 = vmax.f32 %v7104_v63, 0.0  ;;  %v3347_v15 = vmax.f32 %v7106_v0, 0.0  ;;  %v7114_v16 = vround.rtne.f32 %v1970_v9  ;;  %v7116_v14 = vround.rtne.f32 %v2253_v10  ;;  %v1972_v17 = vpop.f32.mrb[127].mxu1  ;;  %v2255_v18 = vpop.f32.mrb[227].mxu0 }
 0x376   : > { %5778 = vst [vmem:[%s8841_s12 + $0x1c8] sm:$0xff] %v6654_v1  ;;  %5779 = vst [vmem:[%s8841_s12 + $0x1d0] sm:$0xff] %v6655_v3  ;;  %v3346_v19 = vmax.f32 %v7105_v4, 0.0  ;;  %v3348_v23 = vmax.f32 %v7107_v7, 0.0  ;;  %v7115_v24 = vround.rtne.f32 %v1972_v17  ;;  %v7117_v27 = vround.rtne.f32 %v2255_v18 }
 0x377   : > { %v3845_v28 = vmin.f32 %v3345_v13, 255.0  ;;  %v3847_v29 = vmin.f32 %v3347_v15, 255.0  ;;  %v3355_v2 = vmax.f32 %v7114_v16, 0.0  ;;  %v3357_v30 = vmax.f32 %v7116_v14, 0.0  ;;  %6327 = vmatmul.mubr.msk.bf16.gmra.mrb[232].mxu1 %vm335_vm2, %v8647_v39 }
 0x378   : > { %v3846_v31 = vmin.f32 %v3346_v19, 255.0  ;;  %v3848_v33 = vmin.f32 %v3348_v23, 255.0  ;;  %v3356_v35 = vmax.f32 %v7115_v24, 0.0  ;;  %v3358_v36 = vmax.f32 %v7117_v27, 0.0  ;;  %2560 = vmatprep.mubr.bf16.mxu1 %v7994_v38 }
 0x379   : > { %v3855_v40 = vmin.f32 %v3355_v2, 255.0  ;;  %v3857_v42 = vmin.f32 %v3357_v30, 255.0 }
 0x37a   : > { %v6659_v55 = vpack.c.bf16 %v3846_v31, %v3845_v28  ;;  %v6660_v43 = vpack.c.bf16 %v3848_v33, %v3847_v29  ;;  %v3856_v45 = vmin.f32 %v3356_v35, 255.0  ;;  %v3858_v46 = vmin.f32 %v3358_v36, 255.0  ;;  %v1976_v47 = vpop.f32.mrb[128].mxu1  ;;  %v2259_v49 = vpop.f32.mrb[228].mxu0 }
 0x37b   : > { %v7124_v50 = vround.rtne.f32 %v1976_v47  ;;  %v7126_v44 = vround.rtne.f32 %v2259_v49  ;;  %v1978_v51 = vpop.f32.mrb[129].mxu1  ;;  %v2261_v39 = vpop.f32.mrb[229].mxu0 }
 0x37c   : > { %5783 = vst [vmem:[%s8841_s12 + $0x1f0] sm:$0xff] %v6659_v55  ;;  %5784 = vst [vmem:[%s8841_s12 + $0x1f8] sm:$0xff] %v6660_v43  ;;  %v6664_v52 = vpack.c.bf16 %v3856_v45, %v3855_v40  ;;  %v6665_v56 = vpack.c.bf16 %v3858_v46, %v3857_v42  ;;  %v7125_v57 = vround.rtne.f32 %v1978_v51  ;;  %v7127_v58 = vround.rtne.f32 %v2261_v39  ;;  %v1980_v32 = vpop.f32.mrb[130].mxu1  ;;  %v2263_v60 = vpop.f32.mrb[230].mxu0 }
 0x37d   : > { %v3365_v62 = vmax.f32 %v7124_v50, 0.0  ;;  %v3367_v63 = vmax.f32 %v7126_v44, 0.0  ;;  %v7134_v0 = vround.rtne.f32 %v1980_v32  ;;  %v7136_v21 = vround.rtne.f32 %v2263_v60  ;;  %v1982_v26 = vpop.f32.mrb[131].mxu1  ;;  %v2265_v1 = vpop.f32.mrb[231].mxu0 }
 0x37e   : > { %5788 = vst [vmem:[%s8841_s12 + $0x218] sm:$0xff] %v6664_v52  ;;  %5789 = vst [vmem:[%s8841_s12 + $0x220] sm:$0xff] %v6665_v56  ;;  %v3366_v3 = vmax.f32 %v7125_v57, 0.0  ;;  %v3368_v4 = vmax.f32 %v7127_v58, 0.0  ;;  %v7135_v7 = vround.rtne.f32 %v1982_v26  ;;  %v7137_v9 = vround.rtne.f32 %v2265_v1 }
 0x37f   : > { %v3865_v10 = vmin.f32 %v3365_v62, 255.0  ;;  %v3867_v13 = vmin.f32 %v3367_v63, 255.0  ;;  %v3375_v15 = vmax.f32 %v7134_v0, 0.0  ;;  %v3377_v16 = vmax.f32 %v7136_v21, 0.0  ;;  %6328 = vmatmul.mubr.msk.bf16.gmra.mrb[236].mxu1 %vm335_vm2, %v8659_v59 }
 0x380   : > { %v3866_v14 = vmin.f32 %v3366_v3, 255.0  ;;  %v3868_v17 = vmin.f32 %v3368_v4, 255.0  ;;  %v3376_v18 = vmax.f32 %v7135_v7, 0.0  ;;  %v3378_v19 = vmax.f32 %v7137_v9, 0.0  ;;  %2570 = vmatprep.mubr.bf16.mxu1 %v7994_v38 }
 0x381   : > { %v3875_v23 = vmin.f32 %v3375_v15, 255.0  ;;  %v3877_v24 = vmin.f32 %v3377_v16, 255.0 }
 0x382   : > { %v6669_v27 = vpack.c.bf16 %v3866_v14, %v3865_v10  ;;  %v6670_v28 = vpack.c.bf16 %v3868_v17, %v3867_v13  ;;  %v3876_v29 = vmin.f32 %v3376_v18, 255.0  ;;  %v3878_v2 = vmin.f32 %v3378_v19, 255.0  ;;  %v1986_v30 = vpop.f32.mrb[132].mxu1  ;;  %v2269_v31 = vpop.f32.mrb[232].mxu0 }
 0x383   : > { %v7144_v33 = vround.rtne.f32 %v1986_v30  ;;  %v7146_v35 = vround.rtne.f32 %v2269_v31  ;;  %v1988_v36 = vpop.f32.mrb[133].mxu1  ;;  %v2271_v59 = vpop.f32.mrb[233].mxu0 }
 0x384   : > { %5793 = vst [vmem:[%s8841_s12 + $0x240] sm:$0xff] %v6669_v27  ;;  %5794 = vst [vmem:[%s8841_s12 + $0x248] sm:$0xff] %v6670_v28  ;;  %v6674_v40 = vpack.c.bf16 %v3876_v29, %v3875_v23  ;;  %v6675_v42 = vpack.c.bf16 %v3878_v2, %v3877_v24  ;;  %v7145_v55 = vround.rtne.f32 %v1988_v36  ;;  %v7147_v43 = vround.rtne.f32 %v2271_v59  ;;  %v1990_v45 = vpop.f32.mrb[134].mxu1  ;;  %v2273_v46 = vpop.f32.mrb[234].mxu0 }
 0x385   : > { %v3385_v47 = vmax.f32 %v7144_v33, 0.0  ;;  %v3387_v49 = vmax.f32 %v7146_v35, 0.0  ;;  %v7154_v50 = vround.rtne.f32 %v1990_v45  ;;  %v7156_v44 = vround.rtne.f32 %v2273_v46  ;;  %v1992_v51 = vpop.f32.mrb[135].mxu1  ;;  %v2275_v39 = vpop.f32.mrb[235].mxu0 }
 0x386   : > { %5798 = vst [vmem:[%s8841_s12 + $0x268] sm:$0xff] %v6674_v40  ;;  %5799 = vst [vmem:[%s8841_s12 + $0x270] sm:$0xff] %v6675_v42  ;;  %v3386_v52 = vmax.f32 %v7145_v55, 0.0  ;;  %v3388_v56 = vmax.f32 %v7147_v43, 0.0  ;;  %v7155_v57 = vround.rtne.f32 %v1992_v51  ;;  %v7157_v58 = vround.rtne.f32 %v2275_v39 }
 0x387   : > { %v3885_v32 = vmin.f32 %v3385_v47, 255.0  ;;  %v3887_v60 = vmin.f32 %v3387_v49, 255.0  ;;  %v3395_v62 = vmax.f32 %v7154_v50, 0.0  ;;  %v3397_v63 = vmax.f32 %v7156_v44, 0.0  ;;  %6329 = vmatmul.mubr.msk.bf16.gmra.mrb[240].mxu1 %vm335_vm2, %v8669_v8 }
 0x388   : > { %v3886_v0 = vmin.f32 %v3386_v52, 255.0  ;;  %v3888_v21 = vmin.f32 %v3388_v56, 255.0  ;;  %v3396_v26 = vmax.f32 %v7155_v57, 0.0  ;;  %v3398_v1 = vmax.f32 %v7157_v58, 0.0  ;;  %2580 = vmatprep.mubr.bf16.mxu1 %v7994_v38 }
 0x389   : > { %v3895_v3 = vmin.f32 %v3395_v62, 255.0  ;;  %v3897_v4 = vmin.f32 %v3397_v63, 255.0 }
 0x38a   : > { %v6679_v7 = vpack.c.bf16 %v3886_v0, %v3885_v32  ;;  %v6680_v9 = vpack.c.bf16 %v3888_v21, %v3887_v60  ;;  %v3896_v10 = vmin.f32 %v3396_v26, 255.0  ;;  %v3898_v13 = vmin.f32 %v3398_v1, 255.0  ;;  %v1996_v15 = vpop.f32.mrb[136].mxu1  ;;  %v2279_v16 = vpop.f32.mrb[236].mxu0 }
 0x38b   : > { %v7164_v14 = vround.rtne.f32 %v1996_v15  ;;  %v7166_v17 = vround.rtne.f32 %v2279_v16  ;;  %v1998_v18 = vpop.f32.mrb[137].mxu1  ;;  %v2281_v8 = vpop.f32.mrb[237].mxu0 }
 0x38c   : > { %5803 = vst [vmem:[%s8841_s12 + $0x290] sm:$0xff] %v6679_v7  ;;  %5804 = vst [vmem:[%s8841_s12 + $0x298] sm:$0xff] %v6680_v9  ;;  %v6684_v19 = vpack.c.bf16 %v3896_v10, %v3895_v3  ;;  %v6685_v23 = vpack.c.bf16 %v3898_v13, %v3897_v4  ;;  %v7165_v24 = vround.rtne.f32 %v1998_v18  ;;  %v7167_v27 = vround.rtne.f32 %v2281_v8  ;;  %v2000_v28 = vpop.f32.mrb[138].mxu1  ;;  %v2283_v29 = vpop.f32.mrb[238].mxu0 }
 0x38d   : > { %v3405_v2 = vmax.f32 %v7164_v14, 0.0  ;;  %v3407_v30 = vmax.f32 %v7166_v17, 0.0  ;;  %v7174_v31 = vround.rtne.f32 %v2000_v28  ;;  %v7176_v33 = vround.rtne.f32 %v2283_v29  ;;  %v2002_v35 = vpop.f32.mrb[139].mxu1  ;;  %v2285_v36 = vpop.f32.mrb[239].mxu0 }
 0x38e   : > { %5808 = vst [vmem:[%s8841_s12 + $0x2b8] sm:$0xff] %v6684_v19  ;;  %5809 = vst [vmem:[%s8841_s12 + $0x2c0] sm:$0xff] %v6685_v23  ;;  %v3406_v59 = vmax.f32 %v7165_v24, 0.0  ;;  %v3408_v40 = vmax.f32 %v7167_v27, 0.0  ;;  %v7175_v42 = vround.rtne.f32 %v2002_v35  ;;  %v7177_v55 = vround.rtne.f32 %v2285_v36 }
 0x38f   : > { %v3905_v43 = vmin.f32 %v3405_v2, 255.0  ;;  %v3907_v45 = vmin.f32 %v3407_v30, 255.0  ;;  %v3415_v46 = vmax.f32 %v7174_v31, 0.0  ;;  %v3417_v47 = vmax.f32 %v7176_v33, 0.0  ;;  %6330 = vmatmul.mubr.msk.bf16.gmra.mrb[244].mxu1 %vm335_vm2, %v8679_v20 }
 0x390   : > { %v3906_v49 = vmin.f32 %v3406_v59, 255.0  ;;  %v3908_v50 = vmin.f32 %v3408_v40, 255.0  ;;  %v3416_v44 = vmax.f32 %v7175_v42, 0.0  ;;  %v3418_v51 = vmax.f32 %v7177_v55, 0.0  ;;  %2590 = vmatprep.mubr.bf16.mxu1 %v7994_v38 }
 0x391   : > { %v3915_v39 = vmin.f32 %v3415_v46, 255.0  ;;  %v3917_v52 = vmin.f32 %v3417_v47, 255.0 }
 0x392   : > { %v6689_v56 = vpack.c.bf16 %v3906_v49, %v3905_v43  ;;  %v6690_v57 = vpack.c.bf16 %v3908_v50, %v3907_v45  ;;  %v3916_v58 = vmin.f32 %v3416_v44, 255.0  ;;  %v3918_v32 = vmin.f32 %v3418_v51, 255.0  ;;  %v2006_v60 = vpop.f32.mrb[140].mxu1  ;;  %v2289_v62 = vpop.f32.mrb[240].mxu0 }
 0x393   : > { %v7184_v63 = vround.rtne.f32 %v2006_v60  ;;  %v7186_v0 = vround.rtne.f32 %v2289_v62  ;;  %v2008_v21 = vpop.f32.mrb[141].mxu1  ;;  %v2291_v20 = vpop.f32.mrb[241].mxu0 }
 0x394   : > { %5813 = vst [vmem:[%s8841_s12 + $0x2e0] sm:$0xff] %v6689_v56  ;;  %5814 = vst [vmem:[%s8841_s12 + $0x2e8] sm:$0xff] %v6690_v57  ;;  %v6694_v26 = vpack.c.bf16 %v3916_v58, %v3915_v39  ;;  %v6695_v1 = vpack.c.bf16 %v3918_v32, %v3917_v52  ;;  %v7185_v3 = vround.rtne.f32 %v2008_v21  ;;  %v7187_v4 = vround.rtne.f32 %v2291_v20  ;;  %v2010_v7 = vpop.f32.mrb[142].mxu1  ;;  %v2293_v9 = vpop.f32.mrb[242].mxu0 }
 0x395   : > { %v3425_v10 = vmax.f32 %v7184_v63, 0.0  ;;  %v3427_v13 = vmax.f32 %v7186_v0, 0.0  ;;  %v7194_v15 = vround.rtne.f32 %v2010_v7  ;;  %v7196_v16 = vround.rtne.f32 %v2293_v9  ;;  %v2012_v14 = vpop.f32.mrb[143].mxu1  ;;  %v2295_v17 = vpop.f32.mrb[243].mxu0 }
 0x396   : > { %5818 = vst [vmem:[%s8841_s12 + $0x308] sm:$0xff] %v6694_v26  ;;  %5819 = vst [vmem:[%s8841_s12 + $0x310] sm:$0xff] %v6695_v1  ;;  %v3426_v18 = vmax.f32 %v7185_v3, 0.0  ;;  %v3428_v8 = vmax.f32 %v7187_v4, 0.0  ;;  %v7195_v19 = vround.rtne.f32 %v2012_v14  ;;  %v7197_v23 = vround.rtne.f32 %v2295_v17 }
 0x397   : > { %v3925_v24 = vmin.f32 %v3425_v10, 255.0  ;;  %v3927_v27 = vmin.f32 %v3427_v13, 255.0  ;;  %v3435_v28 = vmax.f32 %v7194_v15, 0.0  ;;  %v3437_v29 = vmax.f32 %v7196_v16, 0.0  ;;  %6331 = vmatmul.mubr.msk.bf16.gmra.mrb[248].mxu1 %vm335_vm2, %v8689_v34 }
 0x398   : > { %v3926_v2 = vmin.f32 %v3426_v18, 255.0  ;;  %v3928_v30 = vmin.f32 %v3428_v8, 255.0  ;;  %v3436_v31 = vmax.f32 %v7195_v19, 0.0  ;;  %v3438_v33 = vmax.f32 %v7197_v23, 0.0  ;;  %2600 = vmatprep.mubr.bf16.mxu1 %v7994_v38 }
 0x399   : > { %v3935_v35 = vmin.f32 %v3435_v28, 255.0  ;;  %v3937_v36 = vmin.f32 %v3437_v29, 255.0 }
 0x39a   : > { %v6699_v59 = vpack.c.bf16 %v3926_v2, %v3925_v24  ;;  %v6700_v40 = vpack.c.bf16 %v3928_v30, %v3927_v27  ;;  %v3936_v42 = vmin.f32 %v3436_v31, 255.0  ;;  %v3938_v55 = vmin.f32 %v3438_v33, 255.0  ;;  %v2016_v43 = vpop.f32.mrb[144].mxu1  ;;  %v2299_v45 = vpop.f32.mrb[244].mxu0 }
 0x39b   : > { %v7204_v46 = vround.rtne.f32 %v2016_v43  ;;  %v7206_v47 = vround.rtne.f32 %v2299_v45  ;;  %v2018_v49 = vpop.f32.mrb[145].mxu1  ;;  %v2301_v34 = vpop.f32.mrb[245].mxu0 }
 0x39c   : > { %5823 = vst [vmem:[%s8841_s12 + $0x330] sm:$0xff] %v6699_v59  ;;  %5824 = vst [vmem:[%s8841_s12 + $0x338] sm:$0xff] %v6700_v40  ;;  %v6704_v50 = vpack.c.bf16 %v3936_v42, %v3935_v35  ;;  %v6705_v44 = vpack.c.bf16 %v3938_v55, %v3937_v36  ;;  %v7205_v51 = vround.rtne.f32 %v2018_v49  ;;  %v7207_v39 = vround.rtne.f32 %v2301_v34  ;;  %v2020_v52 = vpop.f32.mrb[146].mxu1  ;;  %v2303_v56 = vpop.f32.mrb[246].mxu0 }
 0x39d   : > { %v3445_v57 = vmax.f32 %v7204_v46, 0.0  ;;  %v3447_v58 = vmax.f32 %v7206_v47, 0.0  ;;  %v7214_v32 = vround.rtne.f32 %v2020_v52  ;;  %v7216_v60 = vround.rtne.f32 %v2303_v56  ;;  %v2022_v62 = vpop.f32.mrb[147].mxu1  ;;  %v2305_v63 = vpop.f32.mrb[247].mxu0 }
 0x39e   : > { %5828 = vst [vmem:[%s8841_s12 + $0x358] sm:$0xff] %v6704_v50  ;;  %5829 = vst [vmem:[%s8841_s12 + $0x360] sm:$0xff] %v6705_v44  ;;  %v3446_v0 = vmax.f32 %v7205_v51, 0.0  ;;  %v3448_v21 = vmax.f32 %v7207_v39, 0.0  ;;  %v7215_v20 = vround.rtne.f32 %v2022_v62  ;;  %v7217_v26 = vround.rtne.f32 %v2305_v63 }
 0x39f   : > { %v3945_v1 = vmin.f32 %v3445_v57, 255.0  ;;  %v3947_v3 = vmin.f32 %v3447_v58, 255.0  ;;  %v3455_v4 = vmax.f32 %v7214_v32, 0.0  ;;  %v3457_v7 = vmax.f32 %v7216_v60, 0.0  ;;  %6332 = vmatmul.mubr.msk.bf16.gmra.mrb[252].mxu1 %vm335_vm2, %v8699_v48 }
 0x3a0   : > { %v3946_v9 = vmin.f32 %v3446_v0, 255.0  ;;  %v3948_v10 = vmin.f32 %v3448_v21, 255.0  ;;  %v3456_v13 = vmax.f32 %v7215_v20, 0.0  ;;  %v3458_v15 = vmax.f32 %v7217_v26, 0.0  ;;  %2610 = vmatprep.mubr.bf16.mxu1 %v7994_v38 }
 0x3a1   : > { %v3955_v16 = vmin.f32 %v3455_v4, 255.0  ;;  %v3957_v14 = vmin.f32 %v3457_v7, 255.0 }
 0x3a2   : > { %v6709_v17 = vpack.c.bf16 %v3946_v9, %v3945_v1  ;;  %v6710_v18 = vpack.c.bf16 %v3948_v10, %v3947_v3  ;;  %v3956_v8 = vmin.f32 %v3456_v13, 255.0  ;;  %v3958_v19 = vmin.f32 %v3458_v15, 255.0  ;;  %v2026_v23 = vpop.f32.mrb[148].mxu1  ;;  %v2309_v24 = vpop.f32.mrb[248].mxu0 }
 0x3a3   : > { %v7224_v27 = vround.rtne.f32 %v2026_v23  ;;  %v7226_v28 = vround.rtne.f32 %v2309_v24  ;;  %v2028_v29 = vpop.f32.mrb[149].mxu1  ;;  %v2311_v48 = vpop.f32.mrb[249].mxu0 }
 0x3a4   : > { %5833 = vst [vmem:[%s8841_s12 + $0x380] sm:$0xff] %v6709_v17  ;;  %5834 = vst [vmem:[%s8841_s12 + $0x388] sm:$0xff] %v6710_v18  ;;  %v6714_v2 = vpack.c.bf16 %v3956_v8, %v3955_v16  ;;  %v6715_v30 = vpack.c.bf16 %v3958_v19, %v3957_v14  ;;  %v7225_v31 = vround.rtne.f32 %v2028_v29  ;;  %v7227_v33 = vround.rtne.f32 %v2311_v48  ;;  %v2030_v35 = vpop.f32.mrb[150].mxu1  ;;  %v2313_v36 = vpop.f32.mrb[250].mxu0 }
 0x3a5   : > { %v3465_v59 = vmax.f32 %v7224_v27, 0.0  ;;  %v3467_v40 = vmax.f32 %v7226_v28, 0.0  ;;  %v7234_v42 = vround.rtne.f32 %v2030_v35  ;;  %v7236_v55 = vround.rtne.f32 %v2313_v36  ;;  %v2032_v43 = vpop.f32.mrb[151].mxu1  ;;  %v2315_v45 = vpop.f32.mrb[251].mxu0 }
 0x3a6   : > { %5838 = vst [vmem:[%s8841_s12 + $0x3a8] sm:$0xff] %v6714_v2  ;;  %5839 = vst [vmem:[%s8841_s12 + $0x3b0] sm:$0xff] %v6715_v30  ;;  %v3466_v46 = vmax.f32 %v7225_v31, 0.0  ;;  %v3468_v47 = vmax.f32 %v7227_v33, 0.0  ;;  %v7235_v49 = vround.rtne.f32 %v2032_v43  ;;  %v7237_v34 = vround.rtne.f32 %v2315_v45 }
 0x3a7   : > { %v3965_v50 = vmin.f32 %v3465_v59, 255.0  ;;  %v3967_v44 = vmin.f32 %v3467_v40, 255.0  ;;  %v3475_v51 = vmax.f32 %v7234_v42, 0.0  ;;  %v3477_v39 = vmax.f32 %v7236_v55, 0.0  ;;  %6333 = vmatmul.mubr.msk.bf16.gmra.mrb[0].mxu1 %vm335_vm2, %v8709_v61 }
 0x3a8   : > { %v3966_v52 = vmin.f32 %v3466_v46, 255.0  ;;  %v3968_v56 = vmin.f32 %v3468_v47, 255.0  ;;  %v3476_v57 = vmax.f32 %v7235_v49, 0.0  ;;  %v3478_v58 = vmax.f32 %v7237_v34, 0.0  ;;  %2620 = vmatprep.mubr.bf16.mxu1 %v7994_v38 }
 0x3a9   : > { %v3975_v32 = vmin.f32 %v3475_v51, 255.0  ;;  %v3977_v60 = vmin.f32 %v3477_v39, 255.0 }
 0x3aa   : > { %v6719_v62 = vpack.c.bf16 %v3966_v52, %v3965_v50  ;;  %v6720_v63 = vpack.c.bf16 %v3968_v56, %v3967_v44  ;;  %v3976_v0 = vmin.f32 %v3476_v57, 255.0  ;;  %v3978_v21 = vmin.f32 %v3478_v58, 255.0  ;;  %v2036_v20 = vpop.f32.mrb[152].mxu1  ;;  %v2319_v26 = vpop.f32.mrb[252].mxu0 }
 0x3ab   : > { %v7244_v1 = vround.rtne.f32 %v2036_v20  ;;  %v7246_v3 = vround.rtne.f32 %v2319_v26  ;;  %v2038_v4 = vpop.f32.mrb[153].mxu1  ;;  %v2321_v61 = vpop.f32.mrb[253].mxu0 }
 0x3ac   : > { %5843 = vst [vmem:[%s8841_s12 + $0x3d0] sm:$0xff] %v6719_v62  ;;  %5844 = vst [vmem:[%s8841_s12 + $0x3d8] sm:$0xff] %v6720_v63  ;;  %v6724_v7 = vpack.c.bf16 %v3976_v0, %v3975_v32  ;;  %v6725_v9 = vpack.c.bf16 %v3978_v21, %v3977_v60  ;;  %v7245_v10 = vround.rtne.f32 %v2038_v4  ;;  %v7247_v13 = vround.rtne.f32 %v2321_v61  ;;  %v2040_v15 = vpop.f32.mrb[154].mxu1  ;;  %v2323_v16 = vpop.f32.mrb[254].mxu0 }
 0x3ad   : > { %v3485_v14 = vmax.f32 %v7244_v1, 0.0  ;;  %v3487_v17 = vmax.f32 %v7246_v3, 0.0  ;;  %v7254_v18 = vround.rtne.f32 %v2040_v15  ;;  %v7256_v8 = vround.rtne.f32 %v2323_v16  ;;  %v2042_v19 = vpop.f32.mrb[155].mxu1  ;;  %v2325_v23 = vpop.f32.mrb[255].mxu0 }
 0x3ae   : > { %5848 = vst [vmem:[%s8841_s12 + $0x3f8] sm:$0xff] %v6724_v7  ;;  %5849 = vst [vmem:[%s8841_s12 + $0x400] sm:$0xff] %v6725_v9  ;;  %v3486_v24 = vmax.f32 %v7245_v10, 0.0  ;;  %v3488_v27 = vmax.f32 %v7247_v13, 0.0  ;;  %v7255_v28 = vround.rtne.f32 %v2042_v19  ;;  %v7257_v29 = vround.rtne.f32 %v2325_v23 }
 0x3af   : > { %v3985_v48 = vmin.f32 %v3485_v14, 255.0  ;;  %v3987_v2 = vmin.f32 %v3487_v17, 255.0  ;;  %v3495_v30 = vmax.f32 %v7254_v18, 0.0  ;;  %v3497_v31 = vmax.f32 %v7256_v8, 0.0  ;;  %6334 = vmatmul.mubr.msk.bf16.gmra.mrb[4].mxu1 %vm335_vm2, %v8719_v11 }
 0x3b0   : > { %v3986_v33 = vmin.f32 %v3486_v24, 255.0  ;;  %v3988_v35 = vmin.f32 %v3488_v27, 255.0  ;;  %v3496_v36 = vmax.f32 %v7255_v28, 0.0  ;;  %v3498_v59 = vmax.f32 %v7257_v29, 0.0  ;;  %2630 = vmatprep.mubr.bf16.mxu1 %v7994_v38 }
 0x3b1   : > { %v3995_v40 = vmin.f32 %v3495_v30, 255.0  ;;  %v3997_v42 = vmin.f32 %v3497_v31, 255.0 }
 0x3b2   : > { %v6729_v55 = vpack.c.bf16 %v3986_v33, %v3985_v48  ;;  %v6730_v43 = vpack.c.bf16 %v3988_v35, %v3987_v2  ;;  %v3996_v45 = vmin.f32 %v3496_v36, 255.0  ;;  %v3998_v46 = vmin.f32 %v3498_v59, 255.0  ;;  %v2046_v47 = vpop.f32.mrb[156].mxu1  ;;  %v2329_v49 = vpop.f32.mrb[0].mxu0 }
 0x3b3   : > { %v7264_v34 = vround.rtne.f32 %v2046_v47  ;;  %v7266_v50 = vround.rtne.f32 %v2329_v49  ;;  %v2048_v44 = vpop.f32.mrb[157].mxu1  ;;  %v2331_v11 = vpop.f32.mrb[1].mxu0 }
 0x3b4   : > { %5853 = vst [vmem:[%s8841_s12 + $0x420] sm:$0xff] %v6729_v55  ;;  %5854 = vst [vmem:[%s8841_s12 + $0x428] sm:$0xff] %v6730_v43  ;;  %v6734_v51 = vpack.c.bf16 %v3996_v45, %v3995_v40  ;;  %v6735_v39 = vpack.c.bf16 %v3998_v46, %v3997_v42  ;;  %v7265_v52 = vround.rtne.f32 %v2048_v44  ;;  %v7267_v56 = vround.rtne.f32 %v2331_v11  ;;  %v2050_v57 = vpop.f32.mrb[158].mxu1  ;;  %v2333_v58 = vpop.f32.mrb[2].mxu0 }
 0x3b5   : > { %v3505_v32 = vmax.f32 %v7264_v34, 0.0  ;;  %v3507_v60 = vmax.f32 %v7266_v50, 0.0  ;;  %v7274_v62 = vround.rtne.f32 %v2050_v57  ;;  %v7276_v63 = vround.rtne.f32 %v2333_v58  ;;  %v2052_v0 = vpop.f32.mrb[159].mxu1  ;;  %v2335_v21 = vpop.f32.mrb[3].mxu0 }
 0x3b6   : > { %5858 = vst [vmem:[%s8841_s12 + $0x448] sm:$0xff] %v6734_v51  ;;  %5859 = vst [vmem:[%s8841_s12 + $0x450] sm:$0xff] %v6735_v39  ;;  %v3506_v20 = vmax.f32 %v7265_v52, 0.0  ;;  %v3508_v26 = vmax.f32 %v7267_v56, 0.0  ;;  %v7275_v1 = vround.rtne.f32 %v2052_v0  ;;  %v7277_v3 = vround.rtne.f32 %v2335_v21 }
 0x3b7   : > { %v4005_v4 = vmin.f32 %v3505_v32, 255.0  ;;  %v4007_v61 = vmin.f32 %v3507_v60, 255.0  ;;  %v3515_v7 = vmax.f32 %v7274_v62, 0.0  ;;  %v3517_v9 = vmax.f32 %v7276_v63, 0.0  ;;  %6335 = vmatmul.mubr.msk.bf16.gmra.mrb[8].mxu1 %vm335_vm2, %v8729_v25 }
 0x3b8   : > { %v4006_v10 = vmin.f32 %v3506_v20, 255.0  ;;  %v4008_v13 = vmin.f32 %v3508_v26, 255.0  ;;  %v3516_v15 = vmax.f32 %v7275_v1, 0.0  ;;  %v3518_v16 = vmax.f32 %v7277_v3, 0.0  ;;  %2640 = vmatprep.mubr.bf16.mxu1 %v7994_v38 }
 0x3b9   : > { %v4015_v14 = vmin.f32 %v3515_v7, 255.0  ;;  %v4017_v17 = vmin.f32 %v3517_v9, 255.0 }
 0x3ba   : > { %v6739_v18 = vpack.c.bf16 %v4006_v10, %v4005_v4  ;;  %v6740_v8 = vpack.c.bf16 %v4008_v13, %v4007_v61  ;;  %v4016_v19 = vmin.f32 %v3516_v15, 255.0  ;;  %v4018_v23 = vmin.f32 %v3518_v16, 255.0  ;;  %v2056_v24 = vpop.f32.mrb[160].mxu1  ;;  %v2339_v27 = vpop.f32.mrb[4].mxu0 }
 0x3bb   : > { %v7284_v28 = vround.rtne.f32 %v2056_v24  ;;  %v7286_v29 = vround.rtne.f32 %v2339_v27  ;;  %v2058_v48 = vpop.f32.mrb[161].mxu1  ;;  %v2341_v25 = vpop.f32.mrb[5].mxu0 }
 0x3bc   : > { %5863 = vst [vmem:[%s8841_s12 + $0x470] sm:$0xff] %v6739_v18  ;;  %5864 = vst [vmem:[%s8841_s12 + $0x478] sm:$0xff] %v6740_v8  ;;  %v6744_v2 = vpack.c.bf16 %v4016_v19, %v4015_v14  ;;  %v6745_v30 = vpack.c.bf16 %v4018_v23, %v4017_v17  ;;  %v7285_v31 = vround.rtne.f32 %v2058_v48  ;;  %v7287_v33 = vround.rtne.f32 %v2341_v25  ;;  %v2060_v35 = vpop.f32.mrb[162].mxu1  ;;  %v2343_v36 = vpop.f32.mrb[6].mxu0 }
 0x3bd   : > { %v3525_v59 = vmax.f32 %v7284_v28, 0.0  ;;  %v3527_v40 = vmax.f32 %v7286_v29, 0.0  ;;  %v7294_v42 = vround.rtne.f32 %v2060_v35  ;;  %v7296_v55 = vround.rtne.f32 %v2343_v36  ;;  %v2062_v43 = vpop.f32.mrb[163].mxu1  ;;  %v2345_v45 = vpop.f32.mrb[7].mxu0 }
 0x3be   : > { %5868 = vst [vmem:[%s8841_s12 + $0x498] sm:$0xff] %v6744_v2  ;;  %5869 = vst [vmem:[%s8841_s12 + $0x4a0] sm:$0xff] %v6745_v30  ;;  %v3526_v46 = vmax.f32 %v7285_v31, 0.0  ;;  %v3528_v47 = vmax.f32 %v7287_v33, 0.0  ;;  %v7295_v49 = vround.rtne.f32 %v2062_v43  ;;  %v7297_v34 = vround.rtne.f32 %v2345_v45 }
 0x3bf   : > { %v4025_v50 = vmin.f32 %v3525_v59, 255.0  ;;  %v4027_v44 = vmin.f32 %v3527_v40, 255.0  ;;  %v3535_v11 = vmax.f32 %v7294_v42, 0.0  ;;  %v3537_v51 = vmax.f32 %v7296_v55, 0.0  ;;  %6336 = vmatmul.mubr.msk.bf16.gmra.mrb[12].mxu1 %vm335_vm2, %v8739_v41 }
 0x3c0   : > { %v4026_v39 = vmin.f32 %v3526_v46, 255.0  ;;  %v4028_v52 = vmin.f32 %v3528_v47, 255.0  ;;  %v3536_v56 = vmax.f32 %v7295_v49, 0.0  ;;  %v3538_v57 = vmax.f32 %v7297_v34, 0.0  ;;  %2650 = vmatprep.mubr.bf16.mxu1 %v7994_v38 }
 0x3c1   : > { %v4035_v58 = vmin.f32 %v3535_v11, 255.0  ;;  %v4037_v32 = vmin.f32 %v3537_v51, 255.0 }
 0x3c2   : > { %v6749_v60 = vpack.c.bf16 %v4026_v39, %v4025_v50  ;;  %v6750_v62 = vpack.c.bf16 %v4028_v52, %v4027_v44  ;;  %v4036_v63 = vmin.f32 %v3536_v56, 255.0  ;;  %v4038_v0 = vmin.f32 %v3538_v57, 255.0  ;;  %v2066_v21 = vpop.f32.mrb[164].mxu1  ;;  %v2349_v20 = vpop.f32.mrb[8].mxu0 }
 0x3c3   : > { %v7304_v26 = vround.rtne.f32 %v2066_v21  ;;  %v7306_v1 = vround.rtne.f32 %v2349_v20  ;;  %v2068_v3 = vpop.f32.mrb[165].mxu1  ;;  %v2351_v41 = vpop.f32.mrb[9].mxu0 }
 0x3c4   : > { %5873 = vst [vmem:[%s8841_s12 + $0x4c0] sm:$0xff] %v6749_v60  ;;  %5874 = vst [vmem:[%s8841_s12 + $0x4c8] sm:$0xff] %v6750_v62  ;;  %v6754_v4 = vpack.c.bf16 %v4036_v63, %v4035_v58  ;;  %v6755_v61 = vpack.c.bf16 %v4038_v0, %v4037_v32  ;;  %v7305_v7 = vround.rtne.f32 %v2068_v3  ;;  %v7307_v9 = vround.rtne.f32 %v2351_v41  ;;  %v2070_v10 = vpop.f32.mrb[166].mxu1  ;;  %v2353_v13 = vpop.f32.mrb[10].mxu0 }
 0x3c5   : > { %v3545_v15 = vmax.f32 %v7304_v26, 0.0  ;;  %v3547_v16 = vmax.f32 %v7306_v1, 0.0  ;;  %v7314_v14 = vround.rtne.f32 %v2070_v10  ;;  %v7316_v17 = vround.rtne.f32 %v2353_v13  ;;  %v2072_v18 = vpop.f32.mrb[167].mxu1  ;;  %v2355_v8 = vpop.f32.mrb[11].mxu0 }
 0x3c6   : > { %5878 = vst [vmem:[%s8841_s12 + $0x4e8] sm:$0xff] %v6754_v4  ;;  %5879 = vst [vmem:[%s8841_s12 + $0x4f0] sm:$0xff] %v6755_v61  ;;  %v3546_v19 = vmax.f32 %v7305_v7, 0.0  ;;  %v3548_v23 = vmax.f32 %v7307_v9, 0.0  ;;  %v7315_v24 = vround.rtne.f32 %v2072_v18  ;;  %v7317_v27 = vround.rtne.f32 %v2355_v8 }
 0x3c7   : > { %v4045_v28 = vmin.f32 %v3545_v15, 255.0  ;;  %v4047_v29 = vmin.f32 %v3547_v16, 255.0  ;;  %v3555_v48 = vmax.f32 %v7314_v14, 0.0  ;;  %v3557_v25 = vmax.f32 %v7316_v17, 0.0  ;;  %6337 = vmatmul.mubr.msk.bf16.gmra.mrb[16].mxu1 %vm335_vm2, %v8749_v54 }
 0x3c8   : > { %v4046_v2 = vmin.f32 %v3546_v19, 255.0  ;;  %v4048_v30 = vmin.f32 %v3548_v23, 255.0  ;;  %v3556_v31 = vmax.f32 %v7315_v24, 0.0  ;;  %v3558_v33 = vmax.f32 %v7317_v27, 0.0  ;;  %2660 = vmatprep.mubr.bf16.mxu1 %v7994_v38 }
 0x3c9   : > { %v4055_v35 = vmin.f32 %v3555_v48, 255.0  ;;  %v4057_v36 = vmin.f32 %v3557_v25, 255.0 }
 0x3ca   : > { %v6759_v59 = vpack.c.bf16 %v4046_v2, %v4045_v28  ;;  %v6760_v40 = vpack.c.bf16 %v4048_v30, %v4047_v29  ;;  %v4056_v42 = vmin.f32 %v3556_v31, 255.0  ;;  %v4058_v55 = vmin.f32 %v3558_v33, 255.0  ;;  %v2076_v43 = vpop.f32.mrb[168].mxu1  ;;  %v2359_v45 = vpop.f32.mrb[12].mxu0 }
 0x3cb   : > { %v7324_v46 = vround.rtne.f32 %v2076_v43  ;;  %v7326_v47 = vround.rtne.f32 %v2359_v45  ;;  %v2078_v49 = vpop.f32.mrb[169].mxu1  ;;  %v2361_v54 = vpop.f32.mrb[13].mxu0 }
 0x3cc   : > { %5883 = vst [vmem:[%s8841_s12 + $0x510] sm:$0xff] %v6759_v59  ;;  %5884 = vst [vmem:[%s8841_s12 + $0x518] sm:$0xff] %v6760_v40  ;;  %v6764_v34 = vpack.c.bf16 %v4056_v42, %v4055_v35  ;;  %v6765_v50 = vpack.c.bf16 %v4058_v55, %v4057_v36  ;;  %v7325_v44 = vround.rtne.f32 %v2078_v49  ;;  %v7327_v11 = vround.rtne.f32 %v2361_v54  ;;  %v2080_v51 = vpop.f32.mrb[170].mxu1  ;;  %v2363_v39 = vpop.f32.mrb[14].mxu0 }
 0x3cd   : > { %v3565_v52 = vmax.f32 %v7324_v46, 0.0  ;;  %v3567_v56 = vmax.f32 %v7326_v47, 0.0  ;;  %v7334_v57 = vround.rtne.f32 %v2080_v51  ;;  %v7336_v58 = vround.rtne.f32 %v2363_v39  ;;  %v2082_v32 = vpop.f32.mrb[171].mxu1  ;;  %v2365_v60 = vpop.f32.mrb[15].mxu0 }
 0x3ce   : > { %5888 = vst [vmem:[%s8841_s12 + $0x538] sm:$0xff] %v6764_v34  ;;  %5889 = vst [vmem:[%s8841_s12 + $0x540] sm:$0xff] %v6765_v50  ;;  %v3566_v62 = vmax.f32 %v7325_v44, 0.0  ;;  %v3568_v63 = vmax.f32 %v7327_v11, 0.0  ;;  %v7335_v0 = vround.rtne.f32 %v2082_v32  ;;  %v7337_v21 = vround.rtne.f32 %v2365_v60 }
 0x3cf   : > { %v4065_v20 = vmin.f32 %v3565_v52, 255.0  ;;  %v4067_v26 = vmin.f32 %v3567_v56, 255.0  ;;  %v3575_v1 = vmax.f32 %v7334_v57, 0.0  ;;  %v3577_v3 = vmax.f32 %v7336_v58, 0.0  ;;  %6338 = vmatmul.mubr.msk.bf16.gmra.mrb[20].mxu1 %vm335_vm2, %v8759_v5 }
 0x3d0   : > { %v4066_v41 = vmin.f32 %v3566_v62, 255.0  ;;  %v4068_v4 = vmin.f32 %v3568_v63, 255.0  ;;  %v3576_v61 = vmax.f32 %v7335_v0, 0.0  ;;  %v3578_v7 = vmax.f32 %v7337_v21, 0.0  ;;  %2670 = vmatprep.mubr.bf16.mxu1 %v7994_v38 }
 0x3d1   : > { %v4075_v9 = vmin.f32 %v3575_v1, 255.0  ;;  %v4077_v10 = vmin.f32 %v3577_v3, 255.0 }
 0x3d2   : > { %v6769_v13 = vpack.c.bf16 %v4066_v41, %v4065_v20  ;;  %v6770_v15 = vpack.c.bf16 %v4068_v4, %v4067_v26  ;;  %v4076_v16 = vmin.f32 %v3576_v61, 255.0  ;;  %v4078_v14 = vmin.f32 %v3578_v7, 255.0  ;;  %v2086_v17 = vpop.f32.mrb[172].mxu1  ;;  %v2369_v18 = vpop.f32.mrb[16].mxu0 }
 0x3d3   : > { %v7344_v8 = vround.rtne.f32 %v2086_v17  ;;  %v7346_v19 = vround.rtne.f32 %v2369_v18  ;;  %v2088_v23 = vpop.f32.mrb[173].mxu1  ;;  %v2371_v5 = vpop.f32.mrb[17].mxu0 }
 0x3d4   : > { %5893 = vst [vmem:[%s8841_s12 + $0x560] sm:$0xff] %v6769_v13  ;;  %5894 = vst [vmem:[%s8841_s12 + $0x568] sm:$0xff] %v6770_v15  ;;  %v6774_v24 = vpack.c.bf16 %v4076_v16, %v4075_v9  ;;  %v6775_v27 = vpack.c.bf16 %v4078_v14, %v4077_v10  ;;  %v7345_v28 = vround.rtne.f32 %v2088_v23  ;;  %v7347_v29 = vround.rtne.f32 %v2371_v5  ;;  %v2090_v48 = vpop.f32.mrb[174].mxu1  ;;  %v2373_v25 = vpop.f32.mrb[18].mxu0 }
 0x3d5   : > { %v3585_v2 = vmax.f32 %v7344_v8, 0.0  ;;  %v3587_v30 = vmax.f32 %v7346_v19, 0.0  ;;  %v7354_v31 = vround.rtne.f32 %v2090_v48  ;;  %v7356_v33 = vround.rtne.f32 %v2373_v25  ;;  %v2092_v35 = vpop.f32.mrb[175].mxu1  ;;  %v2375_v36 = vpop.f32.mrb[19].mxu0 }
 0x3d6   : > { %5898 = vst [vmem:[%s8841_s12 + $0x588] sm:$0xff] %v6774_v24  ;;  %5899 = vst [vmem:[%s8841_s12 + $0x590] sm:$0xff] %v6775_v27  ;;  %v3586_v59 = vmax.f32 %v7345_v28, 0.0  ;;  %v3588_v40 = vmax.f32 %v7347_v29, 0.0  ;;  %v7355_v42 = vround.rtne.f32 %v2092_v35  ;;  %v7357_v55 = vround.rtne.f32 %v2375_v36 }
 0x3d7   : > { %v4085_v43 = vmin.f32 %v3585_v2, 255.0  ;;  %v4087_v45 = vmin.f32 %v3587_v30, 255.0  ;;  %v3595_v46 = vmax.f32 %v7354_v31, 0.0  ;;  %v3597_v47 = vmax.f32 %v7356_v33, 0.0  ;;  %6339 = vmatmul.mubr.msk.bf16.gmra.mrb[24].mxu1 %vm335_vm2, %v8769_v22 }
 0x3d8   : > { %v4086_v49 = vmin.f32 %v3586_v59, 255.0  ;;  %v4088_v54 = vmin.f32 %v3588_v40, 255.0  ;;  %v3596_v34 = vmax.f32 %v7355_v42, 0.0  ;;  %v3598_v50 = vmax.f32 %v7357_v55, 0.0  ;;  %2680 = vmatprep.mubr.bf16.mxu1 %v7994_v38 }
 0x3d9   : > { %v4095_v44 = vmin.f32 %v3595_v46, 255.0  ;;  %v4097_v11 = vmin.f32 %v3597_v47, 255.0 }
 0x3da   : > { %v6779_v51 = vpack.c.bf16 %v4086_v49, %v4085_v43  ;;  %v6780_v39 = vpack.c.bf16 %v4088_v54, %v4087_v45  ;;  %v4096_v52 = vmin.f32 %v3596_v34, 255.0  ;;  %v4098_v56 = vmin.f32 %v3598_v50, 255.0  ;;  %v2096_v57 = vpop.f32.mrb[176].mxu1  ;;  %v2379_v58 = vpop.f32.mrb[20].mxu0 }
 0x3db   : > { %v7364_v32 = vround.rtne.f32 %v2096_v57  ;;  %v7366_v60 = vround.rtne.f32 %v2379_v58  ;;  %v2098_v62 = vpop.f32.mrb[177].mxu1  ;;  %v2381_v22 = vpop.f32.mrb[21].mxu0 }
 0x3dc   : > { %5903 = vst [vmem:[%s8841_s12 + $0x5b0] sm:$0xff] %v6779_v51  ;;  %5904 = vst [vmem:[%s8841_s12 + $0x5b8] sm:$0xff] %v6780_v39  ;;  %v6784_v63 = vpack.c.bf16 %v4096_v52, %v4095_v44  ;;  %v6785_v0 = vpack.c.bf16 %v4098_v56, %v4097_v11  ;;  %v7365_v21 = vround.rtne.f32 %v2098_v62  ;;  %v7367_v20 = vround.rtne.f32 %v2381_v22  ;;  %v2100_v26 = vpop.f32.mrb[178].mxu1  ;;  %v2383_v1 = vpop.f32.mrb[22].mxu0 }
 0x3dd   : > { %v3605_v3 = vmax.f32 %v7364_v32, 0.0  ;;  %v3607_v41 = vmax.f32 %v7366_v60, 0.0  ;;  %v7374_v4 = vround.rtne.f32 %v2100_v26  ;;  %v7376_v61 = vround.rtne.f32 %v2383_v1  ;;  %v2102_v7 = vpop.f32.mrb[179].mxu1  ;;  %v2385_v9 = vpop.f32.mrb[23].mxu0 }
 0x3de   : > { %5908 = vst [vmem:[%s8841_s12 + $0x5d8] sm:$0xff] %v6784_v63  ;;  %5909 = vst [vmem:[%s8841_s12 + $0x5e0] sm:$0xff] %v6785_v0  ;;  %v3606_v10 = vmax.f32 %v7365_v21, 0.0  ;;  %v3608_v13 = vmax.f32 %v7367_v20, 0.0  ;;  %v7375_v15 = vround.rtne.f32 %v2102_v7  ;;  %v7377_v16 = vround.rtne.f32 %v2385_v9 }
 0x3df   : > { %v4105_v14 = vmin.f32 %v3605_v3, 255.0  ;;  %v4107_v17 = vmin.f32 %v3607_v41, 255.0  ;;  %v3615_v18 = vmax.f32 %v7374_v4, 0.0  ;;  %v3617_v8 = vmax.f32 %v7376_v61, 0.0  ;;  %6340 = vmatmul.mubr.msk.bf16.gmra.mrb[28].mxu1 %vm335_vm2, %v8779_v37 }
 0x3e0   : > { %v4106_v19 = vmin.f32 %v3606_v10, 255.0  ;;  %v4108_v23 = vmin.f32 %v3608_v13, 255.0  ;;  %v3616_v5 = vmax.f32 %v7375_v15, 0.0  ;;  %v3618_v24 = vmax.f32 %v7377_v16, 0.0  ;;  %2690 = vmatprep.mubr.bf16.mxu1 %v7994_v38 }
 0x3e1   : > { %v4115_v27 = vmin.f32 %v3615_v18, 255.0  ;;  %v4117_v28 = vmin.f32 %v3617_v8, 255.0 }
 0x3e2   : > { %v6789_v29 = vpack.c.bf16 %v4106_v19, %v4105_v14  ;;  %v6790_v48 = vpack.c.bf16 %v4108_v23, %v4107_v17  ;;  %v4116_v25 = vmin.f32 %v3616_v5, 255.0  ;;  %v4118_v2 = vmin.f32 %v3618_v24, 255.0  ;;  %v2106_v30 = vpop.f32.mrb[180].mxu1  ;;  %v2389_v31 = vpop.f32.mrb[24].mxu0 }
 0x3e3   : > { %v7384_v33 = vround.rtne.f32 %v2106_v30  ;;  %v7386_v35 = vround.rtne.f32 %v2389_v31  ;;  %v2108_v36 = vpop.f32.mrb[181].mxu1  ;;  %v2391_v37 = vpop.f32.mrb[25].mxu0 }
 0x3e4   : > { %5913 = vst [vmem:[%s8841_s12 + $0x600] sm:$0xff] %v6789_v29  ;;  %5914 = vst [vmem:[%s8841_s12 + $0x608] sm:$0xff] %v6790_v48  ;;  %v6794_v59 = vpack.c.bf16 %v4116_v25, %v4115_v27  ;;  %v6795_v40 = vpack.c.bf16 %v4118_v2, %v4117_v28  ;;  %v7385_v42 = vround.rtne.f32 %v2108_v36  ;;  %v7387_v55 = vround.rtne.f32 %v2391_v37  ;;  %v2110_v43 = vpop.f32.mrb[182].mxu1  ;;  %v2393_v45 = vpop.f32.mrb[26].mxu0 }
 0x3e5   : > { %v3625_v46 = vmax.f32 %v7384_v33, 0.0  ;;  %v3627_v47 = vmax.f32 %v7386_v35, 0.0  ;;  %v7394_v49 = vround.rtne.f32 %v2110_v43  ;;  %v7396_v54 = vround.rtne.f32 %v2393_v45  ;;  %v2112_v34 = vpop.f32.mrb[183].mxu1  ;;  %v2395_v50 = vpop.f32.mrb[27].mxu0 }
 0x3e6   : > { %5918 = vst [vmem:[%s8841_s12 + $0x628] sm:$0xff] %v6794_v59  ;;  %5919 = vst [vmem:[%s8841_s12 + $0x630] sm:$0xff] %v6795_v40  ;;  %v3626_v44 = vmax.f32 %v7385_v42, 0.0  ;;  %v3628_v11 = vmax.f32 %v7387_v55, 0.0  ;;  %v7395_v51 = vround.rtne.f32 %v2112_v34  ;;  %v7397_v39 = vround.rtne.f32 %v2395_v50 }
 0x3e7   : > { %v4125_v52 = vmin.f32 %v3625_v46, 255.0  ;;  %v4127_v56 = vmin.f32 %v3627_v47, 255.0  ;;  %v3635_v57 = vmax.f32 %v7394_v49, 0.0  ;;  %v3637_v58 = vmax.f32 %v7396_v54, 0.0  ;;  %6341 = vmatmul.mubr.msk.bf16.gmra.mrb[32].mxu1 %vm335_vm2, %v8789_v53 }
 0x3e8   : > { %v4126_v32 = vmin.f32 %v3626_v44, 255.0  ;;  %v4128_v60 = vmin.f32 %v3628_v11, 255.0  ;;  %v3636_v62 = vmax.f32 %v7395_v51, 0.0  ;;  %v3638_v22 = vmax.f32 %v7397_v39, 0.0  ;;  %2700 = vmatprep.mubr.bf16.mxu1 %v7994_v38 }
 0x3e9   : > { %v4135_v63 = vmin.f32 %v3635_v57, 255.0  ;;  %v4137_v0 = vmin.f32 %v3637_v58, 255.0 }
 0x3ea   : > { %v6799_v21 = vpack.c.bf16 %v4126_v32, %v4125_v52  ;;  %v6800_v20 = vpack.c.bf16 %v4128_v60, %v4127_v56  ;;  %v4136_v26 = vmin.f32 %v3636_v62, 255.0  ;;  %v4138_v1 = vmin.f32 %v3638_v22, 255.0  ;;  %v2116_v3 = vpop.f32.mrb[184].mxu1  ;;  %v2399_v41 = vpop.f32.mrb[28].mxu0 }
 0x3eb   : > { %v7404_v4 = vround.rtne.f32 %v2116_v3  ;;  %v7406_v61 = vround.rtne.f32 %v2399_v41  ;;  %v2118_v7 = vpop.f32.mrb[185].mxu1  ;;  %v2401_v53 = vpop.f32.mrb[29].mxu0 }
 0x3ec   : > { %5923 = vst [vmem:[%s8841_s12 + $0x650] sm:$0xff] %v6799_v21  ;;  %5924 = vst [vmem:[%s8841_s12 + $0x658] sm:$0xff] %v6800_v20  ;;  %v6804_v9 = vpack.c.bf16 %v4136_v26, %v4135_v63  ;;  %v6805_v10 = vpack.c.bf16 %v4138_v1, %v4137_v0  ;;  %v7405_v13 = vround.rtne.f32 %v2118_v7  ;;  %v7407_v15 = vround.rtne.f32 %v2401_v53  ;;  %v2120_v16 = vpop.f32.mrb[186].mxu1  ;;  %v2403_v14 = vpop.f32.mrb[30].mxu0 }
 0x3ed   : > { %v3645_v17 = vmax.f32 %v7404_v4, 0.0  ;;  %v3647_v18 = vmax.f32 %v7406_v61, 0.0  ;;  %v7414_v8 = vround.rtne.f32 %v2120_v16  ;;  %v7416_v19 = vround.rtne.f32 %v2403_v14  ;;  %v2122_v23 = vpop.f32.mrb[187].mxu1  ;;  %v2405_v5 = vpop.f32.mrb[31].mxu0 }
 0x3ee   : > { %5928 = vst [vmem:[%s8841_s12 + $0x678] sm:$0xff] %v6804_v9  ;;  %5929 = vst [vmem:[%s8841_s12 + $0x680] sm:$0xff] %v6805_v10  ;;  %v3646_v24 = vmax.f32 %v7405_v13, 0.0  ;;  %v3648_v27 = vmax.f32 %v7407_v15, 0.0  ;;  %v7415_v28 = vround.rtne.f32 %v2122_v23  ;;  %v7417_v29 = vround.rtne.f32 %v2405_v5 }
 0x3ef   : > { %v4145_v48 = vmin.f32 %v3645_v17, 255.0  ;;  %v4147_v25 = vmin.f32 %v3647_v18, 255.0  ;;  %v3655_v2 = vmax.f32 %v7414_v8, 0.0  ;;  %v3657_v30 = vmax.f32 %v7416_v19, 0.0  ;;  %6342 = vmatmul.mubr.msk.bf16.gmra.mrb[36].mxu1 %vm335_vm2, %v8799_v6 }
 0x3f0   : > { %v4146_v31 = vmin.f32 %v3646_v24, 255.0  ;;  %v4148_v33 = vmin.f32 %v3648_v27, 255.0  ;;  %v3656_v35 = vmax.f32 %v7415_v28, 0.0  ;;  %v3658_v36 = vmax.f32 %v7417_v29, 0.0  ;;  %2710 = vmatprep.mubr.bf16.mxu1 %v7994_v38 }
 0x3f1   : > { %v4155_v37 = vmin.f32 %v3655_v2, 255.0  ;;  %v4157_v59 = vmin.f32 %v3657_v30, 255.0 }
 0x3f2   : > { %v6809_v40 = vpack.c.bf16 %v4146_v31, %v4145_v48  ;;  %v6810_v42 = vpack.c.bf16 %v4148_v33, %v4147_v25  ;;  %v4156_v55 = vmin.f32 %v3656_v35, 255.0  ;;  %v4158_v43 = vmin.f32 %v3658_v36, 255.0  ;;  %v2126_v45 = vpop.f32.mrb[188].mxu1  ;;  %v2409_v46 = vpop.f32.mrb[32].mxu0 }
 0x3f3   : > { %v7424_v47 = vround.rtne.f32 %v2126_v45  ;;  %v7426_v49 = vround.rtne.f32 %v2409_v46  ;;  %v2128_v54 = vpop.f32.mrb[189].mxu1  ;;  %v2411_v6 = vpop.f32.mrb[33].mxu0 }
 0x3f4   : > { %5933 = vst [vmem:[%s8841_s12 + $0x6a0] sm:$0xff] %v6809_v40  ;;  %5934 = vst [vmem:[%s8841_s12 + $0x6a8] sm:$0xff] %v6810_v42  ;;  %v6814_v34 = vpack.c.bf16 %v4156_v55, %v4155_v37  ;;  %v6815_v50 = vpack.c.bf16 %v4158_v43, %v4157_v59  ;;  %v7425_v44 = vround.rtne.f32 %v2128_v54  ;;  %v7427_v38 = vround.rtne.f32 %v2411_v6  ;;  %v2130_v11 = vpop.f32.mrb[190].mxu1  ;;  %v2413_v51 = vpop.f32.mrb[34].mxu0 }
 0x3f5   : > { %v3665_v39 = vmax.f32 %v7424_v47, 0.0  ;;  %v3667_v52 = vmax.f32 %v7426_v49, 0.0  ;;  %v7434_v56 = vround.rtne.f32 %v2130_v11  ;;  %v7436_v57 = vround.rtne.f32 %v2413_v51  ;;  %v2132_v58 = vpop.f32.mrb[191].mxu1  ;;  %v2415_v32 = vpop.f32.mrb[35].mxu0 }
 0x3f6   : > { %5938 = vst [vmem:[%s8841_s12 + $0x6c8] sm:$0xff] %v6814_v34  ;;  %5939 = vst [vmem:[%s8841_s12 + $0x6d0] sm:$0xff] %v6815_v50  ;;  %v3666_v60 = vmax.f32 %v7425_v44, 0.0  ;;  %v3668_v62 = vmax.f32 %v7427_v38, 0.0  ;;  %v7435_v22 = vround.rtne.f32 %v2132_v58  ;;  %v7437_v63 = vround.rtne.f32 %v2415_v32 }
 0x3f7   : > { %v4165_v0 = vmin.f32 %v3665_v39, 255.0  ;;  %v4167_v21 = vmin.f32 %v3667_v52, 255.0  ;;  %v3675_v20 = vmax.f32 %v7434_v56, 0.0  ;;  %v3677_v26 = vmax.f32 %v7436_v57, 0.0  ;;  %6343 = vmatmul.mubr.msk.bf16.gmra.mrb[40].mxu1 %vm335_vm2, %v8807_v12 }
 0x3f8   : > { %v4166_v1 = vmin.f32 %v3666_v60, 255.0  ;;  %v4168_v3 = vmin.f32 %v3668_v62, 255.0  ;;  %v3676_v41 = vmax.f32 %v7435_v22, 0.0  ;;  %v3678_v4 = vmax.f32 %v7437_v63, 0.0 }
 0x3f9   : > { %v4175_v61 = vmin.f32 %v3675_v20, 255.0  ;;  %v4177_v7 = vmin.f32 %v3677_v26, 255.0 }
 0x3fa   : > { %v6819_v53 = vpack.c.bf16 %v4166_v1, %v4165_v0  ;;  %v6820_v9 = vpack.c.bf16 %v4168_v3, %v4167_v21  ;;  %v4176_v10 = vmin.f32 %v3676_v41, 255.0  ;;  %v4178_v13 = vmin.f32 %v3678_v4, 255.0  ;;  %v2136_v15 = vpop.f32.mrb[192].mxu1  ;;  %v2419_v16 = vpop.f32.mrb[36].mxu0 }
 0x3fb   : > { %v7444_v14 = vround.rtne.f32 %v2136_v15  ;;  %v7446_v17 = vround.rtne.f32 %v2419_v16  ;;  %v2138_v18 = vpop.f32.mrb[193].mxu1  ;;  %v2421_v8 = vpop.f32.mrb[37].mxu0 }
 0x3fc   : > { %5943 = vst [vmem:[%s8841_s12 + $0x6f0] sm:$0xff] %v6819_v53  ;;  %5944 = vst [vmem:[%s8841_s12 + $0x6f8] sm:$0xff] %v6820_v9  ;;  %v6824_v12 = vpack.c.bf16 %v4176_v10, %v4175_v61  ;;  %v6825_v19 = vpack.c.bf16 %v4178_v13, %v4177_v7  ;;  %v7445_v23 = vround.rtne.f32 %v2138_v18  ;;  %v7447_v5 = vround.rtne.f32 %v2421_v8  ;;  %v2140_v24 = vpop.f32.mrb[194].mxu1  ;;  %v2423_v27 = vpop.f32.mrb[38].mxu0 }
 0x3fd   : > { %v3685_v28 = vmax.f32 %v7444_v14, 0.0  ;;  %v3687_v29 = vmax.f32 %v7446_v17, 0.0  ;;  %v7454_v48 = vround.rtne.f32 %v2140_v24  ;;  %v7456_v25 = vround.rtne.f32 %v2423_v27  ;;  %v2142_v2 = vpop.f32.mrb[195].mxu1  ;;  %v2425_v30 = vpop.f32.mrb[39].mxu0 }
 0x3fe   : > { %5948 = vst [vmem:[%s8841_s12 + $0x718] sm:$0xff] %v6824_v12  ;;  %5949 = vst [vmem:[%s8841_s12 + $0x720] sm:$0xff] %v6825_v19  ;;  %v3686_v31 = vmax.f32 %v7445_v23, 0.0  ;;  %v3688_v33 = vmax.f32 %v7447_v5, 0.0  ;;  %v7455_v35 = vround.rtne.f32 %v2142_v2  ;;  %v7457_v36 = vround.rtne.f32 %v2425_v30 }
 0x3ff   : > { %v4185_v37 = vmin.f32 %v3685_v28, 255.0  ;;  %v4187_v59 = vmin.f32 %v3687_v29, 255.0  ;;  %v3695_v40 = vmax.f32 %v7454_v48, 0.0  ;;  %v3697_v42 = vmax.f32 %v7456_v25, 0.0 }
 0x400   : > { %v4186_v55 = vmin.f32 %v3686_v31, 255.0  ;;  %v4188_v43 = vmin.f32 %v3688_v33, 255.0  ;;  %v3696_v45 = vmax.f32 %v7455_v35, 0.0  ;;  %v3698_v46 = vmax.f32 %v7457_v36, 0.0 }
 0x401   : > { %v4195_v47 = vmin.f32 %v3695_v40, 255.0  ;;  %v4197_v49 = vmin.f32 %v3697_v42, 255.0 }
 0x402   : > { %v6829_v54 = vpack.c.bf16 %v4186_v55, %v4185_v37  ;;  %v6830_v6 = vpack.c.bf16 %v4188_v43, %v4187_v59  ;;  %v4196_v34 = vmin.f32 %v3696_v45, 255.0  ;;  %v4198_v50 = vmin.f32 %v3698_v46, 255.0  ;;  %v2146_v44 = vpop.f32.mrb[196].mxu1  ;;  %v2429_v38 = vpop.f32.mrb[40].mxu0 }
 0x403   : > { %v7464_v11 = vround.rtne.f32 %v2146_v44  ;;  %v7466_v51 = vround.rtne.f32 %v2429_v38  ;;  %v2148_v39 = vpop.f32.mrb[197].mxu1  ;;  %v2431_v52 = vpop.f32.mrb[41].mxu0 }
 0x404   : > { %5953 = vst [vmem:[%s8841_s12 + $0x740] sm:$0xff] %v6829_v54  ;;  %5954 = vst [vmem:[%s8841_s12 + $0x748] sm:$0xff] %v6830_v6  ;;  %v6834_v56 = vpack.c.bf16 %v4196_v34, %v4195_v47  ;;  %v6835_v57 = vpack.c.bf16 %v4198_v50, %v4197_v49  ;;  %v7465_v58 = vround.rtne.f32 %v2148_v39  ;;  %v7467_v32 = vround.rtne.f32 %v2431_v52  ;;  %v2150_v60 = vpop.f32.mrb[198].mxu1  ;;  %v2433_v62 = vpop.f32.mrb[42].mxu0 }
 0x405   : > { %v3705_v22 = vmax.f32 %v7464_v11, 0.0  ;;  %v3707_v63 = vmax.f32 %v7466_v51, 0.0  ;;  %v7474_v0 = vround.rtne.f32 %v2150_v60  ;;  %v7476_v21 = vround.rtne.f32 %v2433_v62  ;;  %v2152_v20 = vpop.f32.mrb[199].mxu1  ;;  %v2435_v26 = vpop.f32.mrb[43].mxu0 }
 0x406   : > { %5958 = vst [vmem:[%s8841_s12 + $0x768] sm:$0xff] %v6834_v56  ;;  %5959 = vst [vmem:[%s8841_s12 + $0x770] sm:$0xff] %v6835_v57  ;;  %v3706_v1 = vmax.f32 %v7465_v58, 0.0  ;;  %v3708_v3 = vmax.f32 %v7467_v32, 0.0  ;;  %v7475_v41 = vround.rtne.f32 %v2152_v20  ;;  %v7477_v4 = vround.rtne.f32 %v2435_v26 }
 0x407   : > { %v4205_v61 = vmin.f32 %v3705_v22, 255.0  ;;  %v4207_v7 = vmin.f32 %v3707_v63, 255.0  ;;  %v3715_v53 = vmax.f32 %v7474_v0, 0.0  ;;  %v3717_v9 = vmax.f32 %v7476_v21, 0.0 }
 0x408   : > { %v4206_v10 = vmin.f32 %v3706_v1, 255.0  ;;  %v4208_v13 = vmin.f32 %v3708_v3, 255.0  ;;  %v3716_v15 = vmax.f32 %v7475_v41, 0.0  ;;  %v3718_v16 = vmax.f32 %v7477_v4, 0.0 }
 0x409   : > { %v4215_v14 = vmin.f32 %v3715_v53, 255.0  ;;  %v4217_v17 = vmin.f32 %v3717_v9, 255.0 }
 0x40a   : > { %v6839_v18 = vpack.c.bf16 %v4206_v10, %v4205_v61  ;;  %v6840_v8 = vpack.c.bf16 %v4208_v13, %v4207_v7  ;;  %v4216_v12 = vmin.f32 %v3716_v15, 255.0  ;;  %v4218_v19 = vmin.f32 %v3718_v16, 255.0  ;;  %v2472_v23 = vpop.f32.mrb[200].mxu1 }
 0x40b   : > { %v6988_v5 = vround.rtne.f32 %v2472_v23  ;;  %v2474_v24 = vpop.f32.mrb[201].mxu1 }
 0x40c   : > { %5963 = vst [vmem:[%s8841_s12 + $0x790] sm:$0xff] %v6839_v18  ;;  %5964 = vst [vmem:[%s8841_s12 + $0x798] sm:$0xff] %v6840_v8  ;;  %v6844_v27 = vpack.c.bf16 %v4216_v12, %v4215_v14  ;;  %v6845_v28 = vpack.c.bf16 %v4218_v19, %v4217_v17  ;;  %v6989_v29 = vround.rtne.f32 %v2474_v24  ;;  %v2476_v48 = vpop.f32.mrb[202].mxu1 }
 0x40d   : > { %v3229_v25 = vmax.f32 %v6988_v5, 0.0  ;;  %v6998_v2 = vround.rtne.f32 %v2476_v48  ;;  %v2478_v30 = vpop.f32.mrb[203].mxu1 }
 0x40e   : > { %5968 = vst [vmem:[%s8841_s12 + $0x7b8] sm:$0xff] %v6844_v27  ;;  %5969 = vst [vmem:[%s8841_s12 + $0x7c0] sm:$0xff] %v6845_v28  ;;  %v3230_v31 = vmax.f32 %v6989_v29, 0.0  ;;  %v6999_v33 = vround.rtne.f32 %v2478_v30 }
 0x40f   : > { %v3729_v35 = vmin.f32 %v3229_v25, 255.0  ;;  %v3239_v36 = vmax.f32 %v6998_v2, 0.0 }
 0x410   : > { %v3730_v37 = vmin.f32 %v3230_v31, 255.0  ;;  %v3240_v59 = vmax.f32 %v6999_v33, 0.0 }
 0x411   : > { %v3739_v40 = vmin.f32 %v3239_v36, 255.0 }
 0x412   : > { %v6601_v42 = vpack.c.bf16 %v3730_v37, %v3729_v35  ;;  %v3740_v55 = vmin.f32 %v3240_v59, 255.0  ;;  %v2482_v43 = vpop.f32.mrb[204].mxu1 }
 0x413   : > { %v7008_v45 = vround.rtne.f32 %v2482_v43  ;;  %v2484_v46 = vpop.f32.mrb[205].mxu1 }
 0x414   : > { %5725 = vst [vmem:[%s8841_s12 + $0x20] sm:$0xff] %v6601_v42  ;;  %v6606_v47 = vpack.c.bf16 %v3740_v55, %v3739_v40  ;;  %v7009_v49 = vround.rtne.f32 %v2484_v46  ;;  %v2486_v54 = vpop.f32.mrb[206].mxu1 }
 0x415   : > { %v3249_v6 = vmax.f32 %v7008_v45, 0.0  ;;  %v7018_v34 = vround.rtne.f32 %v2486_v54  ;;  %v2488_v50 = vpop.f32.mrb[207].mxu1 }
 0x416   : > { %5730 = vst [vmem:[%s8841_s12 + $0x48] sm:$0xff] %v6606_v47  ;;  %v3250_v44 = vmax.f32 %v7009_v49, 0.0  ;;  %v7019_v38 = vround.rtne.f32 %v2488_v50 }
 0x417   : > { %v3749_v11 = vmin.f32 %v3249_v6, 255.0  ;;  %v3259_v51 = vmax.f32 %v7018_v34, 0.0 }
 0x418   : > { %v3750_v39 = vmin.f32 %v3250_v44, 255.0  ;;  %v3260_v52 = vmax.f32 %v7019_v38, 0.0 }
 0x419   : > { %v3759_v56 = vmin.f32 %v3259_v51, 255.0 }
 0x41a   : > { %v6611_v57 = vpack.c.bf16 %v3750_v39, %v3749_v11  ;;  %v3760_v58 = vmin.f32 %v3260_v52, 255.0  ;;  %v2492_v32 = vpop.f32.mrb[208].mxu1 }
 0x41b   : > { %v7028_v60 = vround.rtne.f32 %v2492_v32  ;;  %v2494_v62 = vpop.f32.mrb[209].mxu1 }
 0x41c   : > { %5735 = vst [vmem:[%s8841_s12 + $0x70] sm:$0xff] %v6611_v57  ;;  %v6616_v22 = vpack.c.bf16 %v3760_v58, %v3759_v56  ;;  %v7029_v63 = vround.rtne.f32 %v2494_v62  ;;  %v2496_v0 = vpop.f32.mrb[210].mxu1 }
 0x41d   : > { %v3269_v21 = vmax.f32 %v7028_v60, 0.0  ;;  %v7038_v20 = vround.rtne.f32 %v2496_v0  ;;  %v2498_v26 = vpop.f32.mrb[211].mxu1 }
 0x41e   : > { %5740 = vst [vmem:[%s8841_s12 + $0x98] sm:$0xff] %v6616_v22  ;;  %v3270_v1 = vmax.f32 %v7029_v63, 0.0  ;;  %v7039_v3 = vround.rtne.f32 %v2498_v26 }
 0x41f   : > { %v3769_v41 = vmin.f32 %v3269_v21, 255.0  ;;  %v3279_v4 = vmax.f32 %v7038_v20, 0.0 }
 0x420   : > { %v3770_v61 = vmin.f32 %v3270_v1, 255.0  ;;  %v3280_v7 = vmax.f32 %v7039_v3, 0.0 }
 0x421   : > { %v3779_v53 = vmin.f32 %v3279_v4, 255.0 }
 0x422   : > { %v6621_v9 = vpack.c.bf16 %v3770_v61, %v3769_v41  ;;  %v3780_v10 = vmin.f32 %v3280_v7, 255.0  ;;  %v2502_v13 = vpop.f32.mrb[212].mxu1 }
 0x423   : > { %v7048_v15 = vround.rtne.f32 %v2502_v13  ;;  %v2504_v16 = vpop.f32.mrb[213].mxu1 }
 0x424   : > { %5745 = vst [vmem:[%s8841_s12 + $0xc0] sm:$0xff] %v6621_v9  ;;  %v6626_v14 = vpack.c.bf16 %v3780_v10, %v3779_v53  ;;  %v7049_v17 = vround.rtne.f32 %v2504_v16  ;;  %v2506_v18 = vpop.f32.mrb[214].mxu1 }
 0x425   : > { %v3289_v8 = vmax.f32 %v7048_v15, 0.0  ;;  %v7058_v12 = vround.rtne.f32 %v2506_v18  ;;  %v2508_v19 = vpop.f32.mrb[215].mxu1 }
 0x426   : > { %5750 = vst [vmem:[%s8841_s12 + $0xe8] sm:$0xff] %v6626_v14  ;;  %v3290_v23 = vmax.f32 %v7049_v17, 0.0  ;;  %v7059_v5 = vround.rtne.f32 %v2508_v19 }
 0x427   : > { %v3789_v24 = vmin.f32 %v3289_v8, 255.0  ;;  %v3299_v27 = vmax.f32 %v7058_v12, 0.0 }
 0x428   : > { %v3790_v28 = vmin.f32 %v3290_v23, 255.0  ;;  %v3300_v29 = vmax.f32 %v7059_v5, 0.0 }
 0x429   : > { %v3799_v48 = vmin.f32 %v3299_v27, 255.0 }
 0x42a   : > { %v6631_v25 = vpack.c.bf16 %v3790_v28, %v3789_v24  ;;  %v3800_v2 = vmin.f32 %v3300_v29, 255.0  ;;  %v2512_v30 = vpop.f32.mrb[216].mxu1 }
 0x42b   : > { %v7068_v31 = vround.rtne.f32 %v2512_v30  ;;  %v2514_v33 = vpop.f32.mrb[217].mxu1 }
 0x42c   : > { %5755 = vst [vmem:[%s8841_s12 + $0x110] sm:$0xff] %v6631_v25  ;;  %v6636_v35 = vpack.c.bf16 %v3800_v2, %v3799_v48  ;;  %v7069_v36 = vround.rtne.f32 %v2514_v33  ;;  %v2516_v37 = vpop.f32.mrb[218].mxu1 }
 0x42d   : > { %v3309_v59 = vmax.f32 %v7068_v31, 0.0  ;;  %v7078_v40 = vround.rtne.f32 %v2516_v37  ;;  %v2518_v42 = vpop.f32.mrb[219].mxu1 }
 0x42e   : > { %5760 = vst [vmem:[%s8841_s12 + $0x138] sm:$0xff] %v6636_v35  ;;  %v3310_v55 = vmax.f32 %v7069_v36, 0.0  ;;  %v7079_v43 = vround.rtne.f32 %v2518_v42 }
 0x42f   : > { %v3809_v45 = vmin.f32 %v3309_v59, 255.0  ;;  %v3319_v46 = vmax.f32 %v7078_v40, 0.0 }
 0x430   : > { %v3810_v47 = vmin.f32 %v3310_v55, 255.0  ;;  %v3320_v49 = vmax.f32 %v7079_v43, 0.0 }
 0x431   : > { %v3819_v54 = vmin.f32 %v3319_v46, 255.0 }
 0x432   : > { %v6641_v6 = vpack.c.bf16 %v3810_v47, %v3809_v45  ;;  %v3820_v34 = vmin.f32 %v3320_v49, 255.0  ;;  %v2522_v50 = vpop.f32.mrb[220].mxu1 }
 0x433   : > { %v7088_v44 = vround.rtne.f32 %v2522_v50  ;;  %v2524_v38 = vpop.f32.mrb[221].mxu1 }
 0x434   : > { %5765 = vst [vmem:[%s8841_s12 + $0x160] sm:$0xff] %v6641_v6  ;;  %v6646_v11 = vpack.c.bf16 %v3820_v34, %v3819_v54  ;;  %v7089_v51 = vround.rtne.f32 %v2524_v38  ;;  %v2526_v39 = vpop.f32.mrb[222].mxu1 }
 0x435   : > { %v3329_v52 = vmax.f32 %v7088_v44, 0.0  ;;  %v7098_v56 = vround.rtne.f32 %v2526_v39  ;;  %v2528_v57 = vpop.f32.mrb[223].mxu1 }
 0x436   : > { %5770 = vst [vmem:[%s8841_s12 + $0x188] sm:$0xff] %v6646_v11  ;;  %v3330_v58 = vmax.f32 %v7089_v51, 0.0  ;;  %v7099_v32 = vround.rtne.f32 %v2528_v57 }
 0x437   : > { %v3829_v60 = vmin.f32 %v3329_v52, 255.0  ;;  %v3339_v62 = vmax.f32 %v7098_v56, 0.0 }
 0x438   : > { %v3830_v22 = vmin.f32 %v3330_v58, 255.0  ;;  %v3340_v63 = vmax.f32 %v7099_v32, 0.0 }
 0x439   : > { %v3839_v0 = vmin.f32 %v3339_v62, 255.0 }
 0x43a   : > { %v6651_v21 = vpack.c.bf16 %v3830_v22, %v3829_v60  ;;  %v3840_v20 = vmin.f32 %v3340_v63, 255.0  ;;  %v2532_v26 = vpop.f32.mrb[224].mxu1 }
 0x43b   : > { %v7108_v1 = vround.rtne.f32 %v2532_v26  ;;  %v2534_v3 = vpop.f32.mrb[225].mxu1 }
 0x43c   : > { %5775 = vst [vmem:[%s8841_s12 + $0x1b0] sm:$0xff] %v6651_v21  ;;  %v6656_v41 = vpack.c.bf16 %v3840_v20, %v3839_v0  ;;  %v7109_v4 = vround.rtne.f32 %v2534_v3  ;;  %v2536_v61 = vpop.f32.mrb[226].mxu1 }
 0x43d   : > { %v3349_v7 = vmax.f32 %v7108_v1, 0.0  ;;  %v7118_v53 = vround.rtne.f32 %v2536_v61  ;;  %v2538_v9 = vpop.f32.mrb[227].mxu1 }
 0x43e   : > { %5780 = vst [vmem:[%s8841_s12 + $0x1d8] sm:$0xff] %v6656_v41  ;;  %v3350_v10 = vmax.f32 %v7109_v4, 0.0  ;;  %v7119_v13 = vround.rtne.f32 %v2538_v9 }
 0x43f   : > { %v3849_v15 = vmin.f32 %v3349_v7, 255.0  ;;  %v3359_v16 = vmax.f32 %v7118_v53, 0.0 }
 0x440   : > { %v3850_v14 = vmin.f32 %v3350_v10, 255.0  ;;  %v3360_v17 = vmax.f32 %v7119_v13, 0.0 }
 0x441   : > { %v3859_v18 = vmin.f32 %v3359_v16, 255.0 }
 0x442   : > { %v6661_v8 = vpack.c.bf16 %v3850_v14, %v3849_v15  ;;  %v3860_v12 = vmin.f32 %v3360_v17, 255.0  ;;  %v2542_v19 = vpop.f32.mrb[228].mxu1 }
 0x443   : > { %v7128_v23 = vround.rtne.f32 %v2542_v19  ;;  %v2544_v5 = vpop.f32.mrb[229].mxu1 }
 0x444   : > { %5785 = vst [vmem:[%s8841_s12 + $0x200] sm:$0xff] %v6661_v8  ;;  %v6666_v24 = vpack.c.bf16 %v3860_v12, %v3859_v18  ;;  %v7129_v27 = vround.rtne.f32 %v2544_v5  ;;  %v2546_v28 = vpop.f32.mrb[230].mxu1 }
 0x445   : > { %v3369_v29 = vmax.f32 %v7128_v23, 0.0  ;;  %v7138_v48 = vround.rtne.f32 %v2546_v28  ;;  %v2548_v25 = vpop.f32.mrb[231].mxu1 }
 0x446   : > { %5790 = vst [vmem:[%s8841_s12 + $0x228] sm:$0xff] %v6666_v24  ;;  %v3370_v2 = vmax.f32 %v7129_v27, 0.0  ;;  %v7139_v30 = vround.rtne.f32 %v2548_v25 }
 0x447   : > { %v3869_v31 = vmin.f32 %v3369_v29, 255.0  ;;  %v3379_v33 = vmax.f32 %v7138_v48, 0.0 }
 0x448   : > { %v3870_v35 = vmin.f32 %v3370_v2, 255.0  ;;  %v3380_v36 = vmax.f32 %v7139_v30, 0.0 }
 0x449   : > { %v3879_v37 = vmin.f32 %v3379_v33, 255.0 }
 0x44a   : > { %v6671_v59 = vpack.c.bf16 %v3870_v35, %v3869_v31  ;;  %v3880_v40 = vmin.f32 %v3380_v36, 255.0  ;;  %v2552_v42 = vpop.f32.mrb[232].mxu1 }
 0x44b   : > { %v7148_v55 = vround.rtne.f32 %v2552_v42  ;;  %v2554_v43 = vpop.f32.mrb[233].mxu1 }
 0x44c   : > { %5795 = vst [vmem:[%s8841_s12 + $0x250] sm:$0xff] %v6671_v59  ;;  %v6676_v45 = vpack.c.bf16 %v3880_v40, %v3879_v37  ;;  %v7149_v46 = vround.rtne.f32 %v2554_v43  ;;  %v2556_v47 = vpop.f32.mrb[234].mxu1 }
 0x44d   : > { %v3389_v49 = vmax.f32 %v7148_v55, 0.0  ;;  %v7158_v54 = vround.rtne.f32 %v2556_v47  ;;  %v2558_v6 = vpop.f32.mrb[235].mxu1 }
 0x44e   : > { %5800 = vst [vmem:[%s8841_s12 + $0x278] sm:$0xff] %v6676_v45  ;;  %v3390_v34 = vmax.f32 %v7149_v46, 0.0  ;;  %v7159_v50 = vround.rtne.f32 %v2558_v6 }
 0x44f   : > { %v3889_v44 = vmin.f32 %v3389_v49, 255.0  ;;  %v3399_v38 = vmax.f32 %v7158_v54, 0.0 }
 0x450   : > { %v3890_v11 = vmin.f32 %v3390_v34, 255.0  ;;  %v3400_v51 = vmax.f32 %v7159_v50, 0.0 }
 0x451   : > { %v3899_v39 = vmin.f32 %v3399_v38, 255.0 }
 0x452   : > { %v6681_v52 = vpack.c.bf16 %v3890_v11, %v3889_v44  ;;  %v3900_v56 = vmin.f32 %v3400_v51, 255.0  ;;  %v2562_v57 = vpop.f32.mrb[236].mxu1 }
 0x453   : > { %v7168_v58 = vround.rtne.f32 %v2562_v57  ;;  %v2564_v32 = vpop.f32.mrb[237].mxu1 }
 0x454   : > { %5805 = vst [vmem:[%s8841_s12 + $0x2a0] sm:$0xff] %v6681_v52  ;;  %v6686_v60 = vpack.c.bf16 %v3900_v56, %v3899_v39  ;;  %v7169_v62 = vround.rtne.f32 %v2564_v32  ;;  %v2566_v22 = vpop.f32.mrb[238].mxu1 }
 0x455   : > { %v3409_v63 = vmax.f32 %v7168_v58, 0.0  ;;  %v7178_v0 = vround.rtne.f32 %v2566_v22  ;;  %v2568_v21 = vpop.f32.mrb[239].mxu1 }
 0x456   : > { %5810 = vst [vmem:[%s8841_s12 + $0x2c8] sm:$0xff] %v6686_v60  ;;  %v3410_v20 = vmax.f32 %v7169_v62, 0.0  ;;  %v7179_v26 = vround.rtne.f32 %v2568_v21 }
 0x457   : > { %v3909_v1 = vmin.f32 %v3409_v63, 255.0  ;;  %v3419_v3 = vmax.f32 %v7178_v0, 0.0 }
 0x458   : > { %v3910_v41 = vmin.f32 %v3410_v20, 255.0  ;;  %v3420_v4 = vmax.f32 %v7179_v26, 0.0 }
 0x459   : > { %v3919_v61 = vmin.f32 %v3419_v3, 255.0 }
 0x45a   : > { %v6691_v7 = vpack.c.bf16 %v3910_v41, %v3909_v1  ;;  %v3920_v53 = vmin.f32 %v3420_v4, 255.0  ;;  %v2572_v9 = vpop.f32.mrb[240].mxu1 }
 0x45b   : > { %v7188_v10 = vround.rtne.f32 %v2572_v9  ;;  %v2574_v13 = vpop.f32.mrb[241].mxu1 }
 0x45c   : > { %5815 = vst [vmem:[%s8841_s12 + $0x2f0] sm:$0xff] %v6691_v7  ;;  %v6696_v15 = vpack.c.bf16 %v3920_v53, %v3919_v61  ;;  %v7189_v16 = vround.rtne.f32 %v2574_v13  ;;  %v2576_v14 = vpop.f32.mrb[242].mxu1 }
 0x45d   : > { %v3429_v17 = vmax.f32 %v7188_v10, 0.0  ;;  %v7198_v18 = vround.rtne.f32 %v2576_v14  ;;  %v2578_v8 = vpop.f32.mrb[243].mxu1 }
 0x45e   : > { %5820 = vst [vmem:[%s8841_s12 + $0x318] sm:$0xff] %v6696_v15  ;;  %v3430_v12 = vmax.f32 %v7189_v16, 0.0  ;;  %v7199_v19 = vround.rtne.f32 %v2578_v8 }
 0x45f   : > { %v3929_v23 = vmin.f32 %v3429_v17, 255.0  ;;  %v3439_v5 = vmax.f32 %v7198_v18, 0.0 }
 0x460   : > { %v3930_v24 = vmin.f32 %v3430_v12, 255.0  ;;  %v3440_v27 = vmax.f32 %v7199_v19, 0.0 }
 0x461   : > { %v3939_v28 = vmin.f32 %v3439_v5, 255.0 }
 0x462   : > { %v6701_v29 = vpack.c.bf16 %v3930_v24, %v3929_v23  ;;  %v3940_v48 = vmin.f32 %v3440_v27, 255.0  ;;  %v2582_v25 = vpop.f32.mrb[244].mxu1 }
 0x463   : > { %v7208_v2 = vround.rtne.f32 %v2582_v25  ;;  %v2584_v30 = vpop.f32.mrb[245].mxu1 }
 0x464   : > { %5825 = vst [vmem:[%s8841_s12 + $0x340] sm:$0xff] %v6701_v29  ;;  %v6706_v31 = vpack.c.bf16 %v3940_v48, %v3939_v28  ;;  %v7209_v33 = vround.rtne.f32 %v2584_v30  ;;  %v2586_v35 = vpop.f32.mrb[246].mxu1 }
 0x465   : > { %v3449_v36 = vmax.f32 %v7208_v2, 0.0  ;;  %v7218_v37 = vround.rtne.f32 %v2586_v35  ;;  %v2588_v59 = vpop.f32.mrb[247].mxu1 }
 0x466   : > { %5830 = vst [vmem:[%s8841_s12 + $0x368] sm:$0xff] %v6706_v31  ;;  %v3450_v40 = vmax.f32 %v7209_v33, 0.0  ;;  %v7219_v42 = vround.rtne.f32 %v2588_v59 }
 0x467   : > { %v3949_v55 = vmin.f32 %v3449_v36, 255.0  ;;  %v3459_v43 = vmax.f32 %v7218_v37, 0.0 }
 0x468   : > { %v3950_v45 = vmin.f32 %v3450_v40, 255.0  ;;  %v3460_v46 = vmax.f32 %v7219_v42, 0.0 }
 0x469   : > { %v3959_v47 = vmin.f32 %v3459_v43, 255.0 }
 0x46a   : > { %v6711_v49 = vpack.c.bf16 %v3950_v45, %v3949_v55  ;;  %v3960_v54 = vmin.f32 %v3460_v46, 255.0  ;;  %v2592_v6 = vpop.f32.mrb[248].mxu1 }
 0x46b   : > { %v7228_v34 = vround.rtne.f32 %v2592_v6  ;;  %v2594_v50 = vpop.f32.mrb[249].mxu1 }
 0x46c   : > { %5835 = vst [vmem:[%s8841_s12 + $0x390] sm:$0xff] %v6711_v49  ;;  %v6716_v44 = vpack.c.bf16 %v3960_v54, %v3959_v47  ;;  %v7229_v38 = vround.rtne.f32 %v2594_v50  ;;  %v2596_v11 = vpop.f32.mrb[250].mxu1 }
 0x46d   : > { %v3469_v51 = vmax.f32 %v7228_v34, 0.0  ;;  %v7238_v39 = vround.rtne.f32 %v2596_v11  ;;  %v2598_v52 = vpop.f32.mrb[251].mxu1 }
 0x46e   : > { %5840 = vst [vmem:[%s8841_s12 + $0x3b8] sm:$0xff] %v6716_v44  ;;  %v3470_v56 = vmax.f32 %v7229_v38, 0.0  ;;  %v7239_v57 = vround.rtne.f32 %v2598_v52 }
 0x46f   : > { %v3969_v58 = vmin.f32 %v3469_v51, 255.0  ;;  %v3479_v32 = vmax.f32 %v7238_v39, 0.0 }
 0x470   : > { %v3970_v60 = vmin.f32 %v3470_v56, 255.0  ;;  %v3480_v62 = vmax.f32 %v7239_v57, 0.0 }
 0x471   : > { %v3979_v22 = vmin.f32 %v3479_v32, 255.0 }
 0x472   : > { %v6721_v63 = vpack.c.bf16 %v3970_v60, %v3969_v58  ;;  %v3980_v0 = vmin.f32 %v3480_v62, 255.0  ;;  %v2602_v21 = vpop.f32.mrb[252].mxu1 }
 0x473   : > { %v7248_v20 = vround.rtne.f32 %v2602_v21  ;;  %v2604_v26 = vpop.f32.mrb[253].mxu1 }
 0x474   : > { %5845 = vst [vmem:[%s8841_s12 + $0x3e0] sm:$0xff] %v6721_v63  ;;  %v6726_v1 = vpack.c.bf16 %v3980_v0, %v3979_v22  ;;  %v7249_v3 = vround.rtne.f32 %v2604_v26  ;;  %v2606_v41 = vpop.f32.mrb[254].mxu1 }
 0x475   : > { %v3489_v4 = vmax.f32 %v7248_v20, 0.0  ;;  %v7258_v61 = vround.rtne.f32 %v2606_v41  ;;  %v2608_v7 = vpop.f32.mrb[255].mxu1 }
 0x476   : > { %5850 = vst [vmem:[%s8841_s12 + $0x408] sm:$0xff] %v6726_v1  ;;  %v3490_v53 = vmax.f32 %v7249_v3, 0.0  ;;  %v7259_v9 = vround.rtne.f32 %v2608_v7 }
 0x477   : > { %v3989_v10 = vmin.f32 %v3489_v4, 255.0  ;;  %v3499_v13 = vmax.f32 %v7258_v61, 0.0 }
 0x478   : > { %v3990_v15 = vmin.f32 %v3490_v53, 255.0  ;;  %v3500_v16 = vmax.f32 %v7259_v9, 0.0 }
 0x479   : > { %v3999_v14 = vmin.f32 %v3499_v13, 255.0 }
 0x47a   : > { %v6731_v17 = vpack.c.bf16 %v3990_v15, %v3989_v10  ;;  %v4000_v18 = vmin.f32 %v3500_v16, 255.0  ;;  %v2612_v8 = vpop.f32.mrb[0].mxu1 }
 0x47b   : > { %v7268_v12 = vround.rtne.f32 %v2612_v8  ;;  %v2614_v19 = vpop.f32.mrb[1].mxu1 }
 0x47c   : > { %5855 = vst [vmem:[%s8841_s12 + $0x430] sm:$0xff] %v6731_v17  ;;  %v6736_v23 = vpack.c.bf16 %v4000_v18, %v3999_v14  ;;  %v7269_v5 = vround.rtne.f32 %v2614_v19  ;;  %v2616_v24 = vpop.f32.mrb[2].mxu1 }
 0x47d   : > { %v3509_v27 = vmax.f32 %v7268_v12, 0.0  ;;  %v7278_v28 = vround.rtne.f32 %v2616_v24  ;;  %v2618_v29 = vpop.f32.mrb[3].mxu1 }
 0x47e   : > { %5860 = vst [vmem:[%s8841_s12 + $0x458] sm:$0xff] %v6736_v23  ;;  %v3510_v48 = vmax.f32 %v7269_v5, 0.0  ;;  %v7279_v25 = vround.rtne.f32 %v2618_v29 }
 0x47f   : > { %v4009_v2 = vmin.f32 %v3509_v27, 255.0  ;;  %v3519_v30 = vmax.f32 %v7278_v28, 0.0 }
 0x480   : > { %v4010_v31 = vmin.f32 %v3510_v48, 255.0  ;;  %v3520_v33 = vmax.f32 %v7279_v25, 0.0 }
 0x481   : > { %v4019_v35 = vmin.f32 %v3519_v30, 255.0 }
 0x482   : > { %v6741_v36 = vpack.c.bf16 %v4010_v31, %v4009_v2  ;;  %v4020_v37 = vmin.f32 %v3520_v33, 255.0  ;;  %v2622_v59 = vpop.f32.mrb[4].mxu1 }
 0x483   : > { %v7288_v40 = vround.rtne.f32 %v2622_v59  ;;  %v2624_v42 = vpop.f32.mrb[5].mxu1 }
 0x484   : > { %5865 = vst [vmem:[%s8841_s12 + $0x480] sm:$0xff] %v6741_v36  ;;  %v6746_v55 = vpack.c.bf16 %v4020_v37, %v4019_v35  ;;  %v7289_v43 = vround.rtne.f32 %v2624_v42  ;;  %v2626_v45 = vpop.f32.mrb[6].mxu1 }
 0x485   : > { %v3529_v46 = vmax.f32 %v7288_v40, 0.0  ;;  %v7298_v47 = vround.rtne.f32 %v2626_v45  ;;  %v2628_v49 = vpop.f32.mrb[7].mxu1 }
 0x486   : > { %5870 = vst [vmem:[%s8841_s12 + $0x4a8] sm:$0xff] %v6746_v55  ;;  %v3530_v54 = vmax.f32 %v7289_v43, 0.0  ;;  %v7299_v6 = vround.rtne.f32 %v2628_v49 }
 0x487   : > { %v4029_v34 = vmin.f32 %v3529_v46, 255.0  ;;  %v3539_v50 = vmax.f32 %v7298_v47, 0.0 }
 0x488   : > { %v4030_v44 = vmin.f32 %v3530_v54, 255.0  ;;  %v3540_v38 = vmax.f32 %v7299_v6, 0.0 }
 0x489   : > { %v4039_v11 = vmin.f32 %v3539_v50, 255.0 }
 0x48a   : > { %v6751_v51 = vpack.c.bf16 %v4030_v44, %v4029_v34  ;;  %v4040_v39 = vmin.f32 %v3540_v38, 255.0  ;;  %v2632_v52 = vpop.f32.mrb[8].mxu1 }
 0x48b   : > { %v7308_v56 = vround.rtne.f32 %v2632_v52  ;;  %v2634_v57 = vpop.f32.mrb[9].mxu1 }
 0x48c   : > { %5875 = vst [vmem:[%s8841_s12 + $0x4d0] sm:$0xff] %v6751_v51  ;;  %v6756_v58 = vpack.c.bf16 %v4040_v39, %v4039_v11  ;;  %v7309_v32 = vround.rtne.f32 %v2634_v57  ;;  %v2636_v60 = vpop.f32.mrb[10].mxu1 }
 0x48d   : > { %v3549_v62 = vmax.f32 %v7308_v56, 0.0  ;;  %v7318_v22 = vround.rtne.f32 %v2636_v60  ;;  %v2638_v63 = vpop.f32.mrb[11].mxu1 }
 0x48e   : > { %5880 = vst [vmem:[%s8841_s12 + $0x4f8] sm:$0xff] %v6756_v58  ;;  %v3550_v0 = vmax.f32 %v7309_v32, 0.0  ;;  %v7319_v21 = vround.rtne.f32 %v2638_v63 }
 0x48f   : > { %v4049_v20 = vmin.f32 %v3549_v62, 255.0  ;;  %v3559_v26 = vmax.f32 %v7318_v22, 0.0 }
 0x490   : > { %v4050_v1 = vmin.f32 %v3550_v0, 255.0  ;;  %v3560_v3 = vmax.f32 %v7319_v21, 0.0 }
 0x491   : > { %v4059_v41 = vmin.f32 %v3559_v26, 255.0 }
 0x492   : > { %v6761_v4 = vpack.c.bf16 %v4050_v1, %v4049_v20  ;;  %v4060_v61 = vmin.f32 %v3560_v3, 255.0  ;;  %v2642_v7 = vpop.f32.mrb[12].mxu1 }
 0x493   : > { %v7328_v53 = vround.rtne.f32 %v2642_v7  ;;  %v2644_v9 = vpop.f32.mrb[13].mxu1 }
 0x494   : > { %5885 = vst [vmem:[%s8841_s12 + $0x520] sm:$0xff] %v6761_v4  ;;  %v6766_v10 = vpack.c.bf16 %v4060_v61, %v4059_v41  ;;  %v7329_v13 = vround.rtne.f32 %v2644_v9  ;;  %v2646_v15 = vpop.f32.mrb[14].mxu1 }
 0x495   : > { %v3569_v16 = vmax.f32 %v7328_v53, 0.0  ;;  %v7338_v14 = vround.rtne.f32 %v2646_v15  ;;  %v2648_v17 = vpop.f32.mrb[15].mxu1 }
 0x496   : > { %5890 = vst [vmem:[%s8841_s12 + $0x548] sm:$0xff] %v6766_v10  ;;  %v3570_v18 = vmax.f32 %v7329_v13, 0.0  ;;  %v7339_v8 = vround.rtne.f32 %v2648_v17 }
 0x497   : > { %v4069_v12 = vmin.f32 %v3569_v16, 255.0  ;;  %v3579_v19 = vmax.f32 %v7338_v14, 0.0 }
 0x498   : > { %v4070_v23 = vmin.f32 %v3570_v18, 255.0  ;;  %v3580_v5 = vmax.f32 %v7339_v8, 0.0 }
 0x499   : > { %v4079_v24 = vmin.f32 %v3579_v19, 255.0 }
 0x49a   : > { %v6771_v27 = vpack.c.bf16 %v4070_v23, %v4069_v12  ;;  %v4080_v28 = vmin.f32 %v3580_v5, 255.0  ;;  %v2652_v29 = vpop.f32.mrb[16].mxu1 }
 0x49b   : > { %v7348_v48 = vround.rtne.f32 %v2652_v29  ;;  %v2654_v25 = vpop.f32.mrb[17].mxu1 }
 0x49c   : > { %5895 = vst [vmem:[%s8841_s12 + $0x570] sm:$0xff] %v6771_v27  ;;  %v6776_v2 = vpack.c.bf16 %v4080_v28, %v4079_v24  ;;  %v7349_v30 = vround.rtne.f32 %v2654_v25  ;;  %v2656_v31 = vpop.f32.mrb[18].mxu1 }
 0x49d   : > { %v3589_v33 = vmax.f32 %v7348_v48, 0.0  ;;  %v7358_v35 = vround.rtne.f32 %v2656_v31  ;;  %v2658_v36 = vpop.f32.mrb[19].mxu1 }
 0x49e   : > { %5900 = vst [vmem:[%s8841_s12 + $0x598] sm:$0xff] %v6776_v2  ;;  %v3590_v37 = vmax.f32 %v7349_v30, 0.0  ;;  %v7359_v59 = vround.rtne.f32 %v2658_v36 }
 0x49f   : > { %v4089_v40 = vmin.f32 %v3589_v33, 255.0  ;;  %v3599_v42 = vmax.f32 %v7358_v35, 0.0 }
 0x4a0   : > { %v4090_v55 = vmin.f32 %v3590_v37, 255.0  ;;  %v3600_v43 = vmax.f32 %v7359_v59, 0.0 }
 0x4a1   : > { %v4099_v45 = vmin.f32 %v3599_v42, 255.0 }
 0x4a2   : > { %v6781_v46 = vpack.c.bf16 %v4090_v55, %v4089_v40  ;;  %v4100_v47 = vmin.f32 %v3600_v43, 255.0  ;;  %v2662_v49 = vpop.f32.mrb[20].mxu1 }
 0x4a3   : > { %v7368_v54 = vround.rtne.f32 %v2662_v49  ;;  %v2664_v6 = vpop.f32.mrb[21].mxu1 }
 0x4a4   : > { %5905 = vst [vmem:[%s8841_s12 + $0x5c0] sm:$0xff] %v6781_v46  ;;  %v6786_v34 = vpack.c.bf16 %v4100_v47, %v4099_v45  ;;  %v7369_v50 = vround.rtne.f32 %v2664_v6  ;;  %v2666_v44 = vpop.f32.mrb[22].mxu1 }
 0x4a5   : > { %v3609_v38 = vmax.f32 %v7368_v54, 0.0  ;;  %v7378_v11 = vround.rtne.f32 %v2666_v44  ;;  %v2668_v51 = vpop.f32.mrb[23].mxu1 }
 0x4a6   : > { %5910 = vst [vmem:[%s8841_s12 + $0x5e8] sm:$0xff] %v6786_v34  ;;  %v3610_v39 = vmax.f32 %v7369_v50, 0.0  ;;  %v7379_v52 = vround.rtne.f32 %v2668_v51 }
 0x4a7   : > { %v4109_v56 = vmin.f32 %v3609_v38, 255.0  ;;  %v3619_v57 = vmax.f32 %v7378_v11, 0.0 }
 0x4a8   : > { %v4110_v58 = vmin.f32 %v3610_v39, 255.0  ;;  %v3620_v32 = vmax.f32 %v7379_v52, 0.0 }
 0x4a9   : > { %v4119_v60 = vmin.f32 %v3619_v57, 255.0 }
 0x4aa   : > { %v6791_v62 = vpack.c.bf16 %v4110_v58, %v4109_v56  ;;  %v4120_v22 = vmin.f32 %v3620_v32, 255.0  ;;  %v2672_v63 = vpop.f32.mrb[24].mxu1 }
 0x4ab   : > { %v7388_v0 = vround.rtne.f32 %v2672_v63  ;;  %v2674_v21 = vpop.f32.mrb[25].mxu1 }
 0x4ac   : > { %5915 = vst [vmem:[%s8841_s12 + $0x610] sm:$0xff] %v6791_v62  ;;  %v6796_v20 = vpack.c.bf16 %v4120_v22, %v4119_v60  ;;  %v7389_v26 = vround.rtne.f32 %v2674_v21  ;;  %v2676_v1 = vpop.f32.mrb[26].mxu1 }
 0x4ad   : > { %v3629_v3 = vmax.f32 %v7388_v0, 0.0  ;;  %v7398_v41 = vround.rtne.f32 %v2676_v1  ;;  %v2678_v4 = vpop.f32.mrb[27].mxu1 }
 0x4ae   : > { %5920 = vst [vmem:[%s8841_s12 + $0x638] sm:$0xff] %v6796_v20  ;;  %v3630_v61 = vmax.f32 %v7389_v26, 0.0  ;;  %v7399_v7 = vround.rtne.f32 %v2678_v4 }
 0x4af   : > { %v4129_v53 = vmin.f32 %v3629_v3, 255.0  ;;  %v3639_v9 = vmax.f32 %v7398_v41, 0.0 }
 0x4b0   : > { %v4130_v10 = vmin.f32 %v3630_v61, 255.0  ;;  %v3640_v13 = vmax.f32 %v7399_v7, 0.0 }
 0x4b1   : > { %v4139_v15 = vmin.f32 %v3639_v9, 255.0 }
 0x4b2   : > { %v6801_v16 = vpack.c.bf16 %v4130_v10, %v4129_v53  ;;  %v4140_v14 = vmin.f32 %v3640_v13, 255.0  ;;  %v2682_v17 = vpop.f32.mrb[28].mxu1 }
 0x4b3   : > { %v7408_v18 = vround.rtne.f32 %v2682_v17  ;;  %v2684_v8 = vpop.f32.mrb[29].mxu1 }
 0x4b4   : > { %5925 = vst [vmem:[%s8841_s12 + $0x660] sm:$0xff] %v6801_v16  ;;  %v6806_v12 = vpack.c.bf16 %v4140_v14, %v4139_v15  ;;  %v7409_v19 = vround.rtne.f32 %v2684_v8  ;;  %v2686_v23 = vpop.f32.mrb[30].mxu1 }
 0x4b5   : > { %v3649_v5 = vmax.f32 %v7408_v18, 0.0  ;;  %v7418_v24 = vround.rtne.f32 %v2686_v23  ;;  %v2688_v27 = vpop.f32.mrb[31].mxu1 }
 0x4b6   : > { %5930 = vst [vmem:[%s8841_s12 + $0x688] sm:$0xff] %v6806_v12  ;;  %v3650_v28 = vmax.f32 %v7409_v19, 0.0  ;;  %v7419_v29 = vround.rtne.f32 %v2688_v27 }
 0x4b7   : > { %v4149_v48 = vmin.f32 %v3649_v5, 255.0  ;;  %v3659_v25 = vmax.f32 %v7418_v24, 0.0 }
 0x4b8   : > { %v4150_v2 = vmin.f32 %v3650_v28, 255.0  ;;  %v3660_v30 = vmax.f32 %v7419_v29, 0.0 }
 0x4b9   : > { %v4159_v31 = vmin.f32 %v3659_v25, 255.0 }
 0x4ba   : > { %v6811_v33 = vpack.c.bf16 %v4150_v2, %v4149_v48  ;;  %v4160_v35 = vmin.f32 %v3660_v30, 255.0  ;;  %v2692_v36 = vpop.f32.mrb[32].mxu1 }
 0x4bb   : > { %v7428_v37 = vround.rtne.f32 %v2692_v36  ;;  %v2694_v59 = vpop.f32.mrb[33].mxu1 }
 0x4bc   : > { %5935 = vst [vmem:[%s8841_s12 + $0x6b0] sm:$0xff] %v6811_v33  ;;  %v6816_v40 = vpack.c.bf16 %v4160_v35, %v4159_v31  ;;  %v7429_v42 = vround.rtne.f32 %v2694_v59  ;;  %v2696_v55 = vpop.f32.mrb[34].mxu1 }
 0x4bd   : > { %v3669_v43 = vmax.f32 %v7428_v37, 0.0  ;;  %v7438_v45 = vround.rtne.f32 %v2696_v55  ;;  %v2698_v46 = vpop.f32.mrb[35].mxu1 }
 0x4be   : > { %5940 = vst [vmem:[%s8841_s12 + $0x6d8] sm:$0xff] %v6816_v40  ;;  %v3670_v47 = vmax.f32 %v7429_v42, 0.0  ;;  %v7439_v49 = vround.rtne.f32 %v2698_v46 }
 0x4bf   : > { %v4169_v54 = vmin.f32 %v3669_v43, 255.0  ;;  %v3679_v6 = vmax.f32 %v7438_v45, 0.0 }
 0x4c0   : > { %v4170_v34 = vmin.f32 %v3670_v47, 255.0  ;;  %v3680_v50 = vmax.f32 %v7439_v49, 0.0 }
 0x4c1   : > { %v4179_v44 = vmin.f32 %v3679_v6, 255.0 }
 0x4c2   : > { %v6821_v38 = vpack.c.bf16 %v4170_v34, %v4169_v54  ;;  %v4180_v11 = vmin.f32 %v3680_v50, 255.0  ;;  %v2702_v51 = vpop.f32.mrb[36].mxu1 }
 0x4c3   : > { %v7448_v39 = vround.rtne.f32 %v2702_v51  ;;  %v2704_v52 = vpop.f32.mrb[37].mxu1 }
 0x4c4   : > { %5945 = vst [vmem:[%s8841_s12 + $0x700] sm:$0xff] %v6821_v38  ;;  %v6826_v56 = vpack.c.bf16 %v4180_v11, %v4179_v44  ;;  %v7449_v57 = vround.rtne.f32 %v2704_v52  ;;  %v2706_v58 = vpop.f32.mrb[38].mxu1 }
 0x4c5   : > { %v3689_v32 = vmax.f32 %v7448_v39, 0.0  ;;  %v7458_v60 = vround.rtne.f32 %v2706_v58  ;;  %v2708_v62 = vpop.f32.mrb[39].mxu1 }
 0x4c6   : > { %5950 = vst [vmem:[%s8841_s12 + $0x728] sm:$0xff] %v6826_v56  ;;  %v3690_v22 = vmax.f32 %v7449_v57, 0.0  ;;  %v7459_v63 = vround.rtne.f32 %v2708_v62 }
 0x4c7   : > { %v4189_v0 = vmin.f32 %v3689_v32, 255.0  ;;  %v3699_v21 = vmax.f32 %v7458_v60, 0.0 }
 0x4c8   : > { %v4190_v20 = vmin.f32 %v3690_v22, 255.0  ;;  %v3700_v26 = vmax.f32 %v7459_v63, 0.0 }
 0x4c9   : > { %v4199_v1 = vmin.f32 %v3699_v21, 255.0 }
 0x4ca   : > { %v6831_v3 = vpack.c.bf16 %v4190_v20, %v4189_v0  ;;  %v4200_v41 = vmin.f32 %v3700_v26, 255.0  ;;  %v2712_v4 = vpop.f32.mrb[40].mxu1 }
 0x4cb   : > { %v7468_v61 = vround.rtne.f32 %v2712_v4  ;;  %v2714_v7 = vpop.f32.mrb[41].mxu1 }
 0x4cc   : > { %5955 = vst [vmem:[%s8841_s12 + $0x750] sm:$0xff] %v6831_v3  ;;  %v6836_v53 = vpack.c.bf16 %v4200_v41, %v4199_v1  ;;  %v7469_v9 = vround.rtne.f32 %v2714_v7  ;;  %v2716_v10 = vpop.f32.mrb[42].mxu1 }
 0x4cd   : > { %v3709_v13 = vmax.f32 %v7468_v61, 0.0  ;;  %v7478_v15 = vround.rtne.f32 %v2716_v10  ;;  %v2718_v16 = vpop.f32.mrb[43].mxu1 }
 0x4ce   : > { %5960 = vst [vmem:[%s8841_s12 + $0x778] sm:$0xff] %v6836_v53  ;;  %v3710_v14 = vmax.f32 %v7469_v9, 0.0  ;;  %v7479_v17 = vround.rtne.f32 %v2718_v16 }
 0x4cf   : > { %v4209_v18 = vmin.f32 %v3709_v13, 255.0  ;;  %v3719_v8 = vmax.f32 %v7478_v15, 0.0 }
 0x4d0   : > { %v4210_v12 = vmin.f32 %v3710_v14, 255.0  ;;  %v3720_v19 = vmax.f32 %v7479_v17, 0.0 }
 0x4d1   : > { %v4219_v23 = vmin.f32 %v3719_v8, 255.0 }
 0x4d2   : > { %v6841_v5 = vpack.c.bf16 %v4210_v12, %v4209_v18  ;;  %v4220_v24 = vmin.f32 %v3720_v19, 255.0 }
 0x4d4   : > { %5965 = vst [vmem:[%s8841_s12 + $0x7a0] sm:$0xff] %v6841_v5  ;;  %v6846_v27 = vpack.c.bf16 %v4220_v24, %v4219_v23 }
 0x4d6   : > { %5970 = vst [vmem:[%s8841_s12 + $0x7c8] sm:$0xff] %v6846_v27 }
 0x4d7   : > { %7821 = shalt.err (!%p7818_p2)
}
 0x4d8   : > { %s7822_s9 = scalar_lea.hbm %s9303_s19, 32000  ;;  %s7826_s3 = scalar_lea.hbm %s9459_s17, 384000 }
 0x4d9   : > { %p7823_p10 = scmp.ne.s32.totalorder %s9303_s19, %s7822_s9  ;;  %p7827_p6 = scmp.lt.u32.totalorder %s9303_s19, %s9459_s17 }
 0x4da   : > { %p7828_p1 = scmp.lt.u32.totalorder %s7826_s3, %s7822_s9  ;;  %p7830_p9 = scmp.lt.u32.totalorder %s7822_s9, %s9303_s19 }
 0x4db   : > { %p7824_p11 = pnand %p7823_p10, %p9460_p13 }
 0x4dc   : > { %p7829_p5 = por %p7828_p1, %p7827_p6 }
 0x4dd   : > { %p7825_p8 = pneg %p7824_p11 }
 0x4de   : > { %p7831_p3 = por %p7830_p9, %p7829_p5 }
 0x4e0   : > { %p7832_p4 = pnand %p7831_p3, %p7825_p8 }
 0x4e2   : > { %7835 = shalt.err (!%p7832_p4)
}
 0x4e3   : > { %s7996_s13 = smov 640   ;;  %s7997_s4 = smov 40  }
 0x4e4   : > { %7493 = dma.vmem_to_hbm [thread:$0]  (%p9460_p13), %s9305_s30, 32000, %s9303_s19, %s9311_s22, %s7996_s13, %s7996_s13, %s7997_s4  }
 0x4e5 PF: > { %s9461_s29 = sld [smem:[#allocation19_spill]]  ;;  %s9462_s18 = sld [smem:[#allocation28_spill]] }
 0x4e6   : > { %p7516_p12 = scmp.ge.s32.totalorder %s7980_s8, 2 }
 0x4eb   : > { %s6005_s25 = sand.u32 1, %s9461_s29   ;;  %p9463_p0 = scmp.ne.s32.totalorder %s9462_s18, 0 }
 0x4ec   : > { %s6006_s21 = scalar_lea.sflag [#allocation7], %s6005_s25 }
 0x4ed   : > { %p7509_p7 = pnand %p7516_p12, %p9463_p0 }
 0x4ef   : > { %7915 = dma.done.wait (!%p7509_p7), %s6006_s21, 32000  }
 0x4f0   : > { %7917 = vsyncadd (!%p7509_p7), %s6006_s21, 4294935296  ;;  %s29_s8 = sadd.s32 1, %s7980_s8   ;;  %s9465_s27 = sld [smem:[#allocation20_spill]] }
 0x4f1   : > { %p9340_p2 = scmp.ge.s32.totalorder %s29_s8, 14   ;;  %s9466_s21 = sld [smem:[#allocation33_spill]] }
 0x4f2   : > { %s9467_s30 = sld [smem:[#allocation21_spill]]  ;;  %s9468_s19 = sld [smem:[#allocation32_spill]] }
 0x4f3   : > { %s9469_s29 = sld [smem:[#allocation25_spill]]  ;;  %s9470_s10 = sld [smem:[#allocation26_spill]] }
 0x4f4   : > { %s9471_s16 = sld [smem:[#allocation29_spill]]  ;;  %s9472_s15 = sld [smem:[#allocation30_spill]] }
 0x4f5   : > { %s9473_s7 = sld [smem:[#allocation31_spill]]  ;;  %s9474_s0 = smov %s7924_s20 }
 0x4f6   : > { %s9476_s20 = smov %s9465_s27  ;;  %s9477_s22 = smov %s7936_s23 }
 0x4f7   : > { %s9478_s23 = smov %s7940_s24  ;;  %s9479_s24 = smov %s8242_s6 }
 0x4f8   : > { %s9480_s25 = smov %s7948_s26  ;;  %s9481_s26 = smov %s9467_s30 }
 0x4f9   : > { %s9482_s27 = smov %s9468_s19  ;;  %s9483_s28 = smov %s7968_s5 }
 0x4fa   : > { %s9484_s30 = smov %s9470_s10  ;;  %s9485_s5 = smov %s9471_s16 }
 0x4fb   : > { %s9486_s6 = smov %s9472_s15  ;;  %28 = sbr.rel (!%p9340_p2) target bundleno = 29 (0x1d), region = 102 }
 0x502   :  { %6011 = vsyncpa [#allocation6], 1 }
 0x503   :  { %6013 = vsyncpa [#allocation6 + $0x1], 1 }
 0x504   :  { %6014 = vsyncpa [#allocation9], 1 }
 0x505   :  { %6016 = vsyncpa [#allocation9 + $0x1], 1 }
 0x506   :  { %6017 = vsyncpa [#allocation7], 1 }
 0x507   :  { %6019 = vsyncpa [#allocation7 + $0x1], 1 }

</bundles_post_ra>
